<compile_context>
chip_gen: v6e
topology: v6e:2x2x1
jax: 0.10.0
libtpu: 0.0.40
codegen_flags: <defaults>
</compile_context>

<pallas_src>
import math

import numpy as np

import jax
import jax.numpy as jnp
from jax.experimental import pallas as pl
from jax.experimental.pallas import tpu as pltpu


# Tap order shared by the weight repack, the boundary masks and the kernel.
_TAPS = tuple((dy, dx) for dy in (-1, 0, 1) for dx in (-1, 0, 1))
_BIAS_ROWS = 16          # bias-fold block height (bf16 sublane-tile multiple)


def _round_up(x, m):
    return -(-x // m) * m


# ----------------------------------------------------------------------------
# One-time parameter preparation (outside the jitted forward).
# ----------------------------------------------------------------------------
def prepare_params(params):
    """Repack HWIO (3,3,Cin,Cout) weights + bias into bf16 matmul slabs.

    Per layer returns a (Cout, 9*Cin_pad + 16) bf16 array:
      col [t*Cin_pad + ci] = w[dy,dx,ci,co]  with tap t = (dy+1)*3 + (dx+1)
      col [9*Cin_pad]      = bias            (rest of the bias block is 0)
    """
    packed = []
    for w, b in params:
        cin, cout = w.shape[2], w.shape[3]
        cin_pad = _round_up(cin, 16)                        # bf16 sublane tile
        w2 = jnp.transpose(w, (3, 0, 1, 2))                 # (Cout, 3, 3, Cin)
        if cin_pad != cin:
            w2 = jnp.pad(w2, ((0, 0), (0, 0), (0, 0), (0, cin_pad - cin)))
        w2 = w2.reshape(cout, 9 * cin_pad)
        bias_blk = jnp.zeros((cout, _BIAS_ROWS), w2.dtype).at[:, 0].set(b)
        packed.append(jnp.concatenate([w2, bias_blk], axis=1).astype(jnp.bfloat16))
    return packed


# ----------------------------------------------------------------------------
# Trace-time constants (depend only on static shapes).
# ----------------------------------------------------------------------------
def _boundary_masks(H, W, n_blk):
    """(16, n_blk*H*W) bf16 {0,1}: per-tap 'same'-padding validity (rows 0..8).

    Also zeroes the lane-rotate wraparound across the folded image boundary.
    Rows 9..15 are zero padding to keep the bf16 operand tile-aligned.
    """
    P = H * W
    p = np.arange(n_blk * P)
    h = (p % P) // W
    w = p % W
    rows = [((h + dy >= 0) & (h + dy < H) & (w + dx >= 0) & (w + dx < W))
            for dy, dx in _TAPS]
    m = np.stack(rows, 0).astype(np.float32)
    m = np.concatenate([m, np.zeros((16 - len(_TAPS), m.shape[1]), np.float32)], 0)
    return jnp.asarray(m, jnp.bfloat16)


def _pool_select(H, W, n_blk):
    """(n_blk*H*W, n_blk*(H//2)*(W//2)) bf16 0/1 compaction matrix, 2x2/2 pool."""
    P, Ho, Wo = H * W, H // 2, W // 2
    Po = Ho * Wo
    sel = np.zeros((n_blk * P, n_blk * Po), np.float32)
    q = np.arange(n_blk * Po)
    n = q // Po
    oh = (q % Po) // Wo
    ow = q % Wo
    sel[n * P + (2 * oh) * W + (2 * ow), q] = 1.0
    return jnp.asarray(sel, jnp.bfloat16)


# ----------------------------------------------------------------------------
# Fused kernel: 4 x (3x3 "same" conv) + ReLUs + 2x2 max pool, all in VMEM.
# Activations live as (C, n_blk * H*W): batch + spatial folded on the lane axis.
# ----------------------------------------------------------------------------
def _make_fused_kernel(H, W, n_blk):
    P, Ho, Wo = H * W, H // 2, W // 2
    Po = Ho * Wo
    L, Lo = n_blk * P, n_blk * Po

    def conv(x, w_ref, mask_ref, Wl, Ll):
        # x: (Cin_pad, Ll) bf16. im2col = 9 lane-rotated, boundary-masked copies
        # (masks also zero cross-image wraparound) + an all-ones bias block.
        # One MXU matmul per layer: (Cout, K) @ (K, Ll), f32 accumulation.
        taps = []
        for t, (dy, dx) in enumerate(_TAPS):
            off = dy * Wl + dx
            if off == 0:
                taps.append(x)                               # center tap, all valid
            else:
                taps.append(jnp.roll(x, -off, axis=1) * mask_ref[t:t + 1, :])
        taps.append(jnp.ones((_BIAS_ROWS, Ll), jnp.bfloat16))  # folded bias row
        cols = jnp.concatenate(taps, axis=0)
        return jnp.dot(w_ref[...], cols, preferred_element_type=jnp.float32)

    def kernel(x_ref, w1_ref, w2_ref, w3_ref, w4_ref,
               ma_ref, mb_ref, sel_ref, o_ref):
        # layers 0-1: conv 3->64 + ReLU
        a = conv(x_ref[...], w1_ref, ma_ref, W, L)
        a = jnp.maximum(a, 0.0).astype(jnp.bfloat16)
        # layers 2-3: conv 64->64 + ReLU (keep f32 through the pool max)
        a = conv(a, w2_ref, ma_ref, W, L)
        a = jnp.maximum(a, 0.0)
        # layer 4: fused 2x2/stride-2 max pool. Window max lands on each
        # window's top-left lane (H, W even => neighbors never leave the
        # image); a precomputed 0/1 selection matmul compacts those lanes
        # (fine at these tiny P; see TODO for real resolutions).
        m = jnp.maximum(a, jnp.roll(a, -1, axis=1))
        m = jnp.maximum(m, jnp.roll(m, -W, axis=1))
        a = jnp.dot(m.astype(jnp.bfloat16), sel_ref[...],
                    preferred_element_type=jnp.float32).astype(jnp.bfloat16)
        # layers 5-6: conv 64->128 + ReLU
        a = conv(a, w3_ref, mb_ref, Wo, Lo)
        a = jnp.maximum(a, 0.0).astype(jnp.bfloat16)
        # layer 7: conv 128->128 (features[:8] ends on the Conv2d, no ReLU)
        a = conv(a, w4_ref, mb_ref, Wo, Lo)
        o_ref[...] = a.astype(o_ref.dtype)

    return kernel


# ----------------------------------------------------------------------------
# FeatureExtractor.forward
# ----------------------------------------------------------------------------
@jax.jit
def feature_extractor(x_nchw, packed_params):
    """Equivalent of FeatureExtractor.forward. x_nchw: (N, C, H, W) f32.

    Returns (N, 128, H//2, W//2) f32.
    """
    N, C, H, W = x_nchw.shape
    assert H % 2 == 0 and W % 2 == 0, "2x2/stride-2 maxpool needs even H, W"
    assert C in (1, 3)
    if C == 1:
        x_nchw = jnp.repeat(x_nchw, 3, axis=1)               # x.repeat(1, 3, 1, 1)

    P, Ho, Wo = H * W, H // 2, W // 2
    Po = Ho * Wo
    Cout = 128

    # Batch block: fold enough images per grid step that the post-pool lane
    # width n_blk*Po is >= 128 (lane-dense stores, better MXU fill), while the
    # batch grid stays "parallel" for v7x (demo: N=4 -> 2 grid points of 2).
    n_blk = math.gcd(N, max(1, -(-128 // Po)))
    if (n_blk * Po) % 128 or (n_blk * P) % 128:
        n_blk = N                        # fall back to one full-array grid step
    L, Lo = n_blk * P, n_blk * Po
    n_steps = N // n_blk

    # Activations laid out (C, N*P): batch + spatial on the lane axis; channels
    # padded to the bf16 sublane tile so every im2col tap is tile-aligned.
    cin0_pad = _round_up(3, 16)
    x = jnp.transpose(x_nchw.reshape(N, 3, P), (1, 0, 2)).reshape(3, N * P)
    x = jnp.pad(x, ((0, cin0_pad - 3), (0, 0))).astype(jnp.bfloat16)

    # Trace-time constants, VMEM-resident across the grid (index_map -> (0,0)).
    mask_a = _boundary_masks(H, W, n_blk)
    mask_b = _boundary_masks(Ho, Wo, n_blk)
    sel = _pool_select(H, W, n_blk)

    w1p, w2p, w3p, w4p = packed_params
    const_spec = lambda arr: pl.BlockSpec(arr.shape, lambda i: (0, 0))

    out = pl.pallas_call(
        _make_fused_kernel(H, W, n_blk),
        out_shape=jax.ShapeDtypeStruct((Cout, N * Po), jnp.float32),
        grid=(n_steps,),
        in_specs=[
            pl.BlockSpec((cin0_pad, L), lambda i: (0, i)),
            const_spec(w1p), const_spec(w2p), const_spec(w3p), const_spec(w4p),
            const_spec(mask_a), const_spec(mask_b), const_spec(sel),
        ],
        out_specs=pl.BlockSpec((Cout, Lo), lambda i: (0, i)),
        compiler_params=pltpu.CompilerParams(
            dimension_semantics=("parallel",)),
    )(x, w1p, w2p, w3p, w4p, mask_a, mask_b, sel)

    # (128, N*Po) -> (N, 128, Ho, Wo)  (small wrapper-side relayout)
    return jnp.transpose(out.reshape(Cout, N, Po), (1, 0, 2)).reshape(N, Cout, Ho, Wo)


# ----------------------------------------------------------------------------
# Demo / self-check
# ----------------------------------------------------------------------------
def init_params(key):
    """Deterministic synthetic weights with VGG19.features[:8] shapes (HWIO)."""
    shapes = [(3, 64), (64, 64), (64, 128), (128, 128)]
    params = []
    for k, (cin, cout) in zip(jax.random.split(key, len(shapes)), shapes):
        kw, kb = jax.random.split(k)
        w = jax.random.normal(kw, (3, 3, cin, cout), jnp.float32) / math.sqrt(9 * cin)
        b = jax.random.normal(kb, (cout,), jnp.float32) * 0.01
        params.append((w, b))
    return params


def _reference_forward(x_nchw, params):
    """Pure-JAX f32 reference for the numerical sanity check."""
    if x_nchw.shape[1] == 1:
        x_nchw = jnp.repeat(x_nchw, 3, axis=1)

    def conv(x, w, b):
        y = jax.lax.conv_general_dilated(
            x, w, (1, 1), "SAME", dimension_numbers=("NCHW", "HWIO", "NCHW"))
        return y + b.reshape(1, -1, 1, 1)

    (w1, b1), (w2, b2), (w3, b3), (w4, b4) = params
    x = jax.nn.relu(conv(x_nchw, w1, b1))
    x = jax.nn.relu(conv(x, w2, b2))
    x = jax.lax.reduce_window(x, -jnp.inf, jax.lax.max,
                              (1, 1, 2, 2), (1, 1, 2, 2), "VALID")
    x = jax.nn.relu(conv(x, w3, b3))
    return conv(x, w4, b4)


if __name__ == "__main__":
    key = jax.random.PRNGKey(0)
    k_params, k_x = jax.random.split(key)

    params = init_params(k_params)
    packed = prepare_params(params)          # one-time repack, outside the jit

    # N=4 single-channel images: exercises the repeat(1,3,1,1) branch and gives
    # two "parallel" grid points (2 images per step) so v7x's 2 TCs both work.
    x = jax.random.normal(k_x, (4, 1, 16, 16), jnp.float32)

    out = feature_extractor(x, packed)
    jax.block_until_ready(out)

    assert out.shape == (4, 128, 8, 8), out.shape
    assert out.dtype == jnp.float32

    # Relative-error check vs. a pure-JAX f32 reference (kernel uses bf16 MXU
    # operands + bf16 intermediates with f32 accumulation).
    ref = _reference_forward(x, params)
    err = float(jnp.max(jnp.abs(out - ref)))
    scale = float(jnp.max(jnp.abs(ref)))
    assert err <= 0.08 * scale + 1e-3, f"err={err} scale={scale}"

    print("KERNEL_OK")
</pallas_src>

<mosaic_0001>
module attributes {stable_mosaic.version = 11 : i64} {
  func.func @kernel(%arg0: i32, %arg1: memref<16x512xbf16, #tpu.memory_space<vmem>>, %arg2: memref<64x160xbf16, #tpu.memory_space<vmem>>, %arg3: memref<64x592xbf16, #tpu.memory_space<vmem>>, %arg4: memref<128x592xbf16, #tpu.memory_space<vmem>>, %arg5: memref<128x1168xbf16, #tpu.memory_space<vmem>>, %arg6: memref<16x512xbf16, #tpu.memory_space<vmem>>, %arg7: memref<16x128xbf16, #tpu.memory_space<vmem>>, %arg8: memref<512x128xbf16, #tpu.memory_space<vmem>>, %arg9: memref<128x128xf32, #tpu.memory_space<vmem>>) attributes {dimension_semantics = [#tpu.dimension_semantics<parallel>], iteration_bounds = array<i64: 2>, scalar_prefetch = 0 : i64, scratch_operands = 0 : i64, tpu.core_type = #tpu.core_type<tc>, window_params = [{transform_indices = @transform_0, window_bounds = array<i64: 16, 512>}, {pipeline_mode = #tpu.pipeline_mode<synchronous>, transform_indices = @transform_1, window_bounds = array<i64: 64, 160>}, {pipeline_mode = #tpu.pipeline_mode<synchronous>, transform_indices = @transform_2, window_bounds = array<i64: 64, 592>}, {pipeline_mode = #tpu.pipeline_mode<synchronous>, transform_indices = @transform_3, window_bounds = array<i64: 128, 592>}, {pipeline_mode = #tpu.pipeline_mode<synchronous>, transform_indices = @transform_4, window_bounds = array<i64: 128, 1168>}, {pipeline_mode = #tpu.pipeline_mode<synchronous>, transform_indices = @transform_5, window_bounds = array<i64: 16, 512>}, {pipeline_mode = #tpu.pipeline_mode<synchronous>, transform_indices = @transform_6, window_bounds = array<i64: 16, 128>}, {pipeline_mode = #tpu.pipeline_mode<synchronous>, transform_indices = @transform_7, window_bounds = array<i64: 512, 128>}, {transform_indices = @transform_8, window_bounds = array<i64: 128, 128>}]} {
    %c0 = arith.constant 0 : index
    %c0_0 = arith.constant 0 : index
    %0 = vector.load %arg1[%c0, %c0_0] : memref<16x512xbf16, #tpu.memory_space<vmem>>, vector<16x512xbf16>
    %1 = vector.extract_strided_slice %0 {offsets = [0, 495], sizes = [16, 17], strides = [1, 1]} : vector<16x512xbf16> to vector<16x17xbf16>
    %2 = vector.extract_strided_slice %0 {offsets = [0, 0], sizes = [16, 495], strides = [1, 1]} : vector<16x512xbf16> to vector<16x495xbf16>
    %3 = tpu.concatenate %1, %2 in 1 : vector<16x17xbf16>, vector<16x495xbf16> -> vector<16x512xbf16>
    %c0_1 = arith.constant 0 : index
    %c0_2 = arith.constant 0 : index
    %4 = vector.load %arg6[%c0_1, %c0_2] : memref<16x512xbf16, #tpu.memory_space<vmem>>, vector<1x512xbf16>
    %5 = vector.broadcast %4 : vector<1x512xbf16> to vector<16x512xbf16>
    %6 = arith.mulf %3, %5 : vector<16x512xbf16>
    %7 = vector.extract_strided_slice %0 {offsets = [0, 496], sizes = [16, 16], strides = [1, 1]} : vector<16x512xbf16> to vector<16x16xbf16>
    %8 = vector.extract_strided_slice %0 {offsets = [0, 0], sizes = [16, 496], strides = [1, 1]} : vector<16x512xbf16> to vector<16x496xbf16>
    %9 = tpu.concatenate %7, %8 in 1 : vector<16x16xbf16>, vector<16x496xbf16> -> vector<16x512xbf16>
    %c1 = arith.constant 1 : index
    %c0_3 = arith.constant 0 : index
    %10 = vector.load %arg6[%c1, %c0_3] : memref<16x512xbf16, #tpu.memory_space<vmem>>, vector<1x512xbf16>
    %11 = vector.broadcast %10 : vector<1x512xbf16> to vector<16x512xbf16>
    %12 = arith.mulf %9, %11 : vector<16x512xbf16>
    %13 = vector.extract_strided_slice %0 {offsets = [0, 497], sizes = [16, 15], strides = [1, 1]} : vector<16x512xbf16> to vector<16x15xbf16>
    %14 = vector.extract_strided_slice %0 {offsets = [0, 0], sizes = [16, 497], strides = [1, 1]} : vector<16x512xbf16> to vector<16x497xbf16>
    %15 = tpu.concatenate %13, %14 in 1 : vector<16x15xbf16>, vector<16x497xbf16> -> vector<16x512xbf16>
    %c2 = arith.constant 2 : index
    %c0_4 = arith.constant 0 : index
    %16 = vector.load %arg6[%c2, %c0_4] : memref<16x512xbf16, #tpu.memory_space<vmem>>, vector<1x512xbf16>
    %17 = vector.broadcast %16 : vector<1x512xbf16> to vector<16x512xbf16>
    %18 = arith.mulf %15, %17 : vector<16x512xbf16>
    %19 = vector.extract_strided_slice %0 {offsets = [0, 511], sizes = [16, 1], strides = [1, 1]} : vector<16x512xbf16> to vector<16x1xbf16>
    %20 = vector.extract_strided_slice %0 {offsets = [0, 0], sizes = [16, 511], strides = [1, 1]} : vector<16x512xbf16> to vector<16x511xbf16>
    %21 = tpu.concatenate %19, %20 in 1 : vector<16x1xbf16>, vector<16x511xbf16> -> vector<16x512xbf16>
    %c3 = arith.constant 3 : index
    %c0_5 = arith.constant 0 : index
    %22 = vector.load %arg6[%c3, %c0_5] : memref<16x512xbf16, #tpu.memory_space<vmem>>, vector<1x512xbf16>
    %23 = vector.broadcast %22 : vector<1x512xbf16> to vector<16x512xbf16>
    %24 = arith.mulf %21, %23 : vector<16x512xbf16>
    %25 = vector.extract_strided_slice %0 {offsets = [0, 1], sizes = [16, 511], strides = [1, 1]} : vector<16x512xbf16> to vector<16x511xbf16>
    %26 = vector.extract_strided_slice %0 {offsets = [0, 0], sizes = [16, 1], strides = [1, 1]} : vector<16x512xbf16> to vector<16x1xbf16>
    %27 = tpu.concatenate %25, %26 in 1 : vector<16x511xbf16>, vector<16x1xbf16> -> vector<16x512xbf16>
    %c5 = arith.constant 5 : index
    %c0_6 = arith.constant 0 : index
    %28 = vector.load %arg6[%c5, %c0_6] : memref<16x512xbf16, #tpu.memory_space<vmem>>, vector<1x512xbf16>
    %29 = vector.broadcast %28 : vector<1x512xbf16> to vector<16x512xbf16>
    %30 = arith.mulf %27, %29 : vector<16x512xbf16>
    %31 = vector.extract_strided_slice %0 {offsets = [0, 15], sizes = [16, 497], strides = [1, 1]} : vector<16x512xbf16> to vector<16x497xbf16>
    %32 = vector.extract_strided_slice %0 {offsets = [0, 0], sizes = [16, 15], strides = [1, 1]} : vector<16x512xbf16> to vector<16x15xbf16>
    %33 = tpu.concatenate %31, %32 in 1 : vector<16x497xbf16>, vector<16x15xbf16> -> vector<16x512xbf16>
    %c6 = arith.constant 6 : index
    %c0_7 = arith.constant 0 : index
    %34 = vector.load %arg6[%c6, %c0_7] : memref<16x512xbf16, #tpu.memory_space<vmem>>, vector<1x512xbf16>
    %35 = vector.broadcast %34 : vector<1x512xbf16> to vector<16x512xbf16>
    %36 = arith.mulf %33, %35 : vector<16x512xbf16>
    %37 = vector.extract_strided_slice %0 {offsets = [0, 16], sizes = [16, 496], strides = [1, 1]} : vector<16x512xbf16> to vector<16x496xbf16>
    %38 = vector.extract_strided_slice %0 {offsets = [0, 0], sizes = [16, 16], strides = [1, 1]} : vector<16x512xbf16> to vector<16x16xbf16>
    %39 = tpu.concatenate %37, %38 in 1 : vector<16x496xbf16>, vector<16x16xbf16> -> vector<16x512xbf16>
    %c7 = arith.constant 7 : index
    %c0_8 = arith.constant 0 : index
    %40 = vector.load %arg6[%c7, %c0_8] : memref<16x512xbf16, #tpu.memory_space<vmem>>, vector<1x512xbf16>
    %41 = vector.broadcast %40 : vector<1x512xbf16> to vector<16x512xbf16>
    %42 = arith.mulf %39, %41 : vector<16x512xbf16>
    %43 = vector.extract_strided_slice %0 {offsets = [0, 17], sizes = [16, 495], strides = [1, 1]} : vector<16x512xbf16> to vector<16x495xbf16>
    %44 = vector.extract_strided_slice %0 {offsets = [0, 0], sizes = [16, 17], strides = [1, 1]} : vector<16x512xbf16> to vector<16x17xbf16>
    %45 = tpu.concatenate %43, %44 in 1 : vector<16x495xbf16>, vector<16x17xbf16> -> vector<16x512xbf16>
    %c8 = arith.constant 8 : index
    %c0_9 = arith.constant 0 : index
    %46 = vector.load %arg6[%c8, %c0_9] : memref<16x512xbf16, #tpu.memory_space<vmem>>, vector<1x512xbf16>
    %47 = vector.broadcast %46 : vector<1x512xbf16> to vector<16x512xbf16>
    %48 = arith.mulf %45, %47 : vector<16x512xbf16>
    %cst = arith.constant 1.000000e+00 : bf16
    %49 = vector.broadcast %cst : bf16 to vector<16x512xbf16>
    %50 = tpu.concatenate %6, %12, %18, %24, %0, %30, %36, %42, %48, %49 in 0 : vector<16x512xbf16>, vector<16x512xbf16>, vector<16x512xbf16>, vector<16x512xbf16>, vector<16x512xbf16>, vector<16x512xbf16>, vector<16x512xbf16>, vector<16x512xbf16>, vector<16x512xbf16>, vector<16x512xbf16> -> vector<160x512xbf16>
    %c0_10 = arith.constant 0 : index
    %c0_11 = arith.constant 0 : index
    %51 = vector.load %arg2[%c0_10, %c0_11] : memref<64x160xbf16, #tpu.memory_space<vmem>>, vector<64x160xbf16>
    %cst_12 = arith.constant dense<0.000000e+00> : vector<64x512xf32>
    %52 = tpu.matmul %51, %50, %cst_12 {dimension_numbers = #tpu.dot_dimension_numbers<[1], [0], [0], [1], [0, 0, 1, 1], [], []>} : vector<64x160xbf16>, vector<160x512xbf16>, vector<64x512xf32> -> vector<64x512xf32>
    %cst_13 = arith.constant 0.000000e+00 : f32
    %53 = vector.broadcast %cst_13 : f32 to vector<64x512xf32>
    %54 = arith.maximumf %52, %53 : vector<64x512xf32>
    %55 = arith.truncf %54 : vector<64x512xf32> to vector<64x512xbf16>
    %56 = vector.extract_strided_slice %55 {offsets = [0, 495], sizes = [64, 17], strides = [1, 1]} : vector<64x512xbf16> to vector<64x17xbf16>
    %57 = vector.extract_strided_slice %55 {offsets = [0, 0], sizes = [64, 495], strides = [1, 1]} : vector<64x512xbf16> to vector<64x495xbf16>
    %58 = tpu.concatenate %56, %57 in 1 : vector<64x17xbf16>, vector<64x495xbf16> -> vector<64x512xbf16>
    %c0_14 = arith.constant 0 : index
    %c0_15 = arith.constant 0 : index
    %59 = vector.load %arg6[%c0_14, %c0_15] : memref<16x512xbf16, #tpu.memory_space<vmem>>, vector<1x512xbf16>
    %60 = vector.broadcast %59 : vector<1x512xbf16> to vector<64x512xbf16>
    %61 = arith.mulf %58, %60 : vector<64x512xbf16>
    %62 = vector.extract_strided_slice %55 {offsets = [0, 496], sizes = [64, 16], strides = [1, 1]} : vector<64x512xbf16> to vector<64x16xbf16>
    %63 = vector.extract_strided_slice %55 {offsets = [0, 0], sizes = [64, 496], strides = [1, 1]} : vector<64x512xbf16> to vector<64x496xbf16>
    %64 = tpu.concatenate %62, %63 in 1 : vector<64x16xbf16>, vector<64x496xbf16> -> vector<64x512xbf16>
    %c1_16 = arith.constant 1 : index
    %c0_17 = arith.constant 0 : index
    %65 = vector.load %arg6[%c1_16, %c0_17] : memref<16x512xbf16, #tpu.memory_space<vmem>>, vector<1x512xbf16>
    %66 = vector.broadcast %65 : vector<1x512xbf16> to vector<64x512xbf16>
    %67 = arith.mulf %64, %66 : vector<64x512xbf16>
    %68 = vector.extract_strided_slice %55 {offsets = [0, 497], sizes = [64, 15], strides = [1, 1]} : vector<64x512xbf16> to vector<64x15xbf16>
    %69 = vector.extract_strided_slice %55 {offsets = [0, 0], sizes = [64, 497], strides = [1, 1]} : vector<64x512xbf16> to vector<64x497xbf16>
    %70 = tpu.concatenate %68, %69 in 1 : vector<64x15xbf16>, vector<64x497xbf16> -> vector<64x512xbf16>
    %c2_18 = arith.constant 2 : index
    %c0_19 = arith.constant 0 : index
    %71 = vector.load %arg6[%c2_18, %c0_19] : memref<16x512xbf16, #tpu.memory_space<vmem>>, vector<1x512xbf16>
    %72 = vector.broadcast %71 : vector<1x512xbf16> to vector<64x512xbf16>
    %73 = arith.mulf %70, %72 : vector<64x512xbf16>
    %74 = vector.extract_strided_slice %55 {offsets = [0, 511], sizes = [64, 1], strides = [1, 1]} : vector<64x512xbf16> to vector<64x1xbf16>
    %75 = vector.extract_strided_slice %55 {offsets = [0, 0], sizes = [64, 511], strides = [1, 1]} : vector<64x512xbf16> to vector<64x511xbf16>
    %76 = tpu.concatenate %74, %75 in 1 : vector<64x1xbf16>, vector<64x511xbf16> -> vector<64x512xbf16>
    %c3_20 = arith.constant 3 : index
    %c0_21 = arith.constant 0 : index
    %77 = vector.load %arg6[%c3_20, %c0_21] : memref<16x512xbf16, #tpu.memory_space<vmem>>, vector<1x512xbf16>
    %78 = vector.broadcast %77 : vector<1x512xbf16> to vector<64x512xbf16>
    %79 = arith.mulf %76, %78 : vector<64x512xbf16>
    %80 = vector.extract_strided_slice %55 {offsets = [0, 1], sizes = [64, 511], strides = [1, 1]} : vector<64x512xbf16> to vector<64x511xbf16>
    %81 = vector.extract_strided_slice %55 {offsets = [0, 0], sizes = [64, 1], strides = [1, 1]} : vector<64x512xbf16> to vector<64x1xbf16>
    %82 = tpu.concatenate %80, %81 in 1 : vector<64x511xbf16>, vector<64x1xbf16> -> vector<64x512xbf16>
    %c5_22 = arith.constant 5 : index
    %c0_23 = arith.constant 0 : index
    %83 = vector.load %arg6[%c5_22, %c0_23] : memref<16x512xbf16, #tpu.memory_space<vmem>>, vector<1x512xbf16>
    %84 = vector.broadcast %83 : vector<1x512xbf16> to vector<64x512xbf16>
    %85 = arith.mulf %82, %84 : vector<64x512xbf16>
    %86 = vector.extract_strided_slice %55 {offsets = [0, 15], sizes = [64, 497], strides = [1, 1]} : vector<64x512xbf16> to vector<64x497xbf16>
    %87 = vector.extract_strided_slice %55 {offsets = [0, 0], sizes = [64, 15], strides = [1, 1]} : vector<64x512xbf16> to vector<64x15xbf16>
    %88 = tpu.concatenate %86, %87 in 1 : vector<64x497xbf16>, vector<64x15xbf16> -> vector<64x512xbf16>
    %c6_24 = arith.constant 6 : index
    %c0_25 = arith.constant 0 : index
    %89 = vector.load %arg6[%c6_24, %c0_25] : memref<16x512xbf16, #tpu.memory_space<vmem>>, vector<1x512xbf16>
    %90 = vector.broadcast %89 : vector<1x512xbf16> to vector<64x512xbf16>
    %91 = arith.mulf %88, %90 : vector<64x512xbf16>
    %92 = vector.extract_strided_slice %55 {offsets = [0, 16], sizes = [64, 496], strides = [1, 1]} : vector<64x512xbf16> to vector<64x496xbf16>
    %93 = vector.extract_strided_slice %55 {offsets = [0, 0], sizes = [64, 16], strides = [1, 1]} : vector<64x512xbf16> to vector<64x16xbf16>
    %94 = tpu.concatenate %92, %93 in 1 : vector<64x496xbf16>, vector<64x16xbf16> -> vector<64x512xbf16>
    %c7_26 = arith.constant 7 : index
    %c0_27 = arith.constant 0 : index
    %95 = vector.load %arg6[%c7_26, %c0_27] : memref<16x512xbf16, #tpu.memory_space<vmem>>, vector<1x512xbf16>
    %96 = vector.broadcast %95 : vector<1x512xbf16> to vector<64x512xbf16>
    %97 = arith.mulf %94, %96 : vector<64x512xbf16>
    %98 = vector.extract_strided_slice %55 {offsets = [0, 17], sizes = [64, 495], strides = [1, 1]} : vector<64x512xbf16> to vector<64x495xbf16>
    %99 = vector.extract_strided_slice %55 {offsets = [0, 0], sizes = [64, 17], strides = [1, 1]} : vector<64x512xbf16> to vector<64x17xbf16>
    %100 = tpu.concatenate %98, %99 in 1 : vector<64x495xbf16>, vector<64x17xbf16> -> vector<64x512xbf16>
    %c8_28 = arith.constant 8 : index
    %c0_29 = arith.constant 0 : index
    %101 = vector.load %arg6[%c8_28, %c0_29] : memref<16x512xbf16, #tpu.memory_space<vmem>>, vector<1x512xbf16>
    %102 = vector.broadcast %101 : vector<1x512xbf16> to vector<64x512xbf16>
    %103 = arith.mulf %100, %102 : vector<64x512xbf16>
    %cst_30 = arith.constant 1.000000e+00 : bf16
    %104 = vector.broadcast %cst_30 : bf16 to vector<16x512xbf16>
    %105 = tpu.concatenate %61, %67, %73, %79, %55, %85, %91, %97, %103, %104 in 0 : vector<64x512xbf16>, vector<64x512xbf16>, vector<64x512xbf16>, vector<64x512xbf16>, vector<64x512xbf16>, vector<64x512xbf16>, vector<64x512xbf16>, vector<64x512xbf16>, vector<64x512xbf16>, vector<16x512xbf16> -> vector<592x512xbf16>
    %c0_31 = arith.constant 0 : index
    %c0_32 = arith.constant 0 : index
    %106 = vector.load %arg3[%c0_31, %c0_32] : memref<64x592xbf16, #tpu.memory_space<vmem>>, vector<64x592xbf16>
    %cst_33 = arith.constant dense<0.000000e+00> : vector<64x512xf32>
    %107 = tpu.matmul %106, %105, %cst_33 {dimension_numbers = #tpu.dot_dimension_numbers<[1], [0], [0], [1], [0, 0, 1, 1], [], []>} : vector<64x592xbf16>, vector<592x512xbf16>, vector<64x512xf32> -> vector<64x512xf32>
    %cst_34 = arith.constant 0.000000e+00 : f32
    %108 = vector.broadcast %cst_34 : f32 to vector<64x512xf32>
    %109 = arith.maximumf %107, %108 : vector<64x512xf32>
    %110 = vector.extract_strided_slice %109 {offsets = [0, 1], sizes = [64, 511], strides = [1, 1]} : vector<64x512xf32> to vector<64x511xf32>
    %111 = vector.extract_strided_slice %109 {offsets = [0, 0], sizes = [64, 1], strides = [1, 1]} : vector<64x512xf32> to vector<64x1xf32>
    %112 = tpu.concatenate %110, %111 in 1 : vector<64x511xf32>, vector<64x1xf32> -> vector<64x512xf32>
    %113 = arith.maximumf %109, %112 : vector<64x512xf32>
    %114 = vector.extract_strided_slice %113 {offsets = [0, 16], sizes = [64, 496], strides = [1, 1]} : vector<64x512xf32> to vector<64x496xf32>
    %115 = vector.extract_strided_slice %113 {offsets = [0, 0], sizes = [64, 16], strides = [1, 1]} : vector<64x512xf32> to vector<64x16xf32>
    %116 = tpu.concatenate %114, %115 in 1 : vector<64x496xf32>, vector<64x16xf32> -> vector<64x512xf32>
    %117 = arith.maximumf %113, %116 : vector<64x512xf32>
    %118 = arith.truncf %117 : vector<64x512xf32> to vector<64x512xbf16>
    %c0_35 = arith.constant 0 : index
    %c0_36 = arith.constant 0 : index
    %119 = vector.load %arg8[%c0_35, %c0_36] : memref<512x128xbf16, #tpu.memory_space<vmem>>, vector<512x128xbf16>
    %cst_37 = arith.constant dense<0.000000e+00> : vector<64x128xf32>
    %120 = tpu.matmul %118, %119, %cst_37 {dimension_numbers = #tpu.dot_dimension_numbers<[1], [0], [0], [1], [0, 0, 1, 1], [], []>} : vector<64x512xbf16>, vector<512x128xbf16>, vector<64x128xf32> -> vector<64x128xf32>
    %121 = arith.truncf %120 : vector<64x128xf32> to vector<64x128xbf16>
    %122 = vector.extract_strided_slice %121 {offsets = [0, 119], sizes = [64, 9], strides = [1, 1]} : vector<64x128xbf16> to vector<64x9xbf16>
    %123 = vector.extract_strided_slice %121 {offsets = [0, 0], sizes = [64, 119], strides = [1, 1]} : vector<64x128xbf16> to vector<64x119xbf16>
    %124 = tpu.concatenate %122, %123 in 1 : vector<64x9xbf16>, vector<64x119xbf16> -> vector<64x128xbf16>
    %c0_38 = arith.constant 0 : index
    %c0_39 = arith.constant 0 : index
    %125 = vector.load %arg7[%c0_38, %c0_39] : memref<16x128xbf16, #tpu.memory_space<vmem>>, vector<1x128xbf16>
    %126 = vector.broadcast %125 : vector<1x128xbf16> to vector<64x128xbf16>
    %127 = arith.mulf %124, %126 : vector<64x128xbf16>
    %128 = vector.extract_strided_slice %121 {offsets = [0, 120], sizes = [64, 8], strides = [1, 1]} : vector<64x128xbf16> to vector<64x8xbf16>
    %129 = vector.extract_strided_slice %121 {offsets = [0, 0], sizes = [64, 120], strides = [1, 1]} : vector<64x128xbf16> to vector<64x120xbf16>
    %130 = tpu.concatenate %128, %129 in 1 : vector<64x8xbf16>, vector<64x120xbf16> -> vector<64x128xbf16>
    %c1_40 = arith.constant 1 : index
    %c0_41 = arith.constant 0 : index
    %131 = vector.load %arg7[%c1_40, %c0_41] : memref<16x128xbf16, #tpu.memory_space<vmem>>, vector<1x128xbf16>
    %132 = vector.broadcast %131 : vector<1x128xbf16> to vector<64x128xbf16>
    %133 = arith.mulf %130, %132 : vector<64x128xbf16>
    %134 = vector.extract_strided_slice %121 {offsets = [0, 121], sizes = [64, 7], strides = [1, 1]} : vector<64x128xbf16> to vector<64x7xbf16>
    %135 = vector.extract_strided_slice %121 {offsets = [0, 0], sizes = [64, 121], strides = [1, 1]} : vector<64x128xbf16> to vector<64x121xbf16>
    %136 = tpu.concatenate %134, %135 in 1 : vector<64x7xbf16>, vector<64x121xbf16> -> vector<64x128xbf16>
    %c2_42 = arith.constant 2 : index
    %c0_43 = arith.constant 0 : index
    %137 = vector.load %arg7[%c2_42, %c0_43] : memref<16x128xbf16, #tpu.memory_space<vmem>>, vector<1x128xbf16>
    %138 = vector.broadcast %137 : vector<1x128xbf16> to vector<64x128xbf16>
    %139 = arith.mulf %136, %138 : vector<64x128xbf16>
    %140 = vector.extract_strided_slice %121 {offsets = [0, 127], sizes = [64, 1], strides = [1, 1]} : vector<64x128xbf16> to vector<64x1xbf16>
    %141 = vector.extract_strided_slice %121 {offsets = [0, 0], sizes = [64, 127], strides = [1, 1]} : vector<64x128xbf16> to vector<64x127xbf16>
    %142 = tpu.concatenate %140, %141 in 1 : vector<64x1xbf16>, vector<64x127xbf16> -> vector<64x128xbf16>
    %c3_44 = arith.constant 3 : index
    %c0_45 = arith.constant 0 : index
    %143 = vector.load %arg7[%c3_44, %c0_45] : memref<16x128xbf16, #tpu.memory_space<vmem>>, vector<1x128xbf16>
    %144 = vector.broadcast %143 : vector<1x128xbf16> to vector<64x128xbf16>
    %145 = arith.mulf %142, %144 : vector<64x128xbf16>
    %146 = vector.extract_strided_slice %121 {offsets = [0, 1], sizes = [64, 127], strides = [1, 1]} : vector<64x128xbf16> to vector<64x127xbf16>
    %147 = vector.extract_strided_slice %121 {offsets = [0, 0], sizes = [64, 1], strides = [1, 1]} : vector<64x128xbf16> to vector<64x1xbf16>
    %148 = tpu.concatenate %146, %147 in 1 : vector<64x127xbf16>, vector<64x1xbf16> -> vector<64x128xbf16>
    %c5_46 = arith.constant 5 : index
    %c0_47 = arith.constant 0 : index
    %149 = vector.load %arg7[%c5_46, %c0_47] : memref<16x128xbf16, #tpu.memory_space<vmem>>, vector<1x128xbf16>
    %150 = vector.broadcast %149 : vector<1x128xbf16> to vector<64x128xbf16>
    %151 = arith.mulf %148, %150 : vector<64x128xbf16>
    %152 = vector.extract_strided_slice %121 {offsets = [0, 7], sizes = [64, 121], strides = [1, 1]} : vector<64x128xbf16> to vector<64x121xbf16>
    %153 = vector.extract_strided_slice %121 {offsets = [0, 0], sizes = [64, 7], strides = [1, 1]} : vector<64x128xbf16> to vector<64x7xbf16>
    %154 = tpu.concatenate %152, %153 in 1 : vector<64x121xbf16>, vector<64x7xbf16> -> vector<64x128xbf16>
    %c6_48 = arith.constant 6 : index
    %c0_49 = arith.constant 0 : index
    %155 = vector.load %arg7[%c6_48, %c0_49] : memref<16x128xbf16, #tpu.memory_space<vmem>>, vector<1x128xbf16>
    %156 = vector.broadcast %155 : vector<1x128xbf16> to vector<64x128xbf16>
    %157 = arith.mulf %154, %156 : vector<64x128xbf16>
    %158 = vector.extract_strided_slice %121 {offsets = [0, 8], sizes = [64, 120], strides = [1, 1]} : vector<64x128xbf16> to vector<64x120xbf16>
    %159 = vector.extract_strided_slice %121 {offsets = [0, 0], sizes = [64, 8], strides = [1, 1]} : vector<64x128xbf16> to vector<64x8xbf16>
    %160 = tpu.concatenate %158, %159 in 1 : vector<64x120xbf16>, vector<64x8xbf16> -> vector<64x128xbf16>
    %c7_50 = arith.constant 7 : index
    %c0_51 = arith.constant 0 : index
    %161 = vector.load %arg7[%c7_50, %c0_51] : memref<16x128xbf16, #tpu.memory_space<vmem>>, vector<1x128xbf16>
    %162 = vector.broadcast %161 : vector<1x128xbf16> to vector<64x128xbf16>
    %163 = arith.mulf %160, %162 : vector<64x128xbf16>
    %164 = vector.extract_strided_slice %121 {offsets = [0, 9], sizes = [64, 119], strides = [1, 1]} : vector<64x128xbf16> to vector<64x119xbf16>
    %165 = vector.extract_strided_slice %121 {offsets = [0, 0], sizes = [64, 9], strides = [1, 1]} : vector<64x128xbf16> to vector<64x9xbf16>
    %166 = tpu.concatenate %164, %165 in 1 : vector<64x119xbf16>, vector<64x9xbf16> -> vector<64x128xbf16>
    %c8_52 = arith.constant 8 : index
    %c0_53 = arith.constant 0 : index
    %167 = vector.load %arg7[%c8_52, %c0_53] : memref<16x128xbf16, #tpu.memory_space<vmem>>, vector<1x128xbf16>
    %168 = vector.broadcast %167 : vector<1x128xbf16> to vector<64x128xbf16>
    %169 = arith.mulf %166, %168 : vector<64x128xbf16>
    %cst_54 = arith.constant 1.000000e+00 : bf16
    %170 = vector.broadcast %cst_54 : bf16 to vector<16x128xbf16>
    %171 = tpu.concatenate %127, %133, %139, %145, %121, %151, %157, %163, %169, %170 in 0 : vector<64x128xbf16>, vector<64x128xbf16>, vector<64x128xbf16>, vector<64x128xbf16>, vector<64x128xbf16>, vector<64x128xbf16>, vector<64x128xbf16>, vector<64x128xbf16>, vector<64x128xbf16>, vector<16x128xbf16> -> vector<592x128xbf16>
    %c0_55 = arith.constant 0 : index
    %c0_56 = arith.constant 0 : index
    %172 = vector.load %arg4[%c0_55, %c0_56] : memref<128x592xbf16, #tpu.memory_space<vmem>>, vector<128x592xbf16>
    %cst_57 = arith.constant dense<0.000000e+00> : vector<128x128xf32>
    %173 = tpu.matmul %172, %171, %cst_57 {dimension_numbers = #tpu.dot_dimension_numbers<[1], [0], [0], [1], [0, 0, 1, 1], [], []>} : vector<128x592xbf16>, vector<592x128xbf16>, vector<128x128xf32> -> vector<128x128xf32>
    %cst_58 = arith.constant 0.000000e+00 : f32
    %174 = vector.broadcast %cst_58 : f32 to vector<128x128xf32>
    %175 = arith.maximumf %173, %174 : vector<128x128xf32>
    %176 = arith.truncf %175 : vector<128x128xf32> to vector<128x128xbf16>
    %177 = vector.extract_strided_slice %176 {offsets = [0, 119], sizes = [128, 9], strides = [1, 1]} : vector<128x128xbf16> to vector<128x9xbf16>
    %178 = vector.extract_strided_slice %176 {offsets = [0, 0], sizes = [128, 119], strides = [1, 1]} : vector<128x128xbf16> to vector<128x119xbf16>
    %179 = tpu.concatenate %177, %178 in 1 : vector<128x9xbf16>, vector<128x119xbf16> -> vector<128x128xbf16>
    %c0_59 = arith.constant 0 : index
    %c0_60 = arith.constant 0 : index
    %180 = vector.load %arg7[%c0_59, %c0_60] : memref<16x128xbf16, #tpu.memory_space<vmem>>, vector<1x128xbf16>
    %181 = vector.broadcast %180 : vector<1x128xbf16> to vector<128x128xbf16>
    %182 = arith.mulf %179, %181 : vector<128x128xbf16>
    %183 = vector.extract_strided_slice %176 {offsets = [0, 120], sizes = [128, 8], strides = [1, 1]} : vector<128x128xbf16> to vector<128x8xbf16>
    %184 = vector.extract_strided_slice %176 {offsets = [0, 0], sizes = [128, 120], strides = [1, 1]} : vector<128x128xbf16> to vector<128x120xbf16>
    %185 = tpu.concatenate %183, %184 in 1 : vector<128x8xbf16>, vector<128x120xbf16> -> vector<128x128xbf16>
    %c1_61 = arith.constant 1 : index
    %c0_62 = arith.constant 0 : index
    %186 = vector.load %arg7[%c1_61, %c0_62] : memref<16x128xbf16, #tpu.memory_space<vmem>>, vector<1x128xbf16>
    %187 = vector.broadcast %186 : vector<1x128xbf16> to vector<128x128xbf16>
    %188 = arith.mulf %185, %187 : vector<128x128xbf16>
    %189 = vector.extract_strided_slice %176 {offsets = [0, 121], sizes = [128, 7], strides = [1, 1]} : vector<128x128xbf16> to vector<128x7xbf16>
    %190 = vector.extract_strided_slice %176 {offsets = [0, 0], sizes = [128, 121], strides = [1, 1]} : vector<128x128xbf16> to vector<128x121xbf16>
    %191 = tpu.concatenate %189, %190 in 1 : vector<128x7xbf16>, vector<128x121xbf16> -> vector<128x128xbf16>
    %c2_63 = arith.constant 2 : index
    %c0_64 = arith.constant 0 : index
    %192 = vector.load %arg7[%c2_63, %c0_64] : memref<16x128xbf16, #tpu.memory_space<vmem>>, vector<1x128xbf16>
    %193 = vector.broadcast %192 : vector<1x128xbf16> to vector<128x128xbf16>
    %194 = arith.mulf %191, %193 : vector<128x128xbf16>
    %195 = vector.extract_strided_slice %176 {offsets = [0, 127], sizes = [128, 1], strides = [1, 1]} : vector<128x128xbf16> to vector<128x1xbf16>
    %196 = vector.extract_strided_slice %176 {offsets = [0, 0], sizes = [128, 127], strides = [1, 1]} : vector<128x128xbf16> to vector<128x127xbf16>
    %197 = tpu.concatenate %195, %196 in 1 : vector<128x1xbf16>, vector<128x127xbf16> -> vector<128x128xbf16>
    %c3_65 = arith.constant 3 : index
    %c0_66 = arith.constant 0 : index
    %198 = vector.load %arg7[%c3_65, %c0_66] : memref<16x128xbf16, #tpu.memory_space<vmem>>, vector<1x128xbf16>
    %199 = vector.broadcast %198 : vector<1x128xbf16> to vector<128x128xbf16>
    %200 = arith.mulf %197, %199 : vector<128x128xbf16>
    %201 = vector.extract_strided_slice %176 {offsets = [0, 1], sizes = [128, 127], strides = [1, 1]} : vector<128x128xbf16> to vector<128x127xbf16>
    %202 = vector.extract_strided_slice %176 {offsets = [0, 0], sizes = [128, 1], strides = [1, 1]} : vector<128x128xbf16> to vector<128x1xbf16>
    %203 = tpu.concatenate %201, %202 in 1 : vector<128x127xbf16>, vector<128x1xbf16> -> vector<128x128xbf16>
    %c5_67 = arith.constant 5 : index
    %c0_68 = arith.constant 0 : index
    %204 = vector.load %arg7[%c5_67, %c0_68] : memref<16x128xbf16, #tpu.memory_space<vmem>>, vector<1x128xbf16>
    %205 = vector.broadcast %204 : vector<1x128xbf16> to vector<128x128xbf16>
    %206 = arith.mulf %203, %205 : vector<128x128xbf16>
    %207 = vector.extract_strided_slice %176 {offsets = [0, 7], sizes = [128, 121], strides = [1, 1]} : vector<128x128xbf16> to vector<128x121xbf16>
    %208 = vector.extract_strided_slice %176 {offsets = [0, 0], sizes = [128, 7], strides = [1, 1]} : vector<128x128xbf16> to vector<128x7xbf16>
    %209 = tpu.concatenate %207, %208 in 1 : vector<128x121xbf16>, vector<128x7xbf16> -> vector<128x128xbf16>
    %c6_69 = arith.constant 6 : index
    %c0_70 = arith.constant 0 : index
    %210 = vector.load %arg7[%c6_69, %c0_70] : memref<16x128xbf16, #tpu.memory_space<vmem>>, vector<1x128xbf16>
    %211 = vector.broadcast %210 : vector<1x128xbf16> to vector<128x128xbf16>
    %212 = arith.mulf %209, %211 : vector<128x128xbf16>
    %213 = vector.extract_strided_slice %176 {offsets = [0, 8], sizes = [128, 120], strides = [1, 1]} : vector<128x128xbf16> to vector<128x120xbf16>
    %214 = vector.extract_strided_slice %176 {offsets = [0, 0], sizes = [128, 8], strides = [1, 1]} : vector<128x128xbf16> to vector<128x8xbf16>
    %215 = tpu.concatenate %213, %214 in 1 : vector<128x120xbf16>, vector<128x8xbf16> -> vector<128x128xbf16>
    %c7_71 = arith.constant 7 : index
    %c0_72 = arith.constant 0 : index
    %216 = vector.load %arg7[%c7_71, %c0_72] : memref<16x128xbf16, #tpu.memory_space<vmem>>, vector<1x128xbf16>
    %217 = vector.broadcast %216 : vector<1x128xbf16> to vector<128x128xbf16>
    %218 = arith.mulf %215, %217 : vector<128x128xbf16>
    %219 = vector.extract_strided_slice %176 {offsets = [0, 9], sizes = [128, 119], strides = [1, 1]} : vector<128x128xbf16> to vector<128x119xbf16>
    %220 = vector.extract_strided_slice %176 {offsets = [0, 0], sizes = [128, 9], strides = [1, 1]} : vector<128x128xbf16> to vector<128x9xbf16>
    %221 = tpu.concatenate %219, %220 in 1 : vector<128x119xbf16>, vector<128x9xbf16> -> vector<128x128xbf16>
    %c8_73 = arith.constant 8 : index
    %c0_74 = arith.constant 0 : index
    %222 = vector.load %arg7[%c8_73, %c0_74] : memref<16x128xbf16, #tpu.memory_space<vmem>>, vector<1x128xbf16>
    %223 = vector.broadcast %222 : vector<1x128xbf16> to vector<128x128xbf16>
    %224 = arith.mulf %221, %223 : vector<128x128xbf16>
    %cst_75 = arith.constant 1.000000e+00 : bf16
    %225 = vector.broadcast %cst_75 : bf16 to vector<16x128xbf16>
    %226 = tpu.concatenate %182, %188, %194, %200, %176, %206, %212, %218, %224, %225 in 0 : vector<128x128xbf16>, vector<128x128xbf16>, vector<128x128xbf16>, vector<128x128xbf16>, vector<128x128xbf16>, vector<128x128xbf16>, vector<128x128xbf16>, vector<128x128xbf16>, vector<128x128xbf16>, vector<16x128xbf16> -> vector<1168x128xbf16>
    %c0_76 = arith.constant 0 : index
    %c0_77 = arith.constant 0 : index
    %227 = vector.load %arg5[%c0_76, %c0_77] : memref<128x1168xbf16, #tpu.memory_space<vmem>>, vector<128x1168xbf16>
    %cst_78 = arith.constant dense<0.000000e+00> : vector<128x128xf32>
    %228 = tpu.matmul %227, %226, %cst_78 {dimension_numbers = #tpu.dot_dimension_numbers<[1], [0], [0], [1], [0, 0, 1, 1], [], []>} : vector<128x1168xbf16>, vector<1168x128xbf16>, vector<128x128xf32> -> vector<128x128xf32>
    %c0_79 = arith.constant 0 : index
    %c0_80 = arith.constant 0 : index
    %229 = vector.load %arg9[%c0_79, %c0_80] : memref<128x128xf32, #tpu.memory_space<vmem>>, vector<128x128xf32>
    tpu.vector_store %arg9[%c0_79, %c0_80], %228 {strides = array<i32>} : memref<128x128xf32, #tpu.memory_space<vmem>>, vector<128x128xf32>,
    return
  }
  func.func @transform_0(%arg0: i32) -> (i32, i32) {
    %c0_i32 = arith.constant 0 : i32
    %c0_i32_0 = arith.constant 0 : i32
    return %c0_i32, %arg0 : i32, i32
  }
  func.func @transform_1(%arg0: i32) -> (i32, i32) {
    %c0_i32 = arith.constant 0 : i32
    %c0_i32_0 = arith.constant 0 : i32
    %c0_i32_1 = arith.constant 0 : i32
    return %c0_i32, %c0_i32_0 : i32, i32
  }
  func.func @transform_2(%arg0: i32) -> (i32, i32) {
    %c0_i32 = arith.constant 0 : i32
    %c0_i32_0 = arith.constant 0 : i32
    %c0_i32_1 = arith.constant 0 : i32
    return %c0_i32, %c0_i32_0 : i32, i32
  }
  func.func @transform_3(%arg0: i32) -> (i32, i32) {
    %c0_i32 = arith.constant 0 : i32
    %c0_i32_0 = arith.constant 0 : i32
    %c0_i32_1 = arith.constant 0 : i32
    return %c0_i32, %c0_i32_0 : i32, i32
  }
  func.func @transform_4(%arg0: i32) -> (i32, i32) {
    %c0_i32 = arith.constant 0 : i32
    %c0_i32_0 = arith.constant 0 : i32
    %c0_i32_1 = arith.constant 0 : i32
    return %c0_i32, %c0_i32_0 : i32, i32
  }
  func.func @transform_5(%arg0: i32) -> (i32, i32) {
    %c0_i32 = arith.constant 0 : i32
    %c0_i32_0 = arith.constant 0 : i32
    %c0_i32_1 = arith.constant 0 : i32
    return %c0_i32, %c0_i32_0 : i32, i32
  }
  func.func @transform_6(%arg0: i32) -> (i32, i32) {
    %c0_i32 = arith.constant 0 : i32
    %c0_i32_0 = arith.constant 0 : i32
    %c0_i32_1 = arith.constant 0 : i32
    return %c0_i32, %c0_i32_0 : i32, i32
  }
  func.func @transform_7(%arg0: i32) -> (i32, i32) {
    %c0_i32 = arith.constant 0 : i32
    %c0_i32_0 = arith.constant 0 : i32
    %c0_i32_1 = arith.constant 0 : i32
    return %c0_i32, %c0_i32_0 : i32, i32
  }
  func.func @transform_8(%arg0: i32) -> (i32, i32) {
    %c0_i32 = arith.constant 0 : i32
    %c0_i32_0 = arith.constant 0 : i32
    return %c0_i32, %arg0 : i32, i32
  }
}

</mosaic_0001>

<bundles_post_ra>
// kernel: feature_extractor.1
= control target key start
LH: loop header
LB: loop body
LE: loop exit
PB: predicated region body
PF: predicated region fallthrough
CT: control target
= control target key end

     0   :  { %s6844_s27 = smov 0   ;;  %s6846_s28 = smov 0   ;;  %s9893_s0 = inlined_call_operand.vmem [shape: bf16[16,1024], index: 0, kind: input, shape index: {}]   ;;  %s9894_s1 = inlined_call_operand.vmem [shape: bf16[64,160], index: 1, kind: input, shape index: {}]   ;;  %s9895_s2 = inlined_call_operand.vmem [shape: bf16[64,592], index: 2, kind: input, shape index: {}]   ;;  %s9896_s3 = inlined_call_operand.vmem [shape: bf16[128,592], index: 3, kind: input, shape index: {}]   ;;  %s9897_s4 = inlined_call_operand.vmem [shape: bf16[128,1168], index: 4, kind: input, shape index: {}]   ;;  %s9898_s5 = inlined_call_operand.vmem [shape: bf16[16,512], index: 5, kind: input, shape index: {}]   ;;  %s9899_s6 = inlined_call_operand.vmem [shape: bf16[16,128], index: 6, kind: input, shape index: {}]   ;;  %s9900_s7 = inlined_call_operand.vmem [shape: bf16[512,128], index: 7, kind: input, shape index: {}]   ;;  %s9901_s8 = inlined_call_operand.vmem [shape: f32[128,256], index: 8, kind: output, shape index: {}]  }
   0x1   :  { %s6848_s29 = smov 0  }
   0x2 LB: > { %s9902_s30 = sadd.s32 4294967295, %s6781_s29   ;;  %s6861_s9 = sadd.s32 1, %s6781_s29   ;;  %s6781_s29 = sphi %s6848_s29, %s10217_s29   ;;  %s6777_s28 = sphi %s6846_s28, %s10216_s28   ;;  %s6773_s27 = sphi %s6844_s27, %s10215_s27  }
   0x3   : > { %s22_s10 = ssub.s32 %s6781_s29, %s6861_s9  ;;  %s25_s11 = sadd.s32 1, %s6777_s28 }
   0x4   : > { %p23_p0 = scmp.eq.s32.totalorder %s22_s10, 0  ;;  %p32_p1 = scmp.ne.s32.totalorder %s6777_s28, %s6773_s27 }
   0x5   : > { %p33_p2 = scmp.eq.s32.totalorder %s6781_s29, 0  ;;  %p209_p3 = scmp.eq.s32.totalorder %s9902_s30, 1 }
   0x6   : > { %s6872_s12 = scalar_select %p23_p0, %s6777_s28, %s25_s11  }
   0x7   : > { %p34_p4 = por %p33_p2, %p32_p1  ;;  %p6874_p5 = por %p209_p3, %p32_p1 }
   0x8   : > { %p5516_p6 = scmp.ge.s32.totalorder %s6781_s29, 2 }
   0xa   : > { %252 = sbr.rel (%p5516_p6) target bundleno = 21 (0x15), region = 44 }
   0xf   : > { %255 = sbr.rel (!%p34_p4) target bundleno = 21 (0x15), region = 48  ;;  %s257_s14 = sand.u32 (%p34_p4), 1, %s6777_s28  }
  0x10   : > { %s5763_s15 = sshll.u32 (%p34_p4), %s6781_s29, 4  ;;  %s5517_s16 = sshll.u32 (%p34_p4), %s257_s14, 5 }
  0x11   : > { %s262_s19 = scalar_lea.vmem (%p34_p4), %s9893_s0, %s5763_s15  ;;  %s259_s20 = scalar_lea.vmem (%p34_p4), [#allocation2], %s5517_s16 }
  0x12   : > { %v275_v0 = vld [vmem:[%s262_s19] sm:$0xff] (%p34_p4)  ;;  %v277_v1 = vld [vmem:[%s262_s19 + $0x8] sm:$0xff] (%p34_p4) }
  0x13   : > { %v279_v2 = vld [vmem:[%s262_s19 + $0x20] sm:$0xff] (%p34_p4)  ;;  %276 = vst [vmem:[%s259_s20] sm:$0xff] (%p34_p4), %v275_v0  ;;  %278 = vst [vmem:[%s259_s20 + $0x8] sm:$0xff] (%p34_p4), %v277_v1  ;;  %v281_v3 = vld [vmem:[%s262_s19 + $0x28] sm:$0xff] (%p34_p4) }
  0x14   : > { %280 = vst [vmem:[%s259_s20 + $0x10] sm:$0xff] %v279_v2  ;;  %282 = vst [vmem:[%s259_s20 + $0x18] sm:$0xff] %v281_v3 }
  0x15 PF: > { %p5520_p7 = scmp.ge.s32.totalorder %s6781_s29, 1  ;;  %p287_p8 = scmp.lt.s32.totalorder %s6781_s29, 3 }
  0x17   : > { %p288_p9 = pnand %p5520_p7, %p287_p8 }
  0x19   : > { %291 = sbr.rel (%p288_p9) target bundleno = 2458 (0x99a), region = 71 }
  0x1e   : > { %s9903_s21 = sand.u32 1, %s6773_s27   ;;  %s6783_s24 = smov 112   ;;  %v6513_v8 = vld [vmem:[%s9894_s1 + $0x4] ss:$8 sps:$4 sm:$0xff]   ;;  %vm877_vm0 = vcmask 261120   ;;  %v384_v12 = vlaneseq  ;;  %vm721_vm1 = vcmask 916480  }
  0x1f   : > { %s5521_s22 = sshll.u32 %s9903_s21, 5  ;;  %s6784_s25 = smov 113   ;;  %5555 = vmatprep.mubr.msk.bf16.mxu0 %vm877_vm0, %v6513_v8  ;;  %5559 = vmatprep.mubr.msk.bf16.mxu1 %vm877_vm0, %v6513_v8  ;;  %v669_v9 = vld [vmem:[%s9898_s5] sm:$0x88]  ;;  %v670_v10 = vld [vmem:[%s9898_s5 + $0x8] sm:$0x88] }
  0x20   : > { %s296_s23 = scalar_lea.vmem [#allocation2], %s5521_s22  ;;  %s6785_s26 = smov 127   ;;  %v5540_v11 = vcombine.high %v669_v9, %v669_v9  ;;  %v5542_v13 = vcombine.high %v670_v10, %v670_v10  ;;  %v5539_v14 = vcombine.low %v669_v9, %v669_v9  ;;  %v5541_v15 = vcombine.low %v670_v10, %v670_v10  ;;  %v601_v21 = vld [vmem:[%s9898_s5] sm:$0x44]  ;;  %v602_v32 = vld [vmem:[%s9898_s5 + $0x8] sm:$0x44] }
  0x21   : > { %v6889_v4 = vld [vmem:[%s296_s23 + $0x4] ss:$16 sps:$4 sm:$0xff]   ;;  %v6891_v5 = vld [vmem:[%s296_s23] ss:$16 sps:$4 sm:$0xff]   ;;  %v6895_v6 = vld [vmem:[%s296_s23 + $0x8] ss:$16 sps:$4 sm:$0xff]   ;;  %v5536_v28 = vcombine.high %v601_v21, %v601_v21  ;;  %v5535_v44 = vcombine.low %v601_v21, %v601_v21  ;;  %v5538_v45 = vcombine.high %v602_v32, %v602_v32  ;;  %v5537_v54 = vcombine.low %v602_v32, %v602_v32 }
  0x22   : > { %715 = vrot.lane.b32.xlu0 %v6889_v4, %s6783_s24  ;;  %713 = vrot.lane.b32.xlu1 %v6891_v5, %s6783_s24  ;;  %v6899_v7 = vld [vmem:[%s296_s23 + $0xc] ss:$16 sps:$4 sm:$0xff]   ;;  %s6786_s10 = smov 1   ;;  %s6787_s11 = smov 15   ;;  %v740_v16 = vshrl.u32 %v5540_v11, 16  ;;  %v6972_v17 = vshrl.u32 %v384_v12, 7  ;;  %v689_v31 = vpack.i.b16 %v5540_v11, %v5540_v11  ;;  %v682_v38 = vpack.i.b16 %v5539_v14, %v5539_v14 }
  0x23   : > { %s6788_s14 = smov 16   ;;  %s6789_s15 = smov 17   ;;  %v754_v18 = vshrl.u32 %v5542_v13, 16  ;;  %v733_v19 = vshrl.u32 %v5539_v14, 16  ;;  %v747_v20 = vshrl.u32 %v5541_v15, 16  ;;  %vm657_vm2 = vcmask 924672  }
  0x24   : > { %s6790_s18 = smov 111   ;;  %v741_v22 = vpack.i.b16 %v740_v16, %v740_v16  ;;  %v6978_v23 = vsub.s32 3, %v6972_v17  ;;  %v703_v39 = vpack.i.b16 %v5542_v13, %v5542_v13  ;;  %v622_v40 = vshrl.u32 %v5536_v28, 16  ;;  %v485_v46 = vld [vmem:[%s9898_s5] sm:$0x22]  ;;  %s6794_s21 = smov 9  }
  0x25   : > { %v755_v24 = vpack.i.b16 %v754_v18, %v754_v18  ;;  %v734_v25 = vpack.i.b16 %v733_v19, %v733_v19  ;;  %v748_v26 = vpack.i.b16 %v747_v20, %v747_v20  ;;  %v696_v43 = vpack.i.b16 %v5541_v15, %v5541_v15  ;;  %v486_v8 = vld [vmem:[%s9898_s5 + $0x8] sm:$0x22]  ;;  %s6795_s20 = smov 7  }
  0x26   : > { %717 = vrot.lane.b32.xlu0 %v6895_v6, %s6783_s24  ;;  %719 = vrot.lane.b32.xlu1 %v6899_v7, %s6783_s24  ;;  %10033 = vst [vmem:[#allocation4_spill] sm:$0xff] %v6978_v23  ;;  %v6981_v30 = vrot.slane %v741_v22, %v6978_v23  ;;  %v7004_v50 = vrot.slane %v689_v31, %v6978_v23  ;;  %v7010_v56 = vsub.s32 2, %v6972_v17  ;;  %v614_v60 = vshrl.u32 %v5535_v44, 16 }
  0x27   : > { %v6987_v33 = vrot.slane %v755_v24, %v6978_v23  ;;  %v6990_v34 = vrot.slane %v734_v25, %v6978_v23  ;;  %v6993_v35 = vrot.slane %v748_v26, %v6978_v23  ;;  %v623_v57 = vpack.i.b16 %v622_v40, %v622_v40 }
  0x28   : > { %10034 = vst [vmem:[#allocation5_spill] sm:$0xff] %v6981_v30  ;;  %10038 = vst [vmem:[#allocation9_spill] sm:$0xff] %v7004_v50  ;;  %v7012_v58 = vcombine.high %v485_v46, %v485_v46  ;;  %v638_v61 = vshrl.u32 %v5538_v45, 16  ;;  %v7016_v63 = vrot.slane %v682_v38, %v6978_v23  ;;  %v7020_v1 = vrot.slane %v703_v39, %v6978_v23 }
  0x29   : > { %10035 = vst [vmem:[#allocation6_spill] sm:$0xff] %v6987_v33  ;;  %10036 = vst [vmem:[#allocation7_spill] sm:$0xff] %v6990_v34  ;;  %v7023_v2 = vrot.slane %v696_v43, %v6978_v23  ;;  %v630_v3 = vshrl.u32 %v5537_v54, 16  ;;  %vm589_vm3 = vcmask 1039360   ;;  %v7029_v10 = vrot.slane %v623_v57, %v7010_v56 }
  0x2a   : > { %651 = vrot.lane.b32.xlu0 %v6889_v4, %s6784_s25  ;;  %653 = vrot.lane.b32.xlu1 %v6895_v6, %s6784_s25  ;;  %10037 = vst [vmem:[#allocation8_spill] sm:$0xff] %v6993_v35  ;;  %10039 = vst [vmem:[#allocation10_spill] sm:$0xff] %v7010_v56  ;;  %v556_v11 = vshrl.u32 %v7012_v58, 16  ;;  %v615_v14 = vpack.i.b16 %v614_v60, %v614_v60  ;;  %v639_v15 = vpack.i.b16 %v638_v61, %v638_v61  ;;  %vm537_vm4 = vcmask 7168  }
  0x2b   : > { %10040 = vst [vmem:[#allocation11_spill] sm:$0xff] %v7016_v63  ;;  %10041 = vst [vmem:[#allocation12_spill] sm:$0xff] %v7020_v1  ;;  %v7033_v16 = vcombine.low %v485_v46, %v485_v46  ;;  %v7038_v21 = vcombine.high %v486_v8, %v486_v8  ;;  %v631_v25 = vpack.i.b16 %v630_v3, %v630_v3  ;;  %vm473_vm5 = vcmask 121856  }
  0x2c   : > { %10042 = vst [vmem:[#allocation13_spill] sm:$0xff] %v7023_v2  ;;  %v7042_v26 = vcombine.low %v486_v8, %v486_v8  ;;  %v557_v31 = vpack.i.b16 %v556_v11, %v556_v11  ;;  %v505_v60 = vpack.i.b16 %v7012_v58, %v7012_v58  ;;  %vm421_vm6 = vcmask 130048  }
  0x2d   : > { %v549_v38 = vshrl.u32 %v7033_v16, 16  ;;  %v7057_v40 = vrot.slane %v631_v25, %v7010_v56  ;;  %vm357_vm7 = vcmask 138240   ;;  %vm773_vm8 = vcmask 908288  }
  0x2e   : > { %649 = vrot.lane.b32.xlu0 %v6891_v5, %s6784_s25  ;;  %655 = vrot.lane.b32.xlu1 %v6899_v7, %s6784_s25  ;;  %vm1928_vm9 = vcmask 654336  }
  0x2f   : > { %10045 = vst [vmem:[#allocation16_spill] sm:$0xff] %v7057_v40 }
  0x32   : > { %583 = vrot.lane.b32.xlu0 %v6889_v4, %s6785_s26  ;;  %585 = vrot.lane.b32.xlu1 %v6895_v6, %s6785_s26 }
  0x36   : > { %581 = vrot.lane.b32.xlu0 %v6891_v5, %s6785_s26  ;;  %587 = vrot.lane.b32.xlu1 %v6899_v7, %s6785_s26 }
  0x3a   : > { %531 = vrot.lane.b32.xlu0 %v6891_v5, %s6786_s10  ;;  %533 = vrot.lane.b32.xlu1 %v6889_v4, %s6786_s10 }
  0x3e   : > { %529 = vrot.lane.b32.xlu0 %v6899_v7, %s6786_s10  ;;  %535 = vrot.lane.b32.xlu1 %v6895_v6, %s6786_s10 }
  0x42   : > { %467 = vrot.lane.b32.xlu0 %v6891_v5, %s6787_s11  ;;  %469 = vrot.lane.b32.xlu1 %v6889_v4, %s6787_s11 }
  0x46   : > { %465 = vrot.lane.b32.xlu0 %v6899_v7, %s6787_s11  ;;  %471 = vrot.lane.b32.xlu1 %v6895_v6, %s6787_s11 }
  0x4a   : > { %415 = vrot.lane.b32.xlu0 %v6891_v5, %s6788_s14  ;;  %417 = vrot.lane.b32.xlu1 %v6889_v4, %s6788_s14 }
  0x4e   : > { %413 = vrot.lane.b32.xlu0 %v6899_v7, %s6788_s14  ;;  %419 = vrot.lane.b32.xlu1 %v6895_v6, %s6788_s14 }
  0x52   : > { %351 = vrot.lane.b32.xlu0 %v6891_v5, %s6789_s15  ;;  %353 = vrot.lane.b32.xlu1 %v6889_v4, %s6789_s15 }
  0x56   : > { %338 = vrot.lane.b32.xlu0 %v6899_v7, %s6789_s15  ;;  %355 = vrot.lane.b32.xlu1 %v6895_v6, %s6789_s15 }
  0x5a   : > { %767 = vrot.lane.b32.xlu0 %v6889_v4, %s6790_s18  ;;  %769 = vrot.lane.b32.xlu1 %v6895_v6, %s6790_s18 }
  0x5e   : > { %765 = vrot.lane.b32.xlu0 %v6891_v5, %s6790_s18  ;;  %771 = vrot.lane.b32.xlu1 %v6899_v7, %s6790_s18 }
  0x94   : > { %v716_v27 = vpop.permute.xlu0 %715  ;;  %v714_v29 = vpop.permute.xlu1 %713 }
  0x95   : > { %v722_v37 = vsel %vm721_vm1, %v714_v29, %v716_v27 }
  0x96   : > { %v761_v52 = vmul.bf16 %v6990_v34, %v722_v37  ;;  %v7052_v37 = vrot.slane %v639_v15, %v7010_v56  ;;  %v519_v15 = vpack.i.b16 %v7038_v21, %v7038_v21 }
  0x98   : > { %v718_v36 = vpop.permute.xlu0 %717  ;;  %v720_v41 = vpop.permute.xlu1 %719  ;;  %10044 = vst [vmem:[#allocation15_spill] sm:$0xff] %v7052_v37 }
  0x99   : > { %v723_v42 = vsel %vm721_vm1, %v716_v27, %v718_v36  ;;  %v731_v48 = vsel %vm721_vm1, %v720_v41, %v714_v29  ;;  %v724_v49 = vsel %vm721_vm1, %v718_v36, %v720_v41  ;;  %v7045_v29 = vsub.s32 1, %v6972_v17 }
  0x9a   : > { %v762_v47 = vmul.bf16 %v6981_v30, %v723_v42  ;;  %v764_v51 = vmul.bf16 %v6987_v33, %v731_v48  ;;  %v763_v53 = vmul.bf16 %v6993_v35, %v724_v49  ;;  %v7049_v36 = vrot.slane %v615_v14, %v7010_v56 }
  0x9b   : > { %10043 = vst [vmem:[#allocation14_spill] sm:$0xff] %v7045_v29  ;;  %v570_v41 = vshrl.u32 %v7038_v21, 16  ;;  %v563_v42 = vshrl.u32 %v7042_v26, 16  ;;  %v7063_v46 = vrot.slane %v557_v31, %v7045_v29 }
  0x9c   : > { %890 = vmatprep.subr.bf16.mxu0 %v762_v47  ;;  %v652_v55 = vpop.permute.xlu0 %651  ;;  %963 = vmatprep.subr.bf16.mxu1 %v764_v51  ;;  %v654_v59 = vpop.permute.xlu1 %653  ;;  %v550_v51 = vpack.i.b16 %v549_v38, %v549_v38 }
  0x9d   : > { %891 = vmatpush1.bf16.msra.mxu0 %v761_v52  ;;  %v659_v62 = vsel %vm657_vm2, %v652_v55, %v654_v59  ;;  %964 = vmatpush1.bf16.msra.mxu1 %v763_v53  ;;  %v369_v52 = vld [vmem:[%s9898_s5] sm:$0x11]  ;;  %v564_v57 = vpack.i.b16 %v563_v42, %v563_v42 }
  0x9e   : > { %v710_v0 = vmul.bf16 %v7004_v50, %v659_v62  ;;  %v7076_v62 = vcombine.high %v369_v52, %v369_v52  ;;  %v7080_v3 = vrot.slane %v550_v51, %v7045_v29 }
  0x9f   : > { %v7088_v58 = vrot.slane %v564_v57, %v7045_v29 }
  0xa0   : > { %v650_v9 = vpop.permute.xlu0 %649  ;;  %892 = vmatprep.subr.bf16.mxu0 %v710_v0  ;;  %v656_v13 = vpop.permute.xlu1 %655  ;;  %10046 = vst [vmem:[#allocation17_spill] sm:$0xff] %v7080_v3 }
  0xa1   : > { %v658_v12 = vsel %vm657_vm2, %v650_v9, %v652_v55  ;;  %v660_v18 = vsel %vm657_vm2, %v654_v59, %v656_v13  ;;  %v667_v19 = vsel %vm657_vm2, %v656_v13, %v650_v9  ;;  %v571_v55 = vpack.i.b16 %v570_v41, %v570_v41  ;;  %10048 = vst [vmem:[#allocation19_spill] sm:$0xff] %v7088_v58 }
  0xa2   : > { %v709_v20 = vmul.bf16 %v7016_v63, %v658_v12  ;;  %v712_v22 = vmul.bf16 %v7020_v1, %v667_v19  ;;  %v711_v24 = vmul.bf16 %v7023_v2, %v660_v18  ;;  %v498_v12 = vpack.i.b16 %v7033_v16, %v7033_v16 }
  0xa3   : > { %v7085_v9 = vrot.slane %v571_v55, %v7045_v29  ;;  %v440_v18 = vshrl.u32 %v7076_v62, 16 }
  0xa4   : > { %v584_v27 = vpop.permute.xlu0 %583  ;;  %893 = vmatpush1.bf16.msra.mxu0 %v709_v20  ;;  %965 = vmatprep.subr.bf16.mxu1 %v712_v22  ;;  %v586_v28 = vpop.permute.xlu1 %585  ;;  %v7109_v22 = vcombine.low %v369_v52, %v369_v52  ;;  %v7122_v38 = vrot.slane %v498_v12, %v7045_v29  ;;  %v785_v12 = vld [vmem:[%s9898_s5 + $0x10] sm:$0x11] }
  0xa5   : > { %v591_v32 = vsel %vm589_vm3, %v584_v27, %v586_v28  ;;  %966 = vmatpush1.bf16.msra.mxu1 %v711_v24  ;;  %10047 = vst [vmem:[#allocation18_spill] sm:$0xff] %v7085_v9 }
  0xa6   : > { %v646_v39 = vmul.bf16 %v7029_v10, %v591_v32  ;;  %10051 = vst [vmem:[#allocation22_spill] sm:$0xff] %v7122_v38  ;;  %v433_v41 = vshrl.u32 %v7109_v22, 16 }
  0xa8   : > { %v582_v43 = vpop.permute.xlu0 %581  ;;  %894 = vmatprep.subr.bf16.mxu0 %v646_v39  ;;  %v588_v45 = vpop.permute.xlu1 %587  ;;  %v7125_v39 = vrot.slane %v519_v15, %v7045_v29  ;;  %v389_v15 = vpack.i.b16 %v7076_v62, %v7076_v62 }
  0xa9   : > { %v590_v44 = vsel %vm589_vm3, %v582_v43, %v584_v27  ;;  %v592_v47 = vsel %vm589_vm3, %v586_v28, %v588_v45  ;;  %v599_v48 = vsel %vm589_vm3, %v588_v45, %v582_v43  ;;  %v7118_v28 = vsub.s32 0, %v6972_v17 }
  0xaa   : > { %v645_v49 = vmul.bf16 %v7049_v36, %v590_v44  ;;  %v648_v53 = vmul.bf16 %v7052_v37, %v599_v48  ;;  %v647_v54 = vmul.bf16 %v7057_v40, %v592_v47  ;;  %10052 = vst [vmem:[#allocation23_spill] sm:$0xff] %v7125_v39  ;;  %v7505_v40 = vld [vmem:[%s9895_s2 + $0xc] ss:$20 sps:$4 sm:$0xff]  }
  0xab   : > { %10050 = vst [vmem:[#allocation21_spill] sm:$0xff] %v7118_v28  ;;  %10081 = vst [vmem:[#allocation52_spill] sm:$0xff] %v7505_v40 }
  0xac   : > { %v532_v59 = vpop.permute.xlu0 %531  ;;  %895 = vmatpush1.bf16.msra.mxu0 %v645_v49  ;;  %967 = vmatprep.subr.bf16.mxu1 %v648_v53  ;;  %v534_v61 = vpop.permute.xlu1 %533 }
  0xad   : > { %896 = vmatprep.subr.bf16.mxu0 %v6889_v4  ;;  %v538_v0 = vsel %vm537_vm4, %v532_v59, %v534_v61  ;;  %968 = vmatpush1.bf16.msra.mxu1 %v647_v54  ;;  %v7092_v4 = vrot.slane %v505_v60, %v7045_v29  ;;  %v434_v54 = vpack.i.b16 %v433_v41, %v433_v41 }
  0xae   : > { %969 = vmatprep.subr.bf16.mxu1 %v6899_v7  ;;  %v578_v8 = vmul.bf16 %v7063_v46, %v538_v0  ;;  %v370_v7 = vld [vmem:[%s9898_s5 + $0x8] sm:$0x11] }
  0xaf   : > { %10049 = vst [vmem:[#allocation20_spill] sm:$0xff] %v7092_v4  ;;  %v7113_v21 = vcombine.high %v370_v7, %v370_v7  ;;  %v7115_v27 = vcombine.low %v370_v7, %v370_v7 }
  0xb0   : > { %v530_v11 = vpop.permute.xlu0 %529  ;;  %897 = vmatpush1.bf16.msra.mxu0 %v6891_v5  ;;  %v536_v14 = vpop.permute.xlu1 %535  ;;  %v512_v5 = vpack.i.b16 %v7042_v26, %v7042_v26 }
  0xb1   : > { %v547_v13 = vsel %vm537_vm4, %v530_v11, %v532_v59  ;;  %898 = vmatprep.subr.bf16.mxu0 %v578_v8  ;;  %v539_v19 = vsel %vm537_vm4, %v534_v61, %v536_v14  ;;  %v540_v16 = vsel %vm537_vm4, %v536_v14, %v530_v11  ;;  %970 = vmatpush1.bf16.msra.mxu1 %v6895_v6  ;;  %v454_v17 = vshrl.u32 %v7113_v21, 16 }
  0xb2   : > { %v577_v20 = vmul.bf16 %v7080_v3, %v547_v13  ;;  %v580_v24 = vmul.bf16 %v7085_v9, %v540_v16  ;;  %v579_v25 = vmul.bf16 %v7088_v58, %v539_v19  ;;  %v441_v6 = vpack.i.b16 %v440_v18, %v440_v18  ;;  %v7496_v58 = vld [vmem:[%s9895_s2 + $0x4] ss:$20 sps:$4 sm:$0xff]  }
  0xb3   : > { %v7130_v43 = vrot.slane %v512_v5, %v7045_v29  ;;  %v447_v44 = vshrl.u32 %v7115_v27, 16  ;;  %v455_v59 = vpack.i.b16 %v454_v17, %v454_v17  ;;  %v7145_v11 = vrot.slane %v434_v54, %v7118_v28  ;;  %10080 = vst [vmem:[#allocation51_spill] sm:$0xff] %v7496_v58 }
  0xb4   : > { %v468_v26 = vpop.permute.xlu0 %467  ;;  %899 = vmatpush1.bf16.msra.mxu0 %v577_v20  ;;  %971 = vmatprep.subr.bf16.mxu1 %v580_v24  ;;  %v470_v31 = vpop.permute.xlu1 %469  ;;  %v7136_v49 = vrot.slane %v441_v6, %v7118_v28  ;;  %v382_v16 = vpack.i.b16 %v7109_v22, %v7109_v22  ;;  %v5544_v20 = vcombine.high %v785_v12, %v785_v12 }
  0xb5   : > { %v474_v32 = vsel %vm473_vm5, %v468_v26, %v470_v31  ;;  %972 = vmatpush1.bf16.msra.mxu1 %v579_v25  ;;  %10053 = vst [vmem:[#allocation24_spill] sm:$0xff] %v7130_v43  ;;  %v448_v60 = vpack.i.b16 %v447_v44, %v447_v44  ;;  %v7152_v13 = vrot.slane %v455_v59, %v7118_v28 }
  0xb6   : > { %v526_v42 = vmul.bf16 %v7092_v4, %v474_v32  ;;  %v7170_v32 = vrot.slane %v389_v15, %v7118_v28  ;;  %v396_v22 = vpack.i.b16 %v7115_v27, %v7115_v27  ;;  %v805_v44 = vpack.i.b16 %v5544_v20, %v5544_v20 }
  0xb7   : > { %10054 = vst [vmem:[#allocation25_spill] sm:$0xff] %v7152_v13  ;;  %v7155_v14 = vrot.slane %v448_v60, %v7118_v28 }
  0xb8   : > { %v466_v45 = vpop.permute.xlu0 %465  ;;  %900 = vmatprep.subr.bf16.mxu0 %v526_v42  ;;  %v472_v48 = vpop.permute.xlu1 %471  ;;  %v786_v42 = vld [vmem:[%s9898_s5 + $0x18] sm:$0x11]  ;;  %v7190_v59 = vrot.slane %v805_v44, %v7118_v28 }
  0xb9   : > { %v483_v47 = vsel %vm473_vm5, %v466_v45, %v468_v26  ;;  %v475_v51 = vsel %vm473_vm5, %v470_v31, %v472_v48  ;;  %v476_v52 = vsel %vm473_vm5, %v472_v48, %v466_v45  ;;  %10055 = vst [vmem:[#allocation26_spill] sm:$0xff] %v7155_v14  ;;  %v403_v31 = vpack.i.b16 %v7113_v21, %v7113_v21 }
  0xba   : > { %v525_v53 = vmul.bf16 %v7122_v38, %v483_v47  ;;  %v528_v55 = vmul.bf16 %v7125_v39, %v476_v52  ;;  %v527_v57 = vmul.bf16 %v7130_v43, %v475_v51  ;;  %v7179_v45 = vrot.slane %v382_v16, %v7118_v28  ;;  %10058 = vst [vmem:[#allocation29_spill] sm:$0xff] %v7190_v59 }
  0xbb   : > { %v7182_v47 = vrot.slane %v403_v31, %v7118_v28  ;;  %v5543_v48 = vcombine.low %v785_v12, %v785_v12  ;;  %v7186_v51 = vrot.slane %v396_v22, %v7118_v28  ;;  %v5546_v52 = vcombine.high %v786_v42, %v786_v42 }
  0xbc   : > { %v416_v61 = vpop.permute.xlu0 %415  ;;  %901 = vmatpush1.bf16.msra.mxu0 %v525_v53  ;;  %973 = vmatprep.subr.bf16.mxu1 %v528_v55  ;;  %v418_v0 = vpop.permute.xlu1 %417  ;;  %v5545_v53 = vcombine.low %v786_v42, %v786_v42  ;;  %v9904_v16 = vmov 1065369472  }
  0xbd   : > { %v422_v8 = vsel %vm421_vm6, %v416_v61, %v418_v0  ;;  %974 = vmatpush1.bf16.msra.mxu1 %v527_v57  ;;  %10056 = vst [vmem:[#allocation27_spill] sm:$0xff] %v7182_v47  ;;  %10057 = vst [vmem:[#allocation28_spill] sm:$0xff] %v7186_v51  ;;  %v819_v15 = vpack.i.b16 %v5546_v52, %v5546_v52  ;;  %v6516_v52 = vld [vmem:[%s9894_s1 + $0x10] ss:$8 sps:$4 sm:$0xff]  }
  0xbe   : > { %v462_v7 = vmul.bf16 %v7136_v49, %v422_v8  ;;  %v798_v8 = vpack.i.b16 %v5543_v48, %v5543_v48  ;;  %v6511_v48 = vld [vmem:[%s9894_s1] ss:$8 sps:$4 sm:$0xff]  }
  0xc0   : > { %v414_v5 = vpop.permute.xlu0 %413  ;;  %902 = vmatprep.subr.bf16.mxu0 %v462_v7  ;;  %v420_v19 = vpop.permute.xlu1 %419 }
  0xc1   : > { %v431_v18 = vsel %vm421_vm6, %v414_v5, %v416_v61  ;;  %v423_v24 = vsel %vm421_vm6, %v418_v0, %v420_v19  ;;  %v424_v25 = vsel %vm421_vm6, %v420_v19, %v414_v5  ;;  %v812_v5 = vpack.i.b16 %v5545_v53, %v5545_v53  ;;  %v6517_v53 = vld [vmem:[%s9894_s1 + $0x24] ss:$8 sps:$4 sm:$0xff]  }
  0xc2   : > { %v461_v26 = vmul.bf16 %v7145_v11, %v431_v18  ;;  %v464_v62 = vmul.bf16 %v7152_v13, %v424_v25  ;;  %v463_v6 = vmul.bf16 %v7155_v14, %v423_v24  ;;  %v7200_v24 = vrot.slane %v798_v8, %v7118_v28 }
  0xc3   : > { %v7208_v31 = vrot.slane %v812_v5, %v7118_v28 }
  0xc4   : > { %v352_v41 = vpop.permute.xlu0 %351  ;;  %903 = vmatpush1.bf16.msra.mxu0 %v461_v26  ;;  %975 = vmatprep.subr.bf16.mxu1 %v464_v62  ;;  %v354_v17 = vpop.permute.xlu1 %353  ;;  %10059 = vst [vmem:[#allocation30_spill] sm:$0xff] %v7200_v24  ;;  %v7205_v26 = vrot.slane %v819_v15, %v7118_v28 }
  0xc5   : > { %v358_v21 = vsel %vm357_vm7, %v352_v41, %v354_v17  ;;  %976 = vmatpush1.bf16.msra.mxu1 %v463_v6  ;;  %10061 = vst [vmem:[#allocation32_spill] sm:$0xff] %v7208_v31 }
  0xc6   : > { %v410_v27 = vmul.bf16 %v7170_v32, %v358_v21  ;;  %10060 = vst [vmem:[#allocation31_spill] sm:$0xff] %v7205_v26 }
  0xc8   : > { %v339_v54 = vpop.permute.xlu0 %338  ;;  %904 = vmatprep.subr.bf16.mxu0 %v410_v27  ;;  %v356_v57 = vpop.permute.xlu1 %355  ;;  %v6514_v27 = vld [vmem:[%s9894_s1 + $0x14] ss:$8 sps:$4 sm:$0xff]  }
  0xc9   : > { %v367_v55 = vsel %vm357_vm7, %v339_v54, %v352_v41  ;;  %v359_v60 = vsel %vm357_vm7, %v354_v17, %v356_v57  ;;  %v360_v61 = vsel %vm357_vm7, %v356_v57, %v339_v54  ;;  %v6519_v54 = vld [vmem:[%s9894_s1 + $0x20] ss:$8 sps:$4 sm:$0xff]   ;;  %v6522_v57 = vld [vmem:[%s9894_s1 + $0x30] ss:$8 sps:$4 sm:$0xff]  }
  0xca   : > { %v409_v0 = vmul.bf16 %v7179_v45, %v367_v55  ;;  %v412_v12 = vmul.bf16 %v7182_v47, %v360_v61  ;;  %v411_v7 = vmul.bf16 %v7186_v51, %v359_v60  ;;  %v6520_v55 = vld [vmem:[%s9894_s1 + $0x34] ss:$8 sps:$4 sm:$0xff]  }
  0xcc   : > { %v768_v18 = vpop.permute.xlu0 %767  ;;  %905 = vmatpush1.bf16.msra.mxu0 %v409_v0  ;;  %977 = vmatprep.subr.bf16.mxu1 %v412_v12  ;;  %v770_v19 = vpop.permute.xlu1 %769 }
  0xcd   : > { %918 = vmatprep.subr.bf16.mxu0 %v9904_v16  ;;  %v775_v20 = vsel %vm773_vm8, %v768_v18, %v770_v19  ;;  %978 = vmatpush1.bf16.msra.mxu1 %v411_v7 }
  0xce   : > { %991 = vmatprep.subr.bf16.mxu1 %v9904_v16  ;;  %v826_v25 = vmul.bf16 %v7190_v59, %v775_v20 }
  0xd0   : > { %v766_v62 = vpop.permute.xlu0 %765  ;;  %919 = vmatpush2.bf16.msra.mxu0 %v9904_v16  ;;  %v772_v22 = vpop.permute.xlu1 %771 }
  0xd1   : > { %v774_v6 = vsel %vm773_vm8, %v766_v62, %v768_v18  ;;  %920 = vmatprep.subr.bf16.mxu0 %v826_v25  ;;  %v776_v41 = vsel %vm773_vm8, %v770_v19, %v772_v22  ;;  %v783_v42 = vsel %vm773_vm8, %v772_v22, %v766_v62  ;;  %992 = vmatpush2.bf16.msra.mxu1 %v9904_v16 }
  0xd2   : > { %v825_v17 = vmul.bf16 %v7200_v24, %v774_v6  ;;  %v828_v44 = vmul.bf16 %v7205_v26, %v783_v42  ;;  %v827_v21 = vmul.bf16 %v7208_v31, %v776_v41 }
  0xd4   : > { %921 = vmatpush2.bf16.msra.mxu0 %v825_v17  ;;  %993 = vmatprep.subr.bf16.mxu1 %v828_v44 }
  0xd5   : > { %994 = vmatpush2.bf16.msra.mxu1 %v827_v21 }
  0xd7   : > { %923 = vmatmul.mubr.bf16.vlgmr.msra.gmra.mxu0 %v6511_v48 }
  0xd8   : > { %5556 = vmatprep.mubr.msk.bf16.mxu0 %vm877_vm0, %v6514_v27  ;;  %996 = vmatmul.mubr.bf16.vlgmr.msra.gmra.mxu1 %v6511_v48 }
  0xd9   : > { %5560 = vmatprep.mubr.msk.bf16.mxu1 %vm877_vm0, %v6514_v27 }
  0xdf   : > { %933 = vmatmul.mubr.bf16.gmra.mxu0 %v6516_v52 }
  0xe0   : > { %5557 = vmatprep.mubr.msk.bf16.mxu0 %vm877_vm0, %v6517_v53  ;;  %1006 = vmatmul.mubr.bf16.gmra.mxu1 %v6516_v52 }
  0xe1   : > { %5561 = vmatprep.mubr.msk.bf16.mxu1 %vm877_vm0, %v6517_v53 }
  0xe7   : > { %943 = vmatmul.mubr.bf16.gmra.mxu0 %v6519_v54 }
  0xe8   : > { %5558 = vmatprep.mubr.msk.bf16.mxu0 %vm877_vm0, %v6520_v55  ;;  %1016 = vmatmul.mubr.bf16.gmra.mxu1 %v6519_v54 }
  0xe9   : > { %5562 = vmatprep.mubr.msk.bf16.mxu1 %vm877_vm0, %v6520_v55 }
  0xef   : > { %953 = vmatmul.mubr.bf16.gmra.mxu0 %v6522_v57 }
  0xf0   : > { %1026 = vmatmul.mubr.bf16.gmra.mxu1 %v6522_v57  ;;  %1973 = vmatprep.mubr.bf16.mxu0 %v7496_v58 }
  0xf1   : > { %2046 = vmatprep.mubr.bf16.mxu1 %v7505_v40 }
 0x197   : > { %v924_v60 = vpop.f32.mrf.mxu0 }
 0x198   : > { %v997_v61 = vpop.f32.mrf.mxu1  ;;  %v1036_v7 = vmax.f32 %v924_v60, 0.0 }
 0x199   : > { %v926_v0 = vpop.f32.mrf.mxu0  ;;  %v1038_v18 = vmax.f32 %v997_v61, 0.0 }
 0x19a   : > { %v999_v8 = vpop.f32.mrf.mxu1  ;;  %v1037_v41 = vmax.f32 %v926_v0, 0.0 }
 0x19b   : > { %v928_v12 = vpop.f32.mrf.mxu0  ;;  %v1039_v44 = vmax.f32 %v999_v8, 0.0 }
 0x19c   : > { %v1040_v15 = vmax.f32 %v928_v12, 0.0  ;;  %v1001_v5 = vpop.f32.mrf.mxu1 }
 0x19d   : > { %v1042_v20 = vmax.f32 %v1001_v5, 0.0  ;;  %v930_v62 = vpop.f32.mrf.mxu0 }
 0x19e   : > { %v7245_v19 = vpack.c.bf16 %v1040_v15, %v1036_v7  ;;  %v1041_v6 = vmax.f32 %v930_v62, 0.0  ;;  %v1003_v22 = vpop.f32.mrf.mxu1 }
 0x19f   : > { %v7251_v25 = vpack.c.bf16 %v1042_v20, %v1038_v18  ;;  %v1043_v17 = vmax.f32 %v1003_v22, 0.0  ;;  %v934_v21 = vpop.f32.mrf.mxu0 }
 0x1a0   : > { %10062 = vst [vmem:[#allocation33_spill] sm:$0xff] %v7245_v19  ;;  %1452 = vrot.lane.b32.xlu1 %v7245_v19, %s6785_s26  ;;  %1196 = vrot.lane.b32.xlu0 %v7245_v19, %s6788_s14  ;;  %v7261_v42 = vpack.c.bf16 %v1041_v6, %v1037_v41  ;;  %v1007_v52 = vpop.f32.mrf.mxu1  ;;  %v1044_v55 = vmax.f32 %v934_v21, 0.0 }
 0x1a1   : > { %10063 = vst [vmem:[#allocation34_spill] sm:$0xff] %v7251_v25  ;;  %v7267_v48 = vpack.c.bf16 %v1043_v17, %v1039_v44  ;;  %v936_v27 = vpop.f32.mrf.mxu0  ;;  %v1046_v0 = vmax.f32 %v1007_v52, 0.0 }
 0x1a2   : > { %v1009_v54 = vpop.f32.mrf.mxu1  ;;  %v1045_v15 = vmax.f32 %v936_v27, 0.0 }
 0x1a3   : > { %10064 = vst [vmem:[#allocation35_spill] sm:$0xff] %v7267_v48  ;;  %v938_v53 = vpop.f32.mrf.mxu0  ;;  %v1047_v62 = vmax.f32 %v1009_v54, 0.0 }
 0x1a4   : > { %1108 = vrot.lane.b32.xlu1 %v7245_v19, %s6789_s15  ;;  %1456 = vrot.lane.b32.xlu0 %v7251_v25, %s6785_s26  ;;  %v1048_v57 = vmax.f32 %v938_v53, 0.0  ;;  %v1011_v60 = vpop.f32.mrf.mxu1 }
 0x1a5   : > { %v1050_v8 = vmax.f32 %v1011_v60, 0.0  ;;  %v940_v7 = vpop.f32.mrf.mxu0 }
 0x1a6   : > { %v7281_v61 = vpack.c.bf16 %v1048_v57, %v1044_v55  ;;  %v1049_v5 = vmax.f32 %v940_v7, 0.0  ;;  %v1013_v20 = vpop.f32.mrf.mxu1 }
 0x1a7   : > { %v7287_v12 = vpack.c.bf16 %v1050_v8, %v1046_v0  ;;  %v1051_v6 = vmax.f32 %v1013_v20, 0.0  ;;  %v944_v22 = vpop.f32.mrf.mxu0 }
 0x1a8   : > { %1628 = vrot.lane.b32.xlu1 %v7245_v19, %s6783_s24  ;;  %1372 = vrot.lane.b32.xlu0 %v7245_v19, %s6786_s10  ;;  %v7297_v18 = vpack.c.bf16 %v1049_v5, %v1045_v15  ;;  %v1017_v44 = vpop.f32.mrf.mxu1  ;;  %v1052_v52 = vmax.f32 %v944_v22, 0.0 }
 0x1a9   : > { %10065 = vst [vmem:[#allocation36_spill] sm:$0xff] %v7287_v12  ;;  %v7307_v41 = vpack.c.bf16 %v1051_v6, %v1047_v62  ;;  %v946_v17 = vpop.f32.mrf.mxu0  ;;  %v1054_v57 = vmax.f32 %v1017_v44, 0.0 }
 0x1aa   : > { %v1019_v27 = vpop.f32.mrf.mxu1  ;;  %v1053_v7 = vmax.f32 %v946_v17, 0.0 }
 0x1ab   : > { %10066 = vst [vmem:[#allocation37_spill] sm:$0xff] %v7307_v41  ;;  %v948_v21 = vpop.f32.mrf.mxu0  ;;  %v1055_v62 = vmax.f32 %v1019_v27, 0.0 }
 0x1ac   : > { %1198 = vrot.lane.b32.xlu1 %v7261_v42, %s6788_s14  ;;  %1632 = vrot.lane.b32.xlu0 %v7251_v25, %s6783_s24  ;;  %v1056_v53 = vmax.f32 %v948_v21, 0.0  ;;  %v1021_v54 = vpop.f32.mrf.mxu1 }
 0x1ad   : > { %v1058_v60 = vmax.f32 %v1021_v54, 0.0  ;;  %v950_v8 = vpop.f32.mrf.mxu0 }
 0x1ae   : > { %v7321_v55 = vpack.c.bf16 %v1056_v53, %v1052_v52  ;;  %v1057_v15 = vmax.f32 %v950_v8, 0.0  ;;  %v1023_v5 = vpop.f32.mrf.mxu1 }
 0x1af   : > { %v7327_v0 = vpack.c.bf16 %v1058_v60, %v1054_v57  ;;  %v1059_v6 = vmax.f32 %v1023_v5, 0.0  ;;  %v954_v22 = vpop.f32.mrf.mxu0 }
 0x1b0   : > { %1454 = vrot.lane.b32.xlu1 %v7261_v42, %s6785_s26  ;;  %1188 = vrot.lane.b32.xlu0 %v7267_v48, %s6788_s14  ;;  %v7337_v20 = vpack.c.bf16 %v1057_v15, %v1053_v7  ;;  %v1027_v21 = vpop.f32.mrf.mxu1  ;;  %v1060_v53 = vmax.f32 %v954_v22, 0.0 }
 0x1b1   : > { %10067 = vst [vmem:[#allocation38_spill] sm:$0xff] %v7327_v0  ;;  %v7343_v17 = vpack.c.bf16 %v1059_v6, %v1055_v62  ;;  %v956_v44 = vpop.f32.mrf.mxu0  ;;  %v1062_v8 = vmax.f32 %v1027_v21, 0.0 }
 0x1b2   : > { %v1029_v52 = vpop.f32.mrf.mxu1  ;;  %v1061_v62 = vmax.f32 %v956_v44, 0.0 }
 0x1b3   : > { %10068 = vst [vmem:[#allocation39_spill] sm:$0xff] %v7343_v17  ;;  %v958_v27 = vpop.f32.mrf.mxu0  ;;  %v1063_v44 = vmax.f32 %v1029_v52, 0.0 }
 0x1b4   : > { %1088 = vrot.lane.b32.xlu1 %v7267_v48, %s6789_s15  ;;  %1110 = vrot.lane.b32.xlu0 %v7261_v42, %s6789_s15  ;;  %v1064_v54 = vmax.f32 %v958_v27, 0.0  ;;  %v1031_v57 = vpop.f32.mrf.mxu1 }
 0x1b5   : > { %v1066_v7 = vmax.f32 %v1031_v57, 0.0  ;;  %v960_v5 = vpop.f32.mrf.mxu0 }
 0x1b6   : > { %v7357_v60 = vpack.c.bf16 %v1064_v54, %v1060_v53  ;;  %v1065_v6 = vmax.f32 %v960_v5, 0.0  ;;  %v1033_v21 = vpop.f32.mrf.mxu1 }
 0x1b7   : > { %v7363_v15 = vpack.c.bf16 %v1066_v7, %v1062_v8  ;;  %v1067_v27 = vmax.f32 %v1033_v21, 0.0 }
 0x1b8   : > { %1374 = vrot.lane.b32.xlu1 %v7261_v42, %s6786_s10  ;;  %1364 = vrot.lane.b32.xlu0 %v7267_v48, %s6786_s10  ;;  %v7373_v22 = vpack.c.bf16 %v1065_v6, %v1061_v62 }
 0x1b9   : > { %10069 = vst [vmem:[#allocation40_spill] sm:$0xff] %v7363_v15  ;;  %v7387_v53 = vpack.c.bf16 %v1067_v27, %v1063_v44 }
 0x1bb   : > { %10070 = vst [vmem:[#allocation41_spill] sm:$0xff] %v7387_v53 }
 0x1bc   : > { %1630 = vrot.lane.b32.xlu1 %v7261_v42, %s6783_s24  ;;  %1202 = vrot.lane.b32.xlu0 %v7281_v61, %s6788_s14 }
 0x1c0   : > { %1460 = vrot.lane.b32.xlu1 %v7281_v61, %s6785_s26  ;;  %1464 = vrot.lane.b32.xlu0 %v7287_v12, %s6785_s26 }
 0x1c4   : > { %1636 = vrot.lane.b32.xlu1 %v7281_v61, %s6783_s24  ;;  %1114 = vrot.lane.b32.xlu0 %v7281_v61, %s6789_s15 }
 0x1c8   : > { %1204 = vrot.lane.b32.xlu1 %v7297_v18, %s6788_s14  ;;  %1378 = vrot.lane.b32.xlu0 %v7281_v61, %s6786_s10 }
 0x1cc   : > { %1462 = vrot.lane.b32.xlu1 %v7297_v18, %s6785_s26  ;;  %1640 = vrot.lane.b32.xlu0 %v7287_v12, %s6783_s24 }
 0x1d0   : > { %1116 = vrot.lane.b32.xlu1 %v7297_v18, %s6789_s15  ;;  %1190 = vrot.lane.b32.xlu0 %v7307_v41, %s6788_s14 }
 0x1d4   : > { %1380 = vrot.lane.b32.xlu1 %v7297_v18, %s6786_s10  ;;  %1090 = vrot.lane.b32.xlu0 %v7307_v41, %s6789_s15 }
 0x1d8   : > { %1638 = vrot.lane.b32.xlu1 %v7297_v18, %s6783_s24  ;;  %1366 = vrot.lane.b32.xlu0 %v7307_v41, %s6786_s10 }
 0x1dc   : > { %1468 = vrot.lane.b32.xlu1 %v7321_v55, %s6785_s26  ;;  %1208 = vrot.lane.b32.xlu0 %v7321_v55, %s6788_s14 }
 0x1e0   : > { %1120 = vrot.lane.b32.xlu1 %v7321_v55, %s6789_s15  ;;  %1472 = vrot.lane.b32.xlu0 %v7327_v0, %s6785_s26 }
 0x1e4   : > { %1644 = vrot.lane.b32.xlu1 %v7321_v55, %s6783_s24  ;;  %1384 = vrot.lane.b32.xlu0 %v7321_v55, %s6786_s10 }
 0x1e8   : > { %1210 = vrot.lane.b32.xlu1 %v7337_v20, %s6788_s14  ;;  %1648 = vrot.lane.b32.xlu0 %v7327_v0, %s6783_s24 }
 0x1ec   : > { %1470 = vrot.lane.b32.xlu1 %v7337_v20, %s6785_s26  ;;  %1192 = vrot.lane.b32.xlu0 %v7343_v17, %s6788_s14 }
 0x1f0   : > { %1092 = vrot.lane.b32.xlu1 %v7343_v17, %s6789_s15  ;;  %1122 = vrot.lane.b32.xlu0 %v7337_v20, %s6789_s15 }
 0x1f4   : > { %1386 = vrot.lane.b32.xlu1 %v7337_v20, %s6786_s10  ;;  %1368 = vrot.lane.b32.xlu0 %v7343_v17, %s6786_s10 }
 0x1f8   : > { %1646 = vrot.lane.b32.xlu1 %v7337_v20, %s6783_s24  ;;  %1214 = vrot.lane.b32.xlu0 %v7357_v60, %s6788_s14 }
 0x1fc   : > { %1476 = vrot.lane.b32.xlu1 %v7357_v60, %s6785_s26  ;;  %1480 = vrot.lane.b32.xlu0 %v7363_v15, %s6785_s26 }
 0x200   : > { %1652 = vrot.lane.b32.xlu1 %v7357_v60, %s6783_s24  ;;  %1126 = vrot.lane.b32.xlu0 %v7357_v60, %s6789_s15 }
 0x204   : > { %1216 = vrot.lane.b32.xlu1 %v7373_v22, %s6788_s14  ;;  %1390 = vrot.lane.b32.xlu0 %v7357_v60, %s6786_s10 }
 0x208   : > { %1564 = vrot.lane.b32.xlu1 %v7357_v60, %s6784_s25  ;;  %1656 = vrot.lane.b32.xlu0 %v7363_v15, %s6783_s24 }
 0x20c   : > { %1298 = vrot.lane.b32.xlu1 %v7337_v20, %s6787_s11  ;;  %1302 = vrot.lane.b32.xlu0 %v7357_v60, %s6787_s11 }
 0x210   : > { %1478 = vrot.lane.b32.xlu1 %v7373_v22, %s6785_s26  ;;  %1194 = vrot.lane.b32.xlu0 %v7387_v53, %s6788_s14 }
 0x212   : > { %v7393_v54 = vpop.permute.xlu0 %1196  ;;  %v7395_v57 = vpop.permute.xlu1 %1452 }
 0x214   : > { %1558 = vrot.lane.b32.xlu1 %v7337_v20, %s6784_s25  ;;  %1568 = vrot.lane.b32.xlu0 %v7363_v15, %s6784_s25 }
 0x216   : > { %v7401_v52 = vpop.permute.xlu0 %1456  ;;  %v7403_v8 = vpop.permute.xlu1 %1108 }
 0x218   : > { %1128 = vrot.lane.b32.xlu1 %v7373_v22, %s6789_s15  ;;  %1296 = vrot.lane.b32.xlu0 %v7321_v55, %s6787_s11 }
 0x21a   : > { %v7409_v7 = vpop.permute.xlu0 %1372  ;;  %v7411_v5 = vpop.permute.xlu1 %1628 }
 0x21b   : > { %10071 = vst [vmem:[#allocation42_spill] sm:$0xff] %v7409_v7  ;;  %10072 = vst [vmem:[#allocation43_spill] sm:$0xff] %v7411_v5 }
 0x21c   : > { %1556 = vrot.lane.b32.xlu1 %v7321_v55, %s6784_s25  ;;  %1280 = vrot.lane.b32.xlu0 %v7343_v17, %s6787_s11 }
 0x21e   : > { %v7417_v62 = vpop.permute.xlu0 %1632  ;;  %v7419_v6 = vpop.permute.xlu1 %1198 }
 0x21f   : > { %10073 = vst [vmem:[#allocation44_spill] sm:$0xff] %v7417_v62 }
 0x220   : > { %1292 = vrot.lane.b32.xlu1 %v7297_v18, %s6787_s11  ;;  %1094 = vrot.lane.b32.xlu0 %v7387_v53, %s6789_s15 }
 0x222   : > { %v7425_v21 = vpop.permute.xlu0 %1188  ;;  %v7427_v44 = vpop.permute.xlu1 %1454 }
 0x224   : > { %1550 = vrot.lane.b32.xlu1 %v7297_v18, %s6784_s25  ;;  %1560 = vrot.lane.b32.xlu0 %v7327_v0, %s6784_s25 }
 0x226   : > { %v7433_v27 = vpop.permute.xlu0 %1110  ;;  %v7435_v16 = vpop.permute.xlu1 %1088 }
 0x228   : > { %1392 = vrot.lane.b32.xlu1 %v7373_v22, %s6786_s10  ;;  %1290 = vrot.lane.b32.xlu0 %v7281_v61, %s6787_s11 }
 0x22a   : > { %v7441_v23 = vpop.permute.xlu0 %1364  ;;  %v7443_v56 = vpop.permute.xlu1 %1374 }
 0x22b   : > { %10074 = vst [vmem:[#allocation45_spill] sm:$0xff] %v7441_v23  ;;  %10075 = vst [vmem:[#allocation46_spill] sm:$0xff] %v7443_v56 }
 0x22c   : > { %1548 = vrot.lane.b32.xlu1 %v7281_v61, %s6784_s25  ;;  %1278 = vrot.lane.b32.xlu0 %v7307_v41, %s6787_s11 }
 0x22e   : > { %v7449_v29 = vpop.permute.xlu0 %1202  ;;  %v7451_v28 = vpop.permute.xlu1 %1630 }
 0x22f   : > { %10076 = vst [vmem:[#allocation47_spill] sm:$0xff] %v7451_v28 }
 0x230   : > { %1654 = vrot.lane.b32.xlu1 %v7373_v22, %s6783_s24  ;;  %1370 = vrot.lane.b32.xlu0 %v7387_v53, %s6786_s10 }
 0x232   : > { %v7457_v2 = vpop.permute.xlu0 %1464  ;;  %v7459_v1 = vpop.permute.xlu1 %1460 }
 0x234   : > { %1286 = vrot.lane.b32.xlu1 %v7261_v42, %s6787_s11  ;;  %1552 = vrot.lane.b32.xlu0 %v7287_v12, %s6784_s25 }
 0x236   : > { %v7465_v31 = vpop.permute.xlu0 %1114  ;;  %v7467_v26 = vpop.permute.xlu1 %1636 }
 0x237   : > { %10077 = vst [vmem:[#allocation48_spill] sm:$0xff] %v7467_v26 }
 0x238   : > { %1542 = vrot.lane.b32.xlu1 %v7261_v42, %s6784_s25  ;;  %1284 = vrot.lane.b32.xlu0 %v7245_v19, %s6787_s11 }
 0x23a   : > { %v7473_v35 = vpop.permute.xlu0 %1378  ;;  %v7475_v33 = vpop.permute.xlu1 %1204 }
 0x23b   : > { %10078 = vst [vmem:[#allocation49_spill] sm:$0xff] %v7473_v35 }
 0x23c   : > { %1304 = vrot.lane.b32.xlu1 %v7373_v22, %s6787_s11  ;;  %1276 = vrot.lane.b32.xlu0 %v7267_v48, %s6787_s11 }
 0x23e   : > { %v7481_v39 = vpop.permute.xlu0 %1640  ;;  %v7483_v43 = vpop.permute.xlu1 %1462 }
 0x23f   : > { %10079 = vst [vmem:[#allocation50_spill] sm:$0xff] %v7481_v39 }
 0x240   : > { %1566 = vrot.lane.b32.xlu1 %v7373_v22, %s6784_s25  ;;  %1282 = vrot.lane.b32.xlu0 %v7387_v53, %s6787_s11 }
 0x242   : > { %v7489_v37 = vpop.permute.xlu0 %1190  ;;  %v7491_v9 = vpop.permute.xlu1 %1116 }
 0x244   : > { %1540 = vrot.lane.b32.xlu1 %v7245_v19, %s6784_s25  ;;  %1544 = vrot.lane.b32.xlu0 %v7251_v25, %s6784_s25 }
 0x246   : > { %v7508_v51 = vpop.permute.xlu0 %1090  ;;  %v7510_v59 = vpop.permute.xlu1 %1380 }
 0x247   : > { %10082 = vst [vmem:[#allocation53_spill] sm:$0xff] %v7510_v59 }
 0x248   : > { %1212 = vrot.lane.b32.xlu1 %v7327_v0, %s6788_s14  ;;  %1218 = vrot.lane.b32.xlu0 %v7363_v15, %s6788_s14 }
 0x24a   : > { %v7517_v24 = vpop.permute.xlu0 %1366  ;;  %v7519_v47 = vpop.permute.xlu1 %1638 }
 0x24b   : > { %10083 = vst [vmem:[#allocation54_spill] sm:$0xff] %v7517_v24  ;;  %10084 = vst [vmem:[#allocation55_spill] sm:$0xff] %v7519_v47 }
 0x24c   : > { %1200 = vrot.lane.b32.xlu1 %v7251_v25, %s6788_s14  ;;  %1206 = vrot.lane.b32.xlu0 %v7287_v12, %s6788_s14 }
 0x24e   : > { %v7525_v58 = vpop.permute.xlu0 %1208  ;;  %v7527_v14 = vpop.permute.xlu1 %1468 }
 0x250   : > { %1744 = vrot.lane.b32.xlu1 %v7363_v15, %s6790_s18  ;;  %1740 = vrot.lane.b32.xlu0 %v7357_v60, %s6790_s18 }
 0x252   : > { %v7533_v40 = vpop.permute.xlu0 %1472  ;;  %v7535_v13 = vpop.permute.xlu1 %1120 }
 0x253   : > { %10085 = vst [vmem:[#allocation56_spill] sm:$0xff] %v7533_v40 }
 0x254   : > { %1130 = vrot.lane.b32.xlu1 %v7363_v15, %s6789_s15  ;;  %1734 = vrot.lane.b32.xlu0 %v7337_v20, %s6790_s18 }
 0x256   : > { %v7541_v50 = vpop.permute.xlu0 %1384  ;;  %v7543_v63 = vpop.permute.xlu1 %1644 }
 0x257   : > { %10086 = vst [vmem:[#allocation57_spill] sm:$0xff] %v7543_v63 }
 0x258   : > { %1736 = vrot.lane.b32.xlu1 %v7327_v0, %s6790_s18  ;;  %1732 = vrot.lane.b32.xlu0 %v7321_v55, %s6790_s18 }
 0x25a   : > { %v7549_v38 = vpop.permute.xlu0 %1648  ;;  %v7551_v4 = vpop.permute.xlu1 %1210 }
 0x25b   : > { %10087 = vst [vmem:[#allocation58_spill] sm:$0xff] %v7549_v38 }
 0x25c   : > { %1124 = vrot.lane.b32.xlu1 %v7327_v0, %s6789_s15  ;;  %1726 = vrot.lane.b32.xlu0 %v7297_v18, %s6790_s18 }
 0x25e   : > { %v7557_v5 = vpop.permute.xlu0 %1192  ;;  %v1471_v23 = vpop.permute.xlu1 %1470 }
 0x260   : > { %1728 = vrot.lane.b32.xlu1 %v7287_v12, %s6790_s18  ;;  %1742 = vrot.lane.b32.xlu0 %v7373_v22, %s6790_s18 }
 0x262   : > { %v7563_v28 = vpop.permute.xlu0 %1122  ;;  %v7565_v62 = vpop.permute.xlu1 %1092 }
 0x264   : > { %1724 = vrot.lane.b32.xlu0 %v7281_v61, %s6790_s18  ;;  %1118 = vrot.lane.b32.xlu1 %v7287_v12, %s6789_s15 }
 0x266   : > { %v7571_v26 = vpop.permute.xlu0 %1368  ;;  %v7573_v7 = vpop.permute.xlu1 %1386 }
 0x267   : > { %10088 = vst [vmem:[#allocation59_spill] sm:$0xff] %v7571_v26 }
 0x268   : > { %1718 = vrot.lane.b32.xlu0 %v7261_v42, %s6790_s18  ;;  %1720 = vrot.lane.b32.xlu1 %v7251_v25, %s6790_s18 }
 0x26a   : > { %v1215_v56 = vpop.permute.xlu0 %1214  ;;  %v7579_v24 = vpop.permute.xlu1 %1646 }
 0x26b   : > { %10089 = vst [vmem:[#allocation60_spill] sm:$0xff] %v7579_v24 }
 0x26c   : > { %1716 = vrot.lane.b32.xlu0 %v7245_v19, %s6790_s18  ;;  %1112 = vrot.lane.b32.xlu1 %v7251_v25, %s6789_s15 }
 0x26e   : > { %v7585_v47 = vpop.permute.xlu0 %1480  ;;  %v7587_v39 = vpop.permute.xlu1 %1476 }
 0x26f   : > { %10090 = vst [vmem:[#allocation61_spill] sm:$0xff] %v7587_v39 }
 0x270   : > { %1482 = vrot.lane.b32.xlu0 %v7387_v53, %s6785_s26  ;;  %1394 = vrot.lane.b32.xlu1 %v7363_v15, %s6786_s10 }
 0x272   : > { %v7593_v63 = vpop.permute.xlu0 %1126  ;;  %v7595_v35 = vpop.permute.xlu1 %1652 }
 0x273   : > { %10091 = vst [vmem:[#allocation62_spill] sm:$0xff] %v7595_v35 }
 0x274   : > { %1474 = vrot.lane.b32.xlu0 %v7343_v17, %s6785_s26  ;;  %1388 = vrot.lane.b32.xlu1 %v7327_v0, %s6786_s10 }
 0x276   : > { %v7601_v59 = vpop.permute.xlu0 %1390  ;;  %v7603_v26 = vpop.permute.xlu1 %1216 }
 0x277   : > { %10092 = vst [vmem:[#allocation63_spill] sm:$0xff] %v7603_v26  ;;  %v1229_v30 = vsel %vm421_vm6, %v1215_v56, %v7603_v26 }
 0x278   : > { %1466 = vrot.lane.b32.xlu0 %v7307_v41, %s6785_s26  ;;  %1382 = vrot.lane.b32.xlu1 %v7287_v12, %s6786_s10  ;;  %v1273_v34 = vmul.bf16 %v1229_v30, %v7136_v49  ;;  %v1226_v30 = vsel %vm421_vm6, %v7525_v58, %v7551_v4 }
 0x27a   : > { %v7612_v3 = vpop.permute.xlu0 %1656  ;;  %1941 = vmatprep.subr.bf16.mxu0 %v1273_v34  ;;  %v7614_v19 = vpop.permute.xlu1 %1564 }
 0x27b   : > { %10093 = vst [vmem:[#allocation64_spill] sm:$0xff] %v7612_v3  ;;  %10094 = vst [vmem:[#allocation65_spill] sm:$0xff] %v7614_v19  ;;  %v1491_v3 = vsel %vm589_vm3, %v1471_v23, %v7533_v40 }
 0x27c   : > { %1458 = vrot.lane.b32.xlu0 %v7267_v48, %s6785_s26  ;;  %1376 = vrot.lane.b32.xlu1 %v7251_v25, %s6786_s10 }
 0x27e   : > { %v7620_v26 = vpop.permute.xlu0 %1302  ;;  %v7622_v35 = vpop.permute.xlu1 %1298 }
 0x27f   : > { %10095 = vst [vmem:[#allocation66_spill] sm:$0xff] %v7620_v26  ;;  %10096 = vst [vmem:[#allocation67_spill] sm:$0xff] %v7622_v35 }
 0x280   : > { %1306 = vrot.lane.b32.xlu0 %v7363_v15, %s6787_s11  ;;  %1300 = vrot.lane.b32.xlu1 %v7327_v0, %s6787_s11 }
 0x282   : > { %v7631_v34 = vpop.permute.xlu0 %1194  ;;  %v1479_v19 = vpop.permute.xlu1 %1478 }
 0x283   : > { %v1258_v26 = vsel %vm421_vm6, %v7631_v34, %v1215_v56  ;;  %v1493_v35 = vsel %vm589_vm3, %v7587_v39, %v1479_v19  ;;  %v1494_v15 = vsel %vm589_vm3, %v1479_v19, %v7585_v47  ;;  %v1254_v56 = vsel %vm421_vm6, %v7557_v5, %v7525_v58 }
 0x284   : > { %v1272_v0 = vmul.bf16 %v1258_v26, %v7145_v11  ;;  %v1536_v24 = vmul.bf16 %v1493_v35, %v7049_v36  ;;  %1294 = vrot.lane.b32.xlu0 %v7287_v12, %s6787_s11  ;;  %1288 = vrot.lane.b32.xlu1 %v7251_v25, %s6787_s11  ;;  %v1537_v40 = vmul.bf16 %v1494_v15, %v7029_v10  ;;  %v10111_v12 = vld [vmem:[#allocation54_spill] sm:$0xff]  ;;  %s6797_s11 = smov 121  }
 0x285   : > { %v1269_v39 = vmul.bf16 %v1226_v30, %v7136_v49  ;;  %v1223_v26 = vsel %vm421_vm6, %v7449_v29, %v7475_v33  ;;  %v1490_v35 = vsel %vm589_vm3, %v7527_v14, %v1471_v23  ;;  %v1533_v15 = vmul.bf16 %v1491_v3, %v7029_v10 }
 0x286   : > { %v7657_v19 = vpop.permute.xlu0 %1568  ;;  %1942 = vmatpush1.bf16.msra.mxu0 %v1272_v0  ;;  %2014 = vmatprep.subr.bf16.mxu1 %v1537_v40  ;;  %v7659_v25 = vpop.permute.xlu1 %1558  ;;  %v1488_v58 = vsel %vm589_vm3, %v7483_v43, %v7457_v2  ;;  %v1268_v30 = vmul.bf16 %v1254_v56, %v7145_v11  ;;  %v1250_v23 = vsel %vm421_vm6, %v7489_v37, %v7449_v29 }
 0x287   : > { %1943 = vmatprep.subr.bf16.mxu0 %v1269_v39  ;;  %2015 = vmatpush1.bf16.msra.mxu1 %v1536_v24  ;;  %v1532_v40 = vmul.bf16 %v1490_v35, %v7049_v36  ;;  %v1265_v3 = vmul.bf16 %v1223_v26, %v7136_v49  ;;  %v1220_v39 = vsel %vm421_vm6, %v7393_v54, %v7419_v6 }
 0x288   : > { %1658 = vrot.lane.b32.xlu0 %v7387_v53, %s6783_s24  ;;  %1650 = vrot.lane.b32.xlu1 %v7343_v17, %s6783_s24  ;;  %v1487_v24 = vsel %vm589_vm3, %v7459_v1, %v7483_v43  ;;  %v1529_v29 = vmul.bf16 %v1488_v58, %v7029_v10  ;;  %v1485_v26 = vsel %vm589_vm3, %v7427_v44, %v7401_v52 }
 0x289   : > { %2016 = vmatprep.subr.bf16.mxu1 %v1533_v15  ;;  %v1264_v35 = vmul.bf16 %v1250_v23, %v7145_v11  ;;  %v1246_v43 = vsel %vm421_vm6, %v7425_v21, %v7393_v54  ;;  %v1528_v15 = vmul.bf16 %v1487_v24, %v7049_v36  ;;  %v1261_v58 = vmul.bf16 %v1220_v39, %v7136_v49 }
 0x28a   : > { %v7681_v0 = vpop.permute.xlu0 %1296  ;;  %1944 = vmatpush1.bf16.msra.mxu0 %v1268_v30  ;;  %v7683_v56 = vpop.permute.xlu1 %1128  ;;  %v1484_v30 = vsel %vm589_vm3, %v7395_v57, %v7427_v44  ;;  %v1525_v54 = vmul.bf16 %v1485_v26, %v7029_v10  ;;  %v1260_v24 = vmul.bf16 %v1246_v43, %v7145_v11  ;;  %v1138_v39 = vsel %vm357_vm7, %v7535_v13, %v7563_v28 }
 0x28b   : > { %1945 = vmatprep.subr.bf16.mxu0 %v1265_v3  ;;  %2017 = vmatpush1.bf16.msra.mxu1 %v1532_v40  ;;  %v1141_v23 = vsel %vm357_vm7, %v7593_v63, %v7683_v56  ;;  %v1524_v49 = vmul.bf16 %v1484_v30, %v7049_v36  ;;  %v1166_v26 = vsel %vm357_vm7, %v7565_v62, %v7535_v13 }
 0x28c   : > { %1642 = vrot.lane.b32.xlu0 %v7307_v41, %s6783_s24  ;;  %1634 = vrot.lane.b32.xlu1 %v7267_v48, %s6783_s24  ;;  %v1185_v44 = vmul.bf16 %v1141_v23, %v7170_v32  ;;  %v1162_v13 = vsel %vm357_vm7, %v7508_v51, %v7465_v31 }
 0x28d   : > { %2018 = vmatprep.subr.bf16.mxu1 %v1529_v29 }
 0x28e   : > { %v7705_v40 = vpop.permute.xlu0 %1280  ;;  %1946 = vmatpush1.bf16.msra.mxu0 %v1264_v35  ;;  %v7707_v3 = vpop.permute.xlu1 %1556  ;;  %v1181_v35 = vmul.bf16 %v1138_v39, %v7170_v32 }
 0x28f   : > { %1947 = vmatprep.subr.bf16.mxu0 %v1261_v58  ;;  %2019 = vmatpush1.bf16.msra.mxu1 %v1528_v15  ;;  %v1180_v58 = vmul.bf16 %v1166_v26, %v7179_v45  ;;  %v10100_v26 = vld [vmem:[#allocation64_spill] sm:$0xff] }
 0x290   : > { %1570 = vrot.lane.b32.xlu0 %v7387_v53, %s6784_s25  ;;  %1746 = vrot.lane.b32.xlu1 %v7387_v53, %s6790_s18  ;;  %v10118_v53 = vld [vmem:[#allocation43_spill] sm:$0xff] }
 0x291   : > { %2020 = vmatprep.subr.bf16.mxu1 %v1525_v54  ;;  %v1176_v54 = vmul.bf16 %v1162_v13, %v7179_v45 }
 0x292   : > { %v7720_v29 = vpop.permute.xlu0 %1094  ;;  %1948 = vmatpush1.bf16.msra.mxu0 %v1260_v24  ;;  %v7722_v10 = vpop.permute.xlu1 %1292 }
 0x293   : > { %v1170_v11 = vsel %vm357_vm7, %v7720_v29, %v7593_v63  ;;  %1949 = vmatprep.subr.bf16.mxu0 %v1185_v44  ;;  %2021 = vmatpush1.bf16.msra.mxu1 %v1524_v49  ;;  %v1135_v63 = vsel %vm357_vm7, %v7465_v31, %v7491_v9  ;;  %v1158_v31 = vsel %vm357_vm7, %v7435_v16, %v7403_v8 }
 0x294   : > { %v1184_v36 = vmul.bf16 %v1170_v11, %v7179_v45  ;;  %1562 = vrot.lane.b32.xlu0 %v7343_v17, %s6784_s25  ;;  %1738 = vrot.lane.b32.xlu1 %v7343_v17, %s6790_s18  ;;  %v1172_v44 = vmul.bf16 %v1158_v31, %v7179_v45  ;;  %v10117_v17 = vld [vmem:[#allocation45_spill] sm:$0xff] }
 0x295   : > { %2022 = vmatprep.subr.bf16.mxu1 %v7373_v22  ;;  %v1177_v22 = vmul.bf16 %v1135_v63, %v7170_v32  ;;  %v10101_v63 = vld [vmem:[#allocation33_spill] sm:$0xff] }
 0x296   : > { %v7740_v43 = vpop.permute.xlu0 %1560  ;;  %1950 = vmatpush1.bf16.msra.mxu0 %v1184_v36  ;;  %v7742_v15 = vpop.permute.xlu1 %1550 }
 0x297   : > { %10097 = vst [vmem:[#allocation68_spill] sm:$0xff] %v7740_v43  ;;  %1951 = vmatprep.subr.bf16.mxu0 %v1181_v35  ;;  %2023 = vmatpush1.bf16.msra.mxu1 %v7357_v60  ;;  %v1132_v60 = vsel %vm357_vm7, %v7403_v8, %v7433_v27  ;;  %v10098_v8 = vld [vmem:[#allocation60_spill] sm:$0xff] }
 0x298   : > { %1554 = vrot.lane.b32.xlu0 %v7307_v41, %s6784_s25  ;;  %1730 = vrot.lane.b32.xlu1 %v7307_v41, %s6790_s18  ;;  %v1667_v39 = vsel %vm721_vm1, %v10098_v8, %v7549_v38  ;;  %v10107_v38 = vld [vmem:[#allocation49_spill] sm:$0xff]  ;;  %v10114_v41 = vld [vmem:[#allocation48_spill] sm:$0xff] }
 0x299   : > { %2024 = vmatprep.subr.bf16.mxu1 %v7337_v20  ;;  %v1173_v20 = vmul.bf16 %v1132_v60, %v7170_v32  ;;  %v1402_v32 = vsel %vm537_vm4, %v7541_v50, %v7573_v7 }
 0x29a   : > { %v7758_v30 = vpop.permute.xlu0 %1290  ;;  %1952 = vmatpush1.bf16.msra.mxu0 %v1180_v58  ;;  %v7760_v23 = vpop.permute.xlu1 %1392  ;;  %v10102_v58 = vld [vmem:[#allocation17_spill] sm:$0xff] }
 0x29b   : > { %1953 = vmatprep.subr.bf16.mxu0 %v1177_v22  ;;  %2025 = vmatpush1.bf16.msra.mxu1 %v7321_v55  ;;  %v1405_v55 = vsel %vm537_vm4, %v7601_v59, %v7760_v23  ;;  %v10103_v22 = vld [vmem:[#allocation7_spill] sm:$0xff] }
 0x29c   : > { %1546 = vrot.lane.b32.xlu0 %v7267_v48, %s6784_s25  ;;  %1722 = vrot.lane.b32.xlu1 %v7267_v48, %s6790_s18  ;;  %s10030_s25 = smov 120   ;;  %s10028_s18 = smov 119  }
 0x29d   : > { %2026 = vmatprep.subr.bf16.mxu1 %v7297_v18  ;;  %v1449_v18 = vmul.bf16 %v1405_v55, %v7063_v46 }
 0x29e   : > { %v7776_v24 = vpop.permute.xlu0 %1278  ;;  %1954 = vmatpush1.bf16.msra.mxu0 %v1176_v54  ;;  %v7778_v49 = vpop.permute.xlu1 %1548  ;;  %v10104_v54 = vld [vmem:[#allocation5_spill] sm:$0xff] }
 0x29f   : > { %1955 = vmatprep.subr.bf16.mxu0 %v1173_v20  ;;  %2027 = vmatpush1.bf16.msra.mxu1 %v7281_v61  ;;  %v10099_v61 = vld [vmem:[#allocation62_spill] sm:$0xff]  ;;  %v10105_v20 = vld [vmem:[#allocation59_spill] sm:$0xff] }
 0x2a0   : > { %2028 = vmatprep.subr.bf16.mxu1 %v7261_v42  ;;  %v1430_v55 = vsel %vm537_vm4, %v10105_v20, %v7541_v50  ;;  %v10110_v50 = vld [vmem:[#allocation55_spill] sm:$0xff] }
 0x2a2   : > { %v7790_v11 = vpop.permute.xlu0 %1370  ;;  %1956 = vmatpush1.bf16.msra.mxu0 %v1172_v44  ;;  %v1655_v36 = vpop.permute.xlu1 %1654  ;;  %v10106_v44 = vld [vmem:[#allocation53_spill] sm:$0xff] }
 0x2a3   : > { %v1434_v45 = vsel %vm537_vm4, %v7790_v11, %v7601_v59  ;;  %v1669_v42 = vsel %vm721_vm1, %v10099_v61, %v1655_v36  ;;  %v1670_v35 = vsel %vm721_vm1, %v1655_v36, %v10100_v26  ;;  %1957 = vmatprep.subr.bf16.mxu0 %v1449_v18  ;;  %2029 = vmatpush1.bf16.msra.mxu1 %v10101_v63  ;;  %v10108_v18 = vld [vmem:[#allocation57_spill] sm:$0xff]  ;;  %v10113_v61 = vld [vmem:[#allocation42_spill] sm:$0xff] }
 0x2a4   : > { %v1448_v13 = vmul.bf16 %v1434_v45, %v10102_v58  ;;  %v1712_v60 = vmul.bf16 %v1669_v42, %v10103_v22  ;;  %v1713_v31 = vmul.bf16 %v1670_v35, %v10104_v54  ;;  %v1445_v59 = vmul.bf16 %v1402_v32, %v7063_v46  ;;  %v10109_v35 = vld [vmem:[#allocation50_spill] sm:$0xff] }
 0x2a5   : > { %v1399_v48 = vsel %vm537_vm4, %v10107_v38, %v10106_v44  ;;  %v1666_v36 = vsel %vm721_vm1, %v10108_v18, %v10098_v8  ;;  %v1709_v42 = vmul.bf16 %v1667_v39, %v10104_v54  ;;  %v1664_v32 = vsel %vm721_vm1, %v10110_v50, %v10109_v35  ;;  %v10112_v18 = vld [vmem:[#allocation46_spill] sm:$0xff]  ;;  %v10116_v35 = vld [vmem:[#allocation47_spill] sm:$0xff] }
 0x2a6   : > { %v7813_v63 = vpop.permute.xlu0 %1552  ;;  %1958 = vmatpush2.bf16.msra.mxu0 %v1448_v13  ;;  %2030 = vmatprep.subr.bf16.mxu1 %v1713_v31  ;;  %v7815_v45 = vpop.permute.xlu1 %1286  ;;  %v1444_v26 = vmul.bf16 %v1430_v55, %v10102_v58  ;;  %v1426_v8 = vsel %vm537_vm4, %v10111_v12, %v10107_v38  ;;  %v1708_v13 = vmul.bf16 %v1666_v36, %v10103_v22  ;;  %v10115_v38 = vld [vmem:[#allocation44_spill] sm:$0xff] }
 0x2a7   : > { %1959 = vmatprep.subr.bf16.mxu0 %v1445_v59  ;;  %2031 = vmatpush2.bf16.msra.mxu1 %v1712_v60  ;;  %v1441_v31 = vmul.bf16 %v1399_v48, %v7063_v46  ;;  %v1396_v39 = vsel %vm537_vm4, %v10113_v61, %v10112_v18  ;;  %v1663_v59 = vsel %vm721_vm1, %v10114_v41, %v10110_v50 }
 0x2a8   : > { %2032 = vmatprep.subr.bf16.mxu1 %v1709_v42  ;;  %v1705_v42 = vmul.bf16 %v1664_v32, %v10104_v54  ;;  %v1661_v36 = vsel %vm721_vm1, %v10116_v35, %v10115_v38  ;;  %v1440_v48 = vmul.bf16 %v1426_v8, %v10102_v58  ;;  %v1422_v50 = vsel %vm537_vm4, %v10117_v17, %v10113_v61  ;;  %v10125_v38 = vld [vmem:[#allocation9_spill] sm:$0xff] }
 0x2a9   : > { %v1704_v41 = vmul.bf16 %v1663_v59, %v10103_v22  ;;  %v1660_v32 = vsel %vm721_vm1, %v10118_v53, %v10116_v35  ;;  %v1701_v8 = vmul.bf16 %v1661_v36, %v10104_v54  ;;  %v1436_v61 = vmul.bf16 %v1422_v50, %v10102_v58  ;;  %v10121_v59 = vld [vmem:[#allocation67_spill] sm:$0xff]  ;;  %v10122_v58 = vld [vmem:[#allocation65_spill] sm:$0xff] }
 0x2aa   : > { %v7833_v60 = vpop.permute.xlu0 %1284  ;;  %1960 = vmatpush2.bf16.msra.mxu0 %v1444_v26  ;;  %v7835_v55 = vpop.permute.xlu1 %1542  ;;  %v1437_v26 = vmul.bf16 %v1396_v39, %v7063_v46  ;;  %v10120_v46 = vld [vmem:[#allocation20_spill] sm:$0xff]  ;;  %v1700_v35 = vmul.bf16 %v1660_v32, %v10103_v22  ;;  %v1579_v54 = vsel %vm657_vm2, %v7659_v25, %v7740_v43  ;;  %v10123_v32 = vld [vmem:[#allocation22_spill] sm:$0xff] }
 0x2ab   : > { %1961 = vmatprep.subr.bf16.mxu0 %v1441_v31  ;;  %2033 = vmatpush2.bf16.msra.mxu1 %v1708_v13  ;;  %v10119_v13 = vld [vmem:[#allocation66_spill] sm:$0xff] }
 0x2ac   : > { %2034 = vmatprep.subr.bf16.mxu1 %v1705_v42 }
 0x2ae   : > { %v7850_v18 = vpop.permute.xlu0 %1276  ;;  %1962 = vmatpush2.bf16.msra.mxu0 %v1440_v48  ;;  %v7852_v31 = vpop.permute.xlu1 %1304  ;;  %v1314_v48 = vsel %vm473_vm5, %v7681_v0, %v10121_v59 }
 0x2af   : > { %v1317_v42 = vsel %vm473_vm5, %v10119_v13, %v7852_v31  ;;  %1963 = vmatprep.subr.bf16.mxu0 %v1437_v26  ;;  %2035 = vmatpush2.bf16.msra.mxu1 %v1704_v41 }
 0x2b0   : > { %2036 = vmatprep.subr.bf16.mxu1 %v1701_v8  ;;  %v1361_v39 = vmul.bf16 %v1317_v42, %v10120_v46  ;;  %v10124_v42 = vld [vmem:[#allocation11_spill] sm:$0xff] }
 0x2b2   : > { %v7867_v36 = vpop.permute.xlu0 %1282  ;;  %1964 = vmatpush2.bf16.msra.mxu0 %v1436_v61  ;;  %v1567_v26 = vpop.permute.xlu1 %1566  ;;  %v1342_v61 = vsel %vm473_vm5, %v7705_v40, %v7681_v0 }
 0x2b3   : > { %v1346_v41 = vsel %vm473_vm5, %v7867_v36, %v10119_v13  ;;  %v1581_v50 = vsel %vm657_vm2, %v10122_v58, %v1567_v26  ;;  %v1582_v22 = vsel %vm657_vm2, %v1567_v26, %v7657_v19  ;;  %1965 = vmatprep.subr.bf16.mxu0 %v1361_v39  ;;  %2037 = vmatpush2.bf16.msra.mxu1 %v1700_v35 }
 0x2b4   : > { %v1360_v8 = vmul.bf16 %v1346_v41, %v10123_v32  ;;  %v1624_v43 = vmul.bf16 %v1581_v50, %v10124_v42  ;;  %v1625_v53 = vmul.bf16 %v1582_v22, %v10125_v38  ;;  %v1357_v13 = vmul.bf16 %v1314_v48, %v10120_v46 }
 0x2b5   : > { %v1311_v58 = vsel %vm473_vm5, %v7758_v30, %v7722_v10  ;;  %v1621_v35 = vmul.bf16 %v1579_v54, %v10125_v38  ;;  %v1578_v26 = vsel %vm657_vm2, %v7707_v3, %v7659_v25  ;;  %v1356_v0 = vmul.bf16 %v1342_v61, %v10123_v32 }
 0x2b6   : > { %v7886_v59 = vpop.permute.xlu0 %1544  ;;  %1966 = vmatpush2.bf16.msra.mxu0 %v1360_v8  ;;  %2038 = vmatprep.subr.bf16.mxu1 %v1625_v53  ;;  %v7888_v39 = vpop.permute.xlu1 %1540  ;;  %v1576_v48 = vsel %vm657_vm2, %v7742_v15, %v7813_v63  ;;  %v1338_v53 = vsel %vm473_vm5, %v7776_v24, %v7758_v30  ;;  %v1353_v41 = vmul.bf16 %v1311_v58, %v10120_v46 }
 0x2b7   : > { %10126 = vst [vmem:[#allocation60_spill] sm:$0xff] %v7886_v59  ;;  %1967 = vmatprep.subr.bf16.mxu0 %v1357_v13  ;;  %2039 = vmatpush2.bf16.msra.mxu1 %v1624_v43  ;;  %v1620_v54 = vmul.bf16 %v1578_v26, %v10124_v42  ;;  %v1308_v25 = vsel %vm473_vm5, %v7833_v60, %v7815_v45 }
 0x2b8   : > { %2040 = vmatprep.subr.bf16.mxu1 %v1621_v35  ;;  %v1575_v22 = vsel %vm657_vm2, %v7778_v49, %v7742_v15  ;;  %v1617_v8 = vmul.bf16 %v1576_v48, %v10125_v38  ;;  %v1352_v30 = vmul.bf16 %v1338_v53, %v10123_v32  ;;  %v1573_v58 = vsel %vm657_vm2, %v7835_v55, %v7886_v59 }
 0x2b9   : > { %v1334_v61 = vsel %vm473_vm5, %v7850_v18, %v7833_v60  ;;  %v1349_v13 = vmul.bf16 %v1308_v25, %v10120_v46  ;;  %v1616_v35 = vmul.bf16 %v1575_v22, %v10124_v42  ;;  %v1613_v48 = vmul.bf16 %v1573_v58, %v10125_v38  ;;  %v7929_v46 = vld [vmem:[%s9895_s2] ss:$20 sps:$4 sm:$0xff]   ;;  %v10128_v25 = vld [vmem:[#allocation25_spill] sm:$0xff] }
 0x2ba   : > { %v1219_v43 = vpop.permute.xlu0 %1218  ;;  %1968 = vmatpush2.bf16.msra.mxu0 %v1356_v0  ;;  %v1213_v50 = vpop.permute.xlu1 %1212  ;;  %v1572_v0 = vsel %vm657_vm2, %v7888_v39, %v7835_v55  ;;  %v1348_v53 = vmul.bf16 %v1334_v61, %v10123_v32  ;;  %v7939_v38 = vld [vmem:[%s9895_s2 + $0x2c] ss:$20 sps:$4 sm:$0xff]   ;;  %v7955_v58 = vld [vmem:[%s9895_s2 + $0x34] ss:$20 sps:$4 sm:$0xff]  }
 0x2bb   : > { %1969 = vmatprep.subr.bf16.mxu0 %v1353_v41  ;;  %2041 = vmatpush2.bf16.msra.mxu1 %v1620_v54  ;;  %v1231_v60 = vsel %vm421_vm6, %v1219_v43, %v7631_v34  ;;  %v1612_v41 = vmul.bf16 %v1572_v0, %v10124_v42  ;;  %v10127_v34 = vld [vmem:[#allocation63_spill] sm:$0xff]  ;;  %v10130_v42 = vmov 1065369472   ;;  %10131 = vst [vmem:[#allocation17_spill] sm:$0xff] %v7955_v58 }
 0x2bc   : > { %2042 = vmatprep.subr.bf16.mxu1 %v1617_v8  ;;  %v1230_v32 = vsel %vm421_vm6, %v10127_v34, %v1219_v43  ;;  %v1275_v22 = vmul.bf16 %v1231_v60, %v10128_v25  ;;  %v7947_v8 = vld [vmem:[%s9895_s2 + $0x8] ss:$20 sps:$4 sm:$0xff]   ;;  %v10132_v43 = vld [vmem:[#allocation26_spill] sm:$0xff] }
 0x2bd   : > { %10129 = vst [vmem:[#allocation33_spill] sm:$0xff] %v7947_v8  ;;  %v1274_v61 = vmul.bf16 %v1230_v32, %v10132_v43  ;;  %v7989_v32 = vld [vmem:[%s9895_s2 + $0x30] ss:$20 sps:$4 sm:$0xff]  }
 0x2be   : > { %v1207_v15 = vpop.permute.xlu0 %1206  ;;  %1970 = vmatpush2.bf16.msra.mxu0 %v1352_v30  ;;  %v1201_v26 = vpop.permute.xlu1 %1200  ;;  %v1228_v30 = vsel %vm421_vm6, %v1213_v50, %v7557_v5  ;;  %v1227_v5 = vsel %vm421_vm6, %v7551_v4, %v1213_v50  ;;  %v7981_v50 = vld [vmem:[%s9895_s2 + $0x54] ss:$20 sps:$4 sm:$0xff]   ;;  %10133 = vst [vmem:[#allocation7_spill] sm:$0xff] %v7989_v32 }
 0x2bf   : > { %1971 = vmatprep.subr.bf16.mxu0 %v1349_v13  ;;  %2043 = vmatpush2.bf16.msra.mxu1 %v1616_v35  ;;  %v1271_v0 = vmul.bf16 %v1228_v30, %v10128_v25  ;;  %v1270_v60 = vmul.bf16 %v1227_v5, %v10132_v43  ;;  %v7996_v30 = vld [vmem:[%s9895_s2 + $0x5c] ss:$20 sps:$4 sm:$0xff]   ;;  %v1221_v5 = vsel %vm421_vm6, %v7419_v6, %v1201_v26 }
 0x2c0   : > { %2044 = vmatprep.subr.bf16.mxu1 %v1613_v48  ;;  %v1225_v48 = vsel %vm421_vm6, %v1207_v15, %v7489_v37  ;;  %v1224_v37 = vsel %vm421_vm6, %v7475_v33, %v1207_v15  ;;  %10134 = vst [vmem:[#allocation5_spill] sm:$0xff] %v7996_v30 }
 0x2c1   : > { %v1267_v34 = vmul.bf16 %v1225_v48, %v10128_v25  ;;  %v1266_v33 = vmul.bf16 %v1224_v37, %v10132_v43  ;;  %v8011_v48 = vld [vmem:[%s9895_s2 + $0x50] ss:$20 sps:$4 sm:$0xff]  }
 0x2c2   : > { %v7932_v54 = vpop.permute.xlu0 %1740  ;;  %1972 = vmatpush2.bf16.msra.mxu0 %v1348_v53  ;;  %v7934_v55 = vpop.permute.xlu1 %1744  ;;  %v7971_v53 = vld [vmem:[%s9895_s2 + $0x28] ss:$20 sps:$4 sm:$0xff]  }
 0x2c3   : > { %2093 = vmatprep.subr.bf16.mxu0 %v10130_v42  ;;  %2045 = vmatpush2.bf16.msra.mxu1 %v1612_v41 }
 0x2c4   : > { %2160 = vmatprep.subr.bf16.mxu1 %v1275_v22  ;;  %v1222_v22 = vsel %vm421_vm6, %v1201_v26, %v7425_v21 }
 0x2c5   : > { %1974 = vmatmul.mubr.bf16.vlgmr.msra.gmra.mxu0 %v7929_v46  ;;  %v1263_v21 = vmul.bf16 %v1222_v22, %v10128_v25  ;;  %v10135_v22 = vld [vmem:[#allocation27_spill] sm:$0xff] }
 0x2c6   : > { %v1735_v13 = vpop.permute.xlu0 %1734  ;;  %v1131_v35 = vpop.permute.xlu1 %1130  ;;  %1983 = vmatprep.mubr.bf16.mxu0 %v7939_v38  ;;  %2094 = vmatpush1.bf16.msra.mxu0 %v10130_v42 }
 0x2c7   : > { %2047 = vmatmul.mubr.bf16.vlgmr.msra.gmra.mxu1 %v7947_v8  ;;  %v1142_v6 = vsel %vm357_vm7, %v7683_v56, %v1131_v35  ;;  %v8033_v56 = vld [vmem:[%s9895_s2 + $0x58] ss:$20 sps:$4 sm:$0xff]  }
 0x2c8   : > { %2161 = vmatpush1.bf16.msra.mxu1 %v1274_v61  ;;  %2056 = vmatprep.mubr.bf16.mxu1 %v7955_v58 }
 0x2c9   : > { %2162 = vmatprep.subr.bf16.mxu1 %v1271_v0  ;;  %v1143_v0 = vsel %vm357_vm7, %v1131_v35, %v7720_v29  ;;  %v8021_v29 = vld [vmem:[%s9895_s2 + $0x7c] ss:$20 sps:$4 sm:$0xff]  }
 0x2ca   : > { %v7974_v41 = vpop.permute.xlu0 %1732  ;;  %v7976_v4 = vpop.permute.xlu1 %1736 }
 0x2cb   : > { %v1755_v25 = vsel %vm773_vm8, %v1735_v13, %v7976_v4  ;;  %v1754_v8 = vsel %vm773_vm8, %v7974_v41, %v1735_v13 }
 0x2cc   : > { %2163 = vmatpush1.bf16.msra.mxu1 %v1270_v60  ;;  %v1262_v60 = vmul.bf16 %v1221_v5, %v10132_v43  ;;  %v10136_v5 = vld [vmem:[#allocation30_spill] sm:$0xff] }
 0x2cd   : > { %2164 = vmatprep.subr.bf16.mxu1 %v1267_v34  ;;  %1984 = vmatmul.mubr.bf16.gmra.mxu0 %v7971_v53 }
 0x2ce   : > { %v1727_v15 = vpop.permute.xlu0 %1726  ;;  %v1125_v61 = vpop.permute.xlu1 %1124  ;;  %1993 = vmatprep.mubr.bf16.mxu0 %v7981_v50 }
 0x2cf   : > { %2057 = vmatmul.mubr.bf16.gmra.mxu1 %v7989_v32  ;;  %v1140_v35 = vsel %vm357_vm7, %v1125_v61, %v7565_v62 }
 0x2d0   : > { %2165 = vmatpush1.bf16.msra.mxu1 %v1266_v33  ;;  %2066 = vmatprep.mubr.bf16.mxu1 %v7996_v30  ;;  %v1187_v33 = vmul.bf16 %v1143_v0, %v10135_v22  ;;  %v10137_v30 = vld [vmem:[#allocation29_spill] sm:$0xff]  ;;  %v8043_v0 = vld [vmem:[%s9895_s2 + $0x84] ss:$20 sps:$4 sm:$0xff]  }
 0x2d1   : > { %2166 = vmatprep.subr.bf16.mxu1 %v1263_v21 }
 0x2d2   : > { %v1743_v26 = vpop.permute.xlu0 %1742  ;;  %v8016_v37 = vpop.permute.xlu1 %1728 }
 0x2d3   : > { %v1757_v34 = vsel %vm773_vm8, %v7932_v54, %v1743_v26  ;;  %v1758_v43 = vsel %vm773_vm8, %v1743_v26, %v7934_v55  ;;  %v10138_v26 = vld [vmem:[#allocation28_spill] sm:$0xff] }
 0x2d4   : > { %v1800_v21 = vmul.bf16 %v1757_v34, %v10136_v5  ;;  %2167 = vmatpush1.bf16.msra.mxu1 %v1262_v60  ;;  %v1801_v32 = vmul.bf16 %v1758_v43, %v10137_v30  ;;  %v1186_v58 = vmul.bf16 %v1142_v6, %v10138_v26  ;;  %v1797_v60 = vmul.bf16 %v1755_v25, %v10137_v30 }
 0x2d5   : > { %2168 = vmatprep.subr.bf16.mxu1 %v1187_v33  ;;  %1994 = vmatmul.mubr.bf16.gmra.mxu0 %v8011_v48  ;;  %v1139_v34 = vsel %vm357_vm7, %v7563_v28, %v1125_v61  ;;  %v1752_v43 = vsel %vm773_vm8, %v1727_v15, %v8016_v37  ;;  %v1183_v6 = vmul.bf16 %v1140_v35, %v10135_v22  ;;  %v8064_v28 = vld [vmem:[%s9895_s2 + $0x78] ss:$20 sps:$4 sm:$0xff]  }
 0x2d6   : > { %v8048_v59 = vpop.permute.xlu0 %1724  ;;  %2095 = vmatprep.subr.bf16.mxu0 %v1801_v32  ;;  %v1119_v62 = vpop.permute.xlu1 %1118  ;;  %2003 = vmatprep.mubr.bf16.mxu0 %v8021_v29  ;;  %v1796_v32 = vmul.bf16 %v1754_v8, %v10136_v5  ;;  %v1182_v61 = vmul.bf16 %v1139_v34, %v10138_v26 }
 0x2d7   : > { %2067 = vmatmul.mubr.bf16.gmra.mxu1 %v8033_v56  ;;  %2096 = vmatpush1.bf16.msra.mxu0 %v1800_v21  ;;  %v1137_v13 = vsel %vm357_vm7, %v1119_v62, %v7508_v51  ;;  %v1751_v25 = vsel %vm773_vm8, %v8048_v59, %v1727_v15  ;;  %v1793_v51 = vmul.bf16 %v1752_v43, %v10137_v30 }
 0x2d8   : > { %2169 = vmatpush1.bf16.msra.mxu1 %v1186_v58  ;;  %2097 = vmatprep.subr.bf16.mxu0 %v1797_v60  ;;  %v1136_v8 = vsel %vm357_vm7, %v7491_v9, %v1119_v62  ;;  %v1179_v21 = vmul.bf16 %v1137_v13, %v10135_v22  ;;  %v8081_v60 = vld [vmem:[%s9895_s2 + $0x80] ss:$20 sps:$4 sm:$0xff]   ;;  %v1792_v15 = vmul.bf16 %v1751_v25, %v10136_v5 }
 0x2d9   : > { %2170 = vmatprep.subr.bf16.mxu1 %v1183_v6  ;;  %2076 = vmatprep.mubr.bf16.mxu1 %v8043_v0  ;;  %v1178_v9 = vmul.bf16 %v1136_v8, %v10138_v26  ;;  %v10004_v6 = vmov 0   ;;  %v10139_v8 = vld [vmem:[#allocation51_spill] sm:$0xff] }
 0x2da   : > { %v1719_v33 = vpop.permute.xlu0 %1718  ;;  %v8070_v35 = vpop.permute.xlu1 %1720 }
 0x2db   : > { %v1749_v58 = vsel %vm773_vm8, %v1719_v33, %v8070_v35  ;;  %2098 = vmatpush1.bf16.msra.mxu0 %v1796_v32 }
 0x2dc   : > { %2171 = vmatpush1.bf16.msra.mxu1 %v1182_v61  ;;  %2099 = vmatprep.subr.bf16.mxu0 %v1793_v51  ;;  %v1789_v43 = vmul.bf16 %v1749_v58, %v10137_v30 }
 0x2dd   : > { %2172 = vmatprep.subr.bf16.mxu1 %v1179_v21  ;;  %2004 = vmatmul.mubr.bf16.gmra.mxu0 %v8064_v28 }
 0x2de   : > { %v8086_v62 = vpop.permute.xlu0 %1716  ;;  %v1113_v34 = vpop.permute.xlu1 %1112  ;;  %2119 = vmatprep.mubr.bf16.mxu0 %v10004_v6 }
 0x2df   : > { %v1748_v13 = vsel %vm773_vm8, %v8086_v62, %v1719_v33  ;;  %2077 = vmatmul.mubr.bf16.gmra.mxu1 %v8081_v60  ;;  %v1133_v32 = vsel %vm357_vm7, %v7433_v27, %v1113_v34  ;;  %v1134_v61 = vsel %vm357_vm7, %v1113_v34, %v7435_v16  ;;  %2100 = vmatpush1.bf16.msra.mxu0 %v1792_v15  ;;  %v8104_v27 = vld [vmem:[%s9895_s2 + $0x10] ss:$20 sps:$4 sm:$0xff]   ;;  %v10142_v34 = vld [vmem:[#allocation19_spill] sm:$0xff] }
 0x2e0   : > { %v1788_v25 = vmul.bf16 %v1748_v13, %v10136_v5  ;;  %v1174_v51 = vmul.bf16 %v1133_v32, %v10138_v26  ;;  %2173 = vmatpush1.bf16.msra.mxu1 %v1178_v9  ;;  %2101 = vmatprep.subr.bf16.mxu0 %v1789_v43  ;;  %v1175_v30 = vmul.bf16 %v1134_v61, %v10135_v22  ;;  %v10140_v5 = vld [vmem:[#allocation61_spill] sm:$0xff]  ;;  %v10141_v15 = vld [vmem:[#allocation16_spill] sm:$0xff]  ;;  %v10143_v13 = vld [vmem:[#allocation18_spill] sm:$0xff] }
 0x2e1   : > { %2192 = vmatprep.mubr.bf16.mxu1 %v10139_v8  ;;  %v10144_v61 = vld [vmem:[#allocation15_spill] sm:$0xff] }
 0x2e2   : > { %v1483_v33 = vpop.permute.xlu0 %1482  ;;  %2174 = vmatprep.subr.bf16.mxu1 %v1175_v30  ;;  %v1395_v58 = vpop.permute.xlu1 %1394 }
 0x2e3   : > { %v1495_v16 = vsel %vm589_vm3, %v7585_v47, %v1483_v33  ;;  %v1522_v26 = vsel %vm589_vm3, %v1483_v33, %v10140_v5  ;;  %v1406_v22 = vsel %vm537_vm4, %v7760_v23, %v1395_v58  ;;  %v1407_v21 = vsel %vm537_vm4, %v1395_v58, %v7790_v11  ;;  %2102 = vmatpush1.bf16.msra.mxu0 %v1788_v25  ;;  %v10145_v23 = vld [vmem:[#allocation56_spill] sm:$0xff] }
 0x2e4   : > { %v1538_v9 = vmul.bf16 %v1495_v16, %v10141_v15  ;;  %v1450_v43 = vmul.bf16 %v1406_v22, %v10142_v34  ;;  %2175 = vmatpush1.bf16.msra.mxu1 %v1174_v51  ;;  %v1451_v32 = vmul.bf16 %v1407_v21, %v10143_v13  ;;  %v1539_v30 = vmul.bf16 %v1522_v26, %v10144_v61 }
 0x2e6   : > { %v1475_v47 = vpop.permute.xlu0 %1474  ;;  %5583 = vmatmul.mubr.msk.bf16.vlgmr.msra.gmra.mxu0 %vm1928_vm9, %v8104_v27  ;;  %2176 = vmatprep.subr.bf16.mxu1 %v1451_v32  ;;  %v1389_v8 = vpop.permute.xlu1 %1388 }
 0x2e7   : > { %v1492_v33 = vsel %vm589_vm3, %v10145_v23, %v1475_v47  ;;  %v1518_v11 = vsel %vm589_vm3, %v1475_v47, %v7527_v14  ;;  %2233 = vmatprep.subr.bf16.mxu0 %v1539_v30  ;;  %v1403_v25 = vsel %vm537_vm4, %v7573_v7, %v1389_v8  ;;  %v1404_v51 = vsel %vm537_vm4, %v1389_v8, %v10105_v20  ;;  %v8136_v7 = vld [vmem:[%s9895_s2 + $0x38] ss:$20 sps:$4 sm:$0xff]   ;;  %v10146_v23 = vld [vmem:[#allocation46_spill] sm:$0xff] }
 0x2e8   : > { %v1534_v58 = vmul.bf16 %v1492_v33, %v10141_v15  ;;  %v1446_v16 = vmul.bf16 %v1403_v25, %v10142_v34  ;;  %2177 = vmatpush2.bf16.msra.mxu1 %v1450_v43  ;;  %2234 = vmatpush1.bf16.msra.mxu0 %v1538_v9  ;;  %v1447_v5 = vmul.bf16 %v1404_v51, %v10143_v13 }
 0x2e9   : > { %v1535_v26 = vmul.bf16 %v1518_v11, %v10144_v61  ;;  %2129 = vmatprep.mubr.bf16.mxu0 %v10004_v6 }
 0x2ea   : > { %v1467_v14 = vpop.permute.xlu0 %1466  ;;  %2178 = vmatprep.subr.bf16.mxu1 %v1447_v5  ;;  %v1383_v22 = vpop.permute.xlu1 %1382  ;;  %v8168_v5 = vld [vmem:[%s9895_s2 + $0x60] ss:$20 sps:$4 sm:$0xff]  }
 0x2eb   : > { %v1489_v20 = vsel %vm589_vm3, %v7457_v2, %v1467_v14  ;;  %v1514_v21 = vsel %vm589_vm3, %v1467_v14, %v7459_v1  ;;  %2235 = vmatprep.subr.bf16.mxu0 %v1535_v26  ;;  %v1400_v9 = vsel %vm537_vm4, %v10106_v44, %v1383_v22  ;;  %v1401_v43 = vsel %vm537_vm4, %v1383_v22, %v10111_v12  ;;  %v10148_v26 = vld [vmem:[#allocation23_spill] sm:$0xff]  ;;  %v10149_v22 = vld [vmem:[#allocation41_spill] sm:$0xff] }
 0x2ec   : > { %v1530_v32 = vmul.bf16 %v1489_v20, %v10141_v15  ;;  %v1442_v30 = vmul.bf16 %v1400_v9, %v10142_v34  ;;  %2179 = vmatpush2.bf16.msra.mxu1 %v1446_v16  ;;  %2236 = vmatpush1.bf16.msra.mxu0 %v1534_v58  ;;  %v1443_v47 = vmul.bf16 %v1401_v43, %v10143_v13  ;;  %v10151_v43 = vld [vmem:[#allocation40_spill] sm:$0xff] }
 0x2ed   : > { %v1531_v2 = vmul.bf16 %v1514_v21, %v10144_v61  ;;  %v10150_v21 = vld [vmem:[#allocation67_spill] sm:$0xff] }
 0x2ee   : > { %v1459_v8 = vpop.permute.xlu0 %1458  ;;  %5584 = vmatmul.mubr.msk.bf16.gmra.mxu0 %vm1928_vm9, %v8136_v7  ;;  %2180 = vmatprep.subr.bf16.mxu1 %v1443_v47  ;;  %v1377_v1 = vpop.permute.xlu1 %1376 }
 0x2ef   : > { %v1486_v44 = vsel %vm589_vm3, %v7401_v52, %v1459_v8  ;;  %v1510_v12 = vsel %vm589_vm3, %v1459_v8, %v7395_v57  ;;  %2237 = vmatprep.subr.bf16.mxu0 %v1531_v2  ;;  %v1397_v33 = vsel %vm537_vm4, %v10146_v23, %v1377_v1  ;;  %v1398_v11 = vsel %vm537_vm4, %v1377_v1, %v10117_v17  ;;  %v8193_v2 = vld [vmem:[%s9895_s2 + $0x88] ss:$20 sps:$4 sm:$0xff]  }
 0x2f0   : > { %v1526_v25 = vmul.bf16 %v1486_v44, %v10141_v15  ;;  %v1438_v51 = vmul.bf16 %v1397_v33, %v10142_v34  ;;  %2181 = vmatpush2.bf16.msra.mxu1 %v1442_v30  ;;  %2238 = vmatpush1.bf16.msra.mxu0 %v1530_v32  ;;  %v1439_v58 = vmul.bf16 %v1398_v11, %v10143_v13  ;;  %v10147_v34 = vld [vmem:[#allocation24_spill] sm:$0xff]  ;;  %v10152_v32 = vld [vmem:[#allocation39_spill] sm:$0xff]  ;;  %v10154_v23 = vld [vmem:[#allocation37_spill] sm:$0xff] }
 0x2f1   : > { %v1527_v52 = vmul.bf16 %v1510_v12, %v10144_v61  ;;  %2139 = vmatprep.mubr.bf16.mxu0 %v10004_v6  ;;  %v10153_v12 = vld [vmem:[#allocation38_spill] sm:$0xff] }
 0x2f2   : > { %v1307_v57 = vpop.permute.xlu0 %1306  ;;  %2182 = vmatprep.subr.bf16.mxu1 %v1439_v58  ;;  %v1301_v16 = vpop.permute.xlu1 %1300 }
 0x2f3   : > { %v1318_v17 = vsel %vm473_vm5, %v7852_v31, %v1307_v57  ;;  %v1319_v15 = vsel %vm473_vm5, %v1307_v57, %v7867_v36  ;;  %2239 = vmatprep.subr.bf16.mxu0 %v1527_v52  ;;  %v1316_v61 = vsel %vm473_vm5, %v1301_v16, %v7705_v40  ;;  %v1315_v36 = vsel %vm473_vm5, %v10150_v21, %v1301_v16  ;;  %v10157_v52 = vld [vmem:[#allocation36_spill] sm:$0xff]  ;;  %v10158_v16 = vld [vmem:[#allocation35_spill] sm:$0xff] }
 0x2f4   : > { %v1362_v13 = vmul.bf16 %v1318_v17, %v10147_v34  ;;  %2183 = vmatpush2.bf16.msra.mxu1 %v1438_v51  ;;  %2240 = vmatpush1.bf16.msra.mxu0 %v1526_v25  ;;  %v1363_v14 = vmul.bf16 %v1319_v15, %v10148_v26  ;;  %v1359_v9 = vmul.bf16 %v1316_v61, %v10148_v26  ;;  %v10155_v51 = vld [vmem:[#allocation52_spill] sm:$0xff]  ;;  %v10160_v61 = vld [vmem:[#allocation6_spill] sm:$0xff] }
 0x2f5   : > { %2241 = vmatprep.subr.bf16.mxu0 %v10149_v22  ;;  %v1358_v30 = vmul.bf16 %v1315_v36, %v10147_v34  ;;  %v10163_v21 = vld [vmem:[#allocation8_spill] sm:$0xff] }
 0x2f6   : > { %v1295_v20 = vpop.permute.xlu0 %1294  ;;  %5585 = vmatmul.mubr.msk.bf16.gmra.mxu0 %vm1928_vm9, %v8168_v5  ;;  %2184 = vmatprep.subr.bf16.mxu1 %v1363_v14  ;;  %v1289_v31 = vpop.permute.xlu1 %1288  ;;  %v10161_v14 = vld [vmem:[#allocation57_spill] sm:$0xff] }
 0x2f7   : > { %2149 = vmatprep.mubr.bf16.mxu0 %v10004_v6  ;;  %v1313_v40 = vsel %vm473_vm5, %v1295_v20, %v7776_v24  ;;  %v1312_v8 = vsel %vm473_vm5, %v7722_v10, %v1295_v20  ;;  %v1310_v44 = vsel %vm473_vm5, %v1289_v31, %v7850_v18  ;;  %v1309_v10 = vsel %vm473_vm5, %v7815_v45, %v1289_v31  ;;  %v10156_v18 = vld [vmem:[#allocation62_spill] sm:$0xff] }
 0x2f8   : > { %2185 = vmatpush2.bf16.msra.mxu1 %v1362_v13  ;;  %2242 = vmatpush1.bf16.msra.mxu0 %v10151_v43  ;;  %v1355_v24 = vmul.bf16 %v1313_v40, %v10148_v26  ;;  %v1354_v33 = vmul.bf16 %v1312_v8, %v10147_v34  ;;  %v1351_v25 = vmul.bf16 %v1310_v44, %v10148_v26  ;;  %v10159_v13 = vld [vmem:[#allocation64_spill] sm:$0xff]  ;;  %v10162_v31 = vld [vmem:[#allocation34_spill] sm:$0xff] }
 0x2f9   : > { %2186 = vmatprep.subr.bf16.mxu1 %v1359_v9  ;;  %2243 = vmatprep.subr.bf16.mxu0 %v10152_v32  ;;  %v1350_v17 = vmul.bf16 %v1309_v10, %v10147_v34  ;;  %v10164_v9 = vld [vmem:[#allocation58_spill] sm:$0xff] }
 0x2fa   : > { %v1651_v47 = vpop.permute.xlu1 %1650  ;;  %v1659_v1 = vpop.permute.xlu0 %1658 }
 0x2fb   : > { %v1698_v58 = vsel %vm721_vm1, %v1659_v1, %v10156_v18  ;;  %v1671_v45 = vsel %vm721_vm1, %v10159_v13, %v1659_v1  ;;  %v1694_v22 = vsel %vm721_vm1, %v1651_v47, %v10161_v14  ;;  %v1668_v40 = vsel %vm721_vm1, %v10164_v9, %v1651_v47  ;;  %v10166_v1 = vld [vmem:[#allocation48_spill] sm:$0xff] }
 0x2fc   : > { %2187 = vmatpush2.bf16.msra.mxu1 %v1358_v30  ;;  %2244 = vmatpush1.bf16.msra.mxu0 %v10153_v12  ;;  %v1715_v26 = vmul.bf16 %v1698_v58, %v10160_v61  ;;  %v1714_v34 = vmul.bf16 %v1671_v45, %v10163_v21  ;;  %v10165_v30 = vld [vmem:[#allocation31_spill] sm:$0xff]  ;;  %v1710_v47 = vmul.bf16 %v1668_v40, %v10163_v21  ;;  %v10171_v45 = vld [vmem:[#allocation65_spill] sm:$0xff] }
 0x2fd   : > { %2188 = vmatprep.subr.bf16.mxu1 %v1355_v24  ;;  %2245 = vmatprep.subr.bf16.mxu0 %v10154_v23  ;;  %v10168_v23 = vld [vmem:[#allocation50_spill] sm:$0xff] }
 0x2fe   : > { %5586 = vmatmul.mubr.msk.bf16.gmra.mxu0 %vm1928_vm9, %v8193_v2  ;;  %v1635_v11 = vpop.permute.xlu1 %1634  ;;  %v1643_v57 = vpop.permute.xlu0 %1642 }
 0x2ff   : > { %2265 = vmatprep.mubr.bf16.mxu0 %v10155_v51  ;;  %v1690_v24 = vsel %vm721_vm1, %v1643_v57, %v10166_v1  ;;  %v10169_v51 = vld [vmem:[#allocation43_spill] sm:$0xff]  ;;  %v10176_v1 = vld [vmem:[#allocation33_spill] sm:$0xff] }
 0x300   : > { %2189 = vmatpush2.bf16.msra.mxu1 %v1354_v33  ;;  %2246 = vmatpush1.bf16.msra.mxu0 %v10157_v52  ;;  %v1665_v33 = vsel %vm721_vm1, %v10168_v23, %v1643_v57  ;;  %v1686_v18 = vsel %vm721_vm1, %v1635_v11, %v10169_v51 }
 0x301   : > { %2190 = vmatprep.subr.bf16.mxu1 %v1351_v25  ;;  %2247 = vmatprep.subr.bf16.mxu0 %v10158_v16  ;;  %v10170_v16 = vld [vmem:[#allocation44_spill] sm:$0xff] }
 0x302   : > { %v1747_v15 = vpop.permute.xlu1 %1746  ;;  %v1571_v43 = vpop.permute.xlu0 %1570 }
 0x303   : > { %v1786_v20 = vsel %vm773_vm8, %v1747_v15, %v7932_v54  ;;  %v1759_v32 = vsel %vm773_vm8, %v7934_v55, %v1747_v15  ;;  %v1711_v54 = vmul.bf16 %v1694_v22, %v10160_v61  ;;  %v10167_v55 = vld [vmem:[#allocation32_spill] sm:$0xff] }
 0x304   : > { %2191 = vmatpush2.bf16.msra.mxu1 %v1350_v17  ;;  %2248 = vmatpush1.bf16.msra.mxu0 %v10162_v31  ;;  %v1803_v8 = vmul.bf16 %v1786_v20, %v10165_v30  ;;  %v1802_v12 = vmul.bf16 %v1759_v32, %v10167_v55  ;;  %v1662_v17 = vsel %vm721_vm1, %v10170_v16, %v1635_v11  ;;  %v10172_v20 = vld [vmem:[#allocation12_spill] sm:$0xff] }
 0x305   : > { %2249 = vmatprep.subr.bf16.mxu0 %v1715_v26  ;;  %2312 = vmatprep.subr.bf16.mxu1 %v10130_v42  ;;  %v1610_v26 = vsel %vm657_vm2, %v1571_v43, %v10171_v45  ;;  %v1702_v11 = vmul.bf16 %v1662_v17, %v10163_v21 }
 0x306   : > { %v1739_v36 = vpop.permute.xlu1 %1738  ;;  %v1563_v52 = vpop.permute.xlu0 %1562  ;;  %v1627_v31 = vmul.bf16 %v1610_v26, %v10172_v20 }
 0x307   : > { %2193 = vmatmul.mubr.bf16.vlgmr.msra.gmra.mxu1 %v7929_v46  ;;  %v1782_v44 = vsel %vm773_vm8, %v1739_v36, %v7974_v41  ;;  %v1756_v10 = vsel %vm773_vm8, %v7976_v4, %v1739_v36  ;;  %v1707_v41 = vmul.bf16 %v1690_v24, %v10160_v61  ;;  %v10178_v24 = vld [vmem:[#allocation7_spill] sm:$0xff] }
 0x308   : > { %2250 = vmatpush2.bf16.msra.mxu0 %v1714_v34  ;;  %2313 = vmatpush1.bf16.msra.mxu1 %v10130_v42  ;;  %v1799_v25 = vmul.bf16 %v1782_v44, %v10165_v30  ;;  %v1798_v57 = vmul.bf16 %v1756_v10, %v10167_v55  ;;  %v1606_v34 = vsel %vm657_vm2, %v1563_v52, %v7707_v3 }
 0x309   : > { %2251 = vmatprep.subr.bf16.mxu0 %v1711_v54  ;;  %2314 = vmatprep.subr.bf16.mxu1 %v1803_v8 }
 0x30a   : > { %v1731_v46 = vpop.permute.xlu1 %1730  ;;  %2202 = vmatprep.mubr.bf16.mxu1 %v7939_v38  ;;  %v1706_v38 = vmul.bf16 %v1665_v33, %v10163_v21  ;;  %v10173_v21 = vld [vmem:[#allocation13_spill] sm:$0xff] }
 0x30b   : > { %v1778_v58 = vsel %vm773_vm8, %v1731_v46, %v8048_v59  ;;  %v1753_v15 = vsel %vm773_vm8, %v8016_v37, %v1731_v46  ;;  %v1703_v59 = vmul.bf16 %v1686_v18, %v10160_v61  ;;  %v1555_v61 = vpop.permute.xlu0 %1554 }
 0x30c   : > { %2252 = vmatpush2.bf16.msra.mxu0 %v1710_v47  ;;  %2315 = vmatpush1.bf16.msra.mxu1 %v1802_v12  ;;  %v1795_v13 = vmul.bf16 %v1778_v58, %v10165_v30  ;;  %v1794_v37 = vmul.bf16 %v1753_v15, %v10167_v55  ;;  %v1602_v40 = vsel %vm657_vm2, %v1555_v61, %v7778_v49 }
 0x30d   : > { %2253 = vmatprep.subr.bf16.mxu0 %v1707_v41  ;;  %2316 = vmatprep.subr.bf16.mxu1 %v1799_v25  ;;  %v1577_v32 = vsel %vm657_vm2, %v7813_v63, %v1555_v61  ;;  %v1619_v54 = vmul.bf16 %v1602_v40, %v10172_v20 }
 0x30e   : > { %v1723_v4 = vpop.permute.xlu1 %1722  ;;  %v1618_v49 = vmul.bf16 %v1577_v32, %v10173_v21 }
 0x30f   : > { %2203 = vmatmul.mubr.bf16.gmra.mxu1 %v7971_v53  ;;  %v1774_v14 = vsel %vm773_vm8, %v1723_v4, %v8086_v62  ;;  %v1583_v53 = vsel %vm657_vm2, %v7657_v19, %v1571_v43  ;;  %v1750_v22 = vsel %vm773_vm8, %v8070_v35, %v1723_v4  ;;  %v10174_v19 = vld [vmem:[#allocation68_spill] sm:$0xff]  ;;  %v1623_v35 = vmul.bf16 %v1606_v34, %v10172_v20  ;;  %v1547_v3 = vpop.permute.xlu0 %1546 }
 0x310   : > { %2254 = vmatpush2.bf16.msra.mxu0 %v1706_v38  ;;  %2317 = vmatpush1.bf16.msra.mxu1 %v1798_v57  ;;  %v1791_v62 = vmul.bf16 %v1774_v14, %v10165_v30  ;;  %v1790_v36 = vmul.bf16 %v1750_v22, %v10167_v55  ;;  %v1580_v9 = vsel %vm657_vm2, %v10174_v19, %v1563_v52  ;;  %v10175_v30 = vld [vmem:[#allocation60_spill] sm:$0xff] }
 0x311   : > { %2255 = vmatprep.subr.bf16.mxu0 %v1703_v59  ;;  %2318 = vmatprep.subr.bf16.mxu1 %v1795_v13  ;;  %v1622_v43 = vmul.bf16 %v1580_v9, %v10173_v21  ;;  %v1574_v8 = vsel %vm657_vm2, %v10175_v30, %v1547_v3 }
 0x312   : > { %2212 = vmatprep.mubr.bf16.mxu1 %v7981_v50  ;;  %v1626_v50 = vmul.bf16 %v1583_v53, %v10173_v21  ;;  %v1614_v63 = vmul.bf16 %v1574_v8, %v10173_v21 }
 0x314   : > { %2256 = vmatpush2.bf16.msra.mxu0 %v1702_v11  ;;  %2319 = vmatpush1.bf16.msra.mxu1 %v1794_v37 }
 0x315   : > { %2257 = vmatprep.subr.bf16.mxu0 %v1627_v31  ;;  %2320 = vmatprep.subr.bf16.mxu1 %v1791_v62 }
 0x317   : > { %2213 = vmatmul.mubr.bf16.gmra.mxu1 %v8011_v48  ;;  %v1598_v48 = vsel %vm657_vm2, %v1547_v3, %v7888_v39  ;;  %v10177_v39 = vld [vmem:[#allocation17_spill] sm:$0xff] }
 0x318   : > { %2258 = vmatpush2.bf16.msra.mxu0 %v1626_v50  ;;  %2321 = vmatpush1.bf16.msra.mxu1 %v1790_v36 }
 0x319   : > { %2259 = vmatprep.subr.bf16.mxu0 %v1623_v35  ;;  %2222 = vmatprep.mubr.bf16.mxu1 %v8021_v29  ;;  %v1615_v29 = vmul.bf16 %v1598_v48, %v10172_v20 }
 0x31c   : > { %2260 = vmatpush2.bf16.msra.mxu0 %v1622_v43 }
 0x31d   : > { %2261 = vmatprep.subr.bf16.mxu0 %v1619_v54 }
 0x31f   : > { %2223 = vmatmul.mubr.bf16.gmra.mxu1 %v8064_v28  ;;  %v10179_v28 = vld [vmem:[#allocation5_spill] sm:$0xff] }
 0x320   : > { %2262 = vmatpush2.bf16.msra.mxu0 %v1618_v49  ;;  %2338 = vmatprep.mubr.bf16.mxu1 %v10004_v6 }
 0x321   : > { %2263 = vmatprep.subr.bf16.mxu0 %v1615_v29 }
 0x324   : > { %2264 = vmatpush2.bf16.msra.mxu0 %v1614_v63 }
 0x327   : > { %2266 = vmatmul.mubr.bf16.vlgmr.msra.gmra.mxu0 %v10176_v1  ;;  %5587 = vmatmul.mubr.msk.bf16.vlgmr.msra.gmra.mxu1 %vm1928_vm9, %v8104_v27 }
 0x328   : > { %2275 = vmatprep.mubr.bf16.mxu0 %v10177_v39  ;;  %2348 = vmatprep.mubr.bf16.mxu1 %v10004_v6 }
 0x32f   : > { %2276 = vmatmul.mubr.bf16.gmra.mxu0 %v10178_v24  ;;  %5588 = vmatmul.mubr.msk.bf16.gmra.mxu1 %vm1928_vm9, %v8136_v7 }
 0x330   : > { %2285 = vmatprep.mubr.bf16.mxu0 %v10179_v28  ;;  %2358 = vmatprep.mubr.bf16.mxu1 %v10004_v6 }
 0x337   : > { %2286 = vmatmul.mubr.bf16.gmra.mxu0 %v8033_v56  ;;  %5589 = vmatmul.mubr.msk.bf16.gmra.mxu1 %vm1928_vm9, %v8168_v5 }
 0x338   : > { %2295 = vmatprep.mubr.bf16.mxu0 %v8043_v0  ;;  %2368 = vmatprep.mubr.bf16.mxu1 %v10004_v6 }
 0x33f   : > { %2296 = vmatmul.mubr.bf16.gmra.mxu0 %v8081_v60  ;;  %5590 = vmatmul.mubr.msk.bf16.gmra.mxu1 %vm1928_vm9, %v8193_v2 }
 0x385   : > { %v1975_v27 = vpop.f32.mrf.mxu0 }
 0x387   : > { %v2048_v7 = vpop.f32.mrf.mxu1  ;;  %v1977_v44 = vpop.f32.mrf.mxu0 }
 0x388   : > { %v2049_v17 = vadd.f32 %v2048_v7, %v1975_v27 }
 0x389   : > { %v2050_v47 = vpop.f32.mrf.mxu1  ;;  %v1979_v55 = vpop.f32.mrf.mxu0 }
 0x38a   : > { %v2051_v59 = vadd.f32 %v2050_v47, %v1977_v44 }
 0x38b   : > { %v1981_v12 = vpop.f32.mrf.mxu0  ;;  %v2052_v46 = vpop.f32.mrf.mxu1 }
 0x38c   : > { %v2053_v14 = vadd.f32 %v2052_v46, %v1979_v55 }
 0x38d   : > { %v1985_v56 = vpop.f32.mrf.mxu0  ;;  %v2054_v33 = vpop.f32.mrf.mxu1 }
 0x38e   : > { %v2055_v53 = vadd.f32 %v2054_v33, %v1981_v12 }
 0x38f   : > { %v1987_v23 = vpop.f32.mrf.mxu0  ;;  %v2058_v0 = vpop.f32.mrf.mxu1 }
 0x390   : > { %v2059_v34 = vadd.f32 %v2058_v0, %v1985_v56 }
 0x391   : > { %v1989_v5 = vpop.f32.mrf.mxu0  ;;  %v2060_v51 = vpop.f32.mrf.mxu1 }
 0x392   : > { %v2061_v19 = vadd.f32 %v2060_v51, %v1987_v23 }
 0x393   : > { %v1991_v10 = vpop.f32.mrf.mxu0  ;;  %v2062_v58 = vpop.f32.mrf.mxu1 }
 0x394   : > { %v2063_v32 = vadd.f32 %v2062_v58, %v1989_v5 }
 0x395   : > { %v1995_v41 = vpop.f32.mrf.mxu0  ;;  %v2064_v38 = vpop.f32.mrf.mxu1 }
 0x396   : > { %v2065_v30 = vadd.f32 %v2064_v38, %v1991_v10 }
 0x397   : > { %v1997_v25 = vpop.f32.mrf.mxu0  ;;  %v2068_v16 = vpop.f32.mrf.mxu1 }
 0x398   : > { %v2069_v24 = vadd.f32 %v2068_v16, %v1995_v41 }
 0x399   : > { %v1999_v60 = vpop.f32.mrf.mxu0  ;;  %v2070_v45 = vpop.f32.mrf.mxu1 }
 0x39a   : > { %v2071_v44 = vadd.f32 %v2070_v45, %v1997_v25 }
 0x39b   : > { %v2001_v18 = vpop.f32.mrf.mxu0  ;;  %v2072_v31 = vpop.f32.mrf.mxu1 }
 0x39c   : > { %v2073_v23 = vadd.f32 %v2072_v31, %v1999_v60 }
 0x39d   : > { %v8313_v2 = vpop.f32.mrf.mxu0  ;;  %v2074_v3 = vpop.f32.mrf.mxu1 }
 0x39e   : > { %v2075_v0 = vadd.f32 %v2074_v3, %v2001_v18 }
 0x39f   : > { %v8315_v52 = vpop.f32.mrf.mxu0  ;;  %v2078_v1 = vpop.f32.mrf.mxu1 }
 0x3a0   : > { %v2079_v60 = vadd.f32 %v2078_v1, %v8313_v2 }
 0x3a1   : > { %v8317_v57 = vpop.f32.mrf.mxu0  ;;  %v2080_v46 = vpop.f32.mrf.mxu1 }
 0x3a3   : > { %v8319_v4 = vpop.f32.mrf.mxu0  ;;  %v2082_v58 = vpop.f32.mrf.mxu1 }
 0x3a6   : > { %v2121_v15 = vpop.f32.mrf.mxu0 }
 0x3a7   : > { %v8321_v13 = vadd.f32 %v2121_v15, %v2049_v17  ;;  %v2081_v15 = vadd.f32 %v2080_v46, %v8315_v52 }
 0x3a8   : > { %v2123_v26 = vpop.f32.mrf.mxu0 }
 0x3a9   : > { %v8323_v11 = vadd.f32 %v2123_v26, %v2051_v59  ;;  %v2379_v61 = vmax.f32 %v8321_v13, 0.0 }
 0x3aa   : > { %v2125_v37 = vpop.f32.mrf.mxu0 }
 0x3ab   : > { %v2380_v22 = vmax.f32 %v8323_v11, 0.0  ;;  %v8327_v20 = vadd.f32 %v2125_v37, %v2053_v14  ;;  %v2084_v14 = vpop.f32.mrf.mxu1  ;;  %v2083_v37 = vadd.f32 %v2082_v58, %v8317_v57 }
 0x3ac   : > { %v2127_v62 = vpop.f32.mrf.mxu0 }
 0x3ad   : > { %v6325_v21 = vpack.i.bf16 %v2380_v22, %v2379_v61  ;;  %v8333_v50 = vadd.f32 %v2127_v62, %v2055_v53  ;;  %v2383_v9 = vmax.f32 %v8327_v20, 0.0  ;;  %v2085_v62 = vadd.f32 %v2084_v14, %v8319_v4 }
 0x3ae   : > { %v2131_v36 = vpop.f32.mrf.mxu0 }
 0x3af   : > { %v2384_v35 = vmax.f32 %v8333_v50, 0.0  ;;  %v8337_v40 = vadd.f32 %v2131_v36, %v2059_v34  ;;  %6326 = vrot.lane.b32.xlu0 %v6325_v21, %s6785_s26 }
 0x3b0   : > { %v2133_v43 = vpop.f32.mrf.mxu0 }
 0x3b1   : > { %v6330_v54 = vpack.i.bf16 %v2384_v35, %v2383_v9  ;;  %v8344_v48 = vadd.f32 %v2133_v43, %v2061_v19  ;;  %v2387_v8 = vmax.f32 %v8337_v40, 0.0 }
 0x3b2   : > { %v2135_v49 = vpop.f32.mrf.mxu0 }
 0x3b3   : > { %v10027_v29 = vmax.f32 %v8344_v48, 0.0  ;;  %v8348_v63 = vadd.f32 %v2135_v49, %v2063_v32  ;;  %6331 = vrot.lane.b32.xlu0 %v6330_v54, %s6785_s26 }
 0x3b4   : > { %v2137_v39 = vpop.f32.mrf.mxu0 }
 0x3b5   : > { %v6335_v28 = vpack.i.bf16 %v10027_v29, %v2387_v8  ;;  %v8355_v27 = vadd.f32 %v2137_v39, %v2065_v30  ;;  %v10025_v47 = vmax.f32 %v8348_v63, 0.0 }
 0x3b6   : > { %v2141_v7 = vpop.f32.mrf.mxu0 }
 0x3b7   : > { %v10023_v55 = vmax.f32 %v8355_v27, 0.0  ;;  %v8359_v12 = vadd.f32 %v2141_v7, %v2069_v24  ;;  %6336 = vrot.lane.b32.xlu0 %v6335_v28, %s6785_s26 }
 0x3b8   : > { %v2143_v56 = vpop.f32.mrf.mxu0 }
 0x3b9   : > { %v6340_v33 = vpack.i.bf16 %v10023_v55, %v10025_v47  ;;  %v8366_v5 = vadd.f32 %v2143_v56, %v2071_v44  ;;  %v10013_v41 = vmax.f32 %v8359_v12, 0.0 }
 0x3ba   : > { %v2145_v10 = vpop.f32.mrf.mxu0 }
 0x3bb   : > { %v10012_v25 = vmax.f32 %v8366_v5, 0.0  ;;  %v8370_v51 = vadd.f32 %v2145_v10, %v2073_v23  ;;  %6341 = vrot.lane.b32.xlu0 %v6340_v33, %s6785_s26 }
 0x3bc   : > { %v2147_v38 = vpop.f32.mrf.mxu0 }
 0x3bd   : > { %v6345_v16 = vpack.i.bf16 %v10012_v25, %v10013_v41  ;;  %v8378_v17 = vadd.f32 %v2147_v38, %v2075_v0  ;;  %v10011_v59 = vmax.f32 %v8370_v51, 0.0 }
 0x3be   : > { %v2151_v18 = vpop.f32.mrf.mxu0 }
 0x3bf   : > { %v10010_v45 = vmax.f32 %v8378_v17, 0.0  ;;  %v8383_v26 = vadd.f32 %v2151_v18, %v2079_v60  ;;  %6346 = vrot.lane.b32.xlu0 %v6345_v16, %s6785_s26 }
 0x3c0   : > { %v2153_v2 = vpop.f32.mrf.mxu0 }
 0x3c1   : > { %v6350_v53 = vpack.i.bf16 %v10010_v45, %v10011_v59  ;;  %v8391_v31 = vadd.f32 %v2153_v2, %v2081_v15  ;;  %v10009_v34 = vmax.f32 %v8383_v26, 0.0 }
 0x3c2   : > { %v2155_v52 = vpop.f32.mrf.mxu0 }
 0x3c3   : > { %v10008_v21 = vmax.f32 %v8391_v31, 0.0  ;;  %v8396_v36 = vadd.f32 %v2155_v52, %v2083_v37  ;;  %6351 = vrot.lane.b32.xlu0 %v6350_v53, %s6785_s26 }
 0x3c4   : > { %v2157_v19 = vpop.f32.mrf.mxu0 }
 0x3c5   : > { %v6355_v57 = vpack.i.bf16 %v10008_v21, %v10009_v34  ;;  %v8403_v3 = vadd.f32 %v2157_v19, %v2085_v62  ;;  %v10007_v43 = vmax.f32 %v8396_v36, 0.0 }
 0x3c7   : > { %v10006_v4 = vmax.f32 %v8403_v3, 0.0  ;;  %v2194_v32 = vpop.f32.mrf.mxu1  ;;  %6356 = vrot.lane.b32.xlu0 %v6355_v57, %s6785_s26 }
 0x3c9   : > { %v6360_v54 = vpack.i.bf16 %v10006_v4, %v10007_v43  ;;  %v2196_v49 = vpop.f32.mrf.mxu1 }
 0x3cb   : > { %v2198_v30 = vpop.f32.mrf.mxu1  ;;  %6361 = vrot.lane.b32.xlu0 %v6360_v54, %s6785_s26 }
 0x3cd   : > { %v2200_v1 = vpop.f32.mrf.mxu1 }
 0x3cf   : > { %v2204_v39 = vpop.f32.mrf.mxu1 }
 0x3d1   : > { %v2206_v24 = vpop.f32.mrf.mxu1 }
 0x3d3   : > { %v2208_v28 = vpop.f32.mrf.mxu1 }
 0x3d5   : > { %v2210_v7 = vpop.f32.mrf.mxu1 }
 0x3d7   : > { %v2214_v44 = vpop.f32.mrf.mxu1 }
 0x3d9   : > { %v2216_v46 = vpop.f32.mrf.mxu1 }
 0x3db   : > { %v8413_v56 = vpop.f32.mrf.mxu1 }
 0x3dd   : > { %v8415_v23 = vpop.f32.mrf.mxu1 }
 0x3df   : > { %v8417_v33 = vpop.f32.mrf.mxu1 }
 0x3e1   : > { %v8419_v10 = vpop.f32.mrf.mxu1 }
 0x3e3   : > { %v8421_v0 = vpop.f32.mrf.mxu1 }
 0x3e5   : > { %v8423_v58 = vpop.f32.mrf.mxu1 }
 0x3e7   : > { %v2267_v38 = vpop.f32.mrf.mxu0  ;;  %v2340_v60 = vpop.f32.mrf.mxu1 }
 0x3e8   : > { %v2268_v16 = vadd.f32 %v2267_v38, %v2194_v32 }
 0x3e9   : > { %v2269_v18 = vpop.f32.mrf.mxu0  ;;  %v2342_v15 = vpop.f32.mrf.mxu1 }
 0x3ea   : > { %v8425_v14 = vadd.f32 %v2340_v60, %v2268_v16  ;;  %v2270_v2 = vadd.f32 %v2269_v18, %v2196_v49 }
 0x3eb   : > { %v2271_v37 = vpop.f32.mrf.mxu0  ;;  %v2344_v53 = vpop.f32.mrf.mxu1 }
 0x3ec   : > { %v8427_v52 = vadd.f32 %v2342_v15, %v2270_v2  ;;  %v2272_v62 = vadd.f32 %v2271_v37, %v2198_v30  ;;  %v2381_v54 = vmax.f32 %v8425_v14, 0.0 }
 0x3ed   : > { %v2273_v19 = vpop.f32.mrf.mxu0  ;;  %v2346_v57 = vpop.f32.mrf.mxu1 }
 0x3ee   : > { %v2382_v6 = vmax.f32 %v8427_v52, 0.0  ;;  %v8431_v4 = vadd.f32 %v2344_v53, %v2272_v62  ;;  %v2274_v43 = vadd.f32 %v2273_v19, %v2200_v1 }
 0x3ef   : > { %v2277_v32 = vpop.f32.mrf.mxu0  ;;  %v2350_v38 = vpop.f32.mrf.mxu1 }
 0x3f0   : > { %v6365_v49 = vpack.i.bf16 %v2382_v6, %v2381_v54  ;;  %v8437_v60 = vadd.f32 %v2346_v57, %v2274_v43  ;;  %v2278_v16 = vadd.f32 %v2277_v32, %v2204_v39  ;;  %v2385_v15 = vmax.f32 %v8431_v4, 0.0 }
 0x3f1   : > { %v2279_v30 = vpop.f32.mrf.mxu0  ;;  %v2352_v18 = vpop.f32.mrf.mxu1 }
 0x3f2   : > { %v2386_v2 = vmax.f32 %v8437_v60, 0.0  ;;  %v8441_v37 = vadd.f32 %v2350_v38, %v2278_v16  ;;  %v2280_v53 = vadd.f32 %v2279_v30, %v2206_v24  ;;  %6366 = vrot.lane.b32.xlu1 %v6365_v49, %s6785_s26 }
 0x3f3   : > { %v2281_v1 = vpop.f32.mrf.mxu0  ;;  %v2354_v62 = vpop.f32.mrf.mxu1 }
 0x3f4   : > { %v6370_v43 = vpack.i.bf16 %v2386_v2, %v2385_v15  ;;  %v8448_v19 = vadd.f32 %v2352_v18, %v2280_v53  ;;  %v2282_v39 = vadd.f32 %v2281_v1, %v2208_v28  ;;  %v10026_v21 = vmax.f32 %v8441_v37, 0.0 }
 0x3f5   : > { %v2283_v57 = vpop.f32.mrf.mxu0  ;;  %v2356_v32 = vpop.f32.mrf.mxu1 }
 0x3f6   : > { %v2390_v38 = vmax.f32 %v8448_v19, 0.0  ;;  %v8452_v16 = vadd.f32 %v2354_v62, %v2282_v39  ;;  %v2284_v24 = vadd.f32 %v2283_v57, %v2210_v7  ;;  %6371 = vrot.lane.b32.xlu1 %v6370_v43, %s6785_s26 }
 0x3f7   : > { %v2287_v49 = vpop.f32.mrf.mxu0  ;;  %v2360_v30 = vpop.f32.mrf.mxu1 }
 0x3f8   : > { %v6375_v18 = vpack.i.bf16 %v2390_v38, %v10026_v21  ;;  %v8459_v53 = vadd.f32 %v2356_v32, %v2284_v24  ;;  %v2288_v28 = vadd.f32 %v2287_v49, %v2214_v44  ;;  %v10014_v45 = vmax.f32 %v8452_v16, 0.0 }
 0x3f9   : > { %v2289_v1 = vpop.f32.mrf.mxu0  ;;  %v2362_v34 = vpop.f32.mrf.mxu1 }
 0x3fa   : > { %v10024_v62 = vmax.f32 %v8459_v53, 0.0  ;;  %v8463_v39 = vadd.f32 %v2360_v30, %v2288_v28  ;;  %v2290_v7 = vadd.f32 %v2289_v1, %v2216_v46  ;;  %6376 = vrot.lane.b32.xlu1 %v6375_v18, %s6785_s26 }
 0x3fb   : > { %v2291_v43 = vpop.f32.mrf.mxu0  ;;  %v2364_v57 = vpop.f32.mrf.mxu1 }
 0x3fc   : > { %v6380_v32 = vpack.i.bf16 %v10024_v62, %v10014_v45  ;;  %v8470_v24 = vadd.f32 %v2362_v34, %v2290_v7  ;;  %v2292_v44 = vadd.f32 %v2291_v43, %v8413_v56  ;;  %v10015_v25 = vmax.f32 %v8463_v39, 0.0  ;;  %v6579_v62 = vld [vmem:[%s9900_s7 + $0x40] sm:$0xff]  }
 0x3fd   : > { %v2293_v49 = vpop.f32.mrf.mxu0  ;;  %v2366_v59 = vpop.f32.mrf.mxu1 }
 0x3fe   : > { %v10022_v30 = vmax.f32 %v8470_v24, 0.0  ;;  %v8475_v46 = vadd.f32 %v2364_v57, %v2292_v44  ;;  %v2294_v18 = vadd.f32 %v2293_v49, %v8415_v23  ;;  %6381 = vrot.lane.b32.xlu1 %v6380_v32, %s6785_s26 }
 0x3ff   : > { %v2297_v28 = vpop.f32.mrf.mxu0  ;;  %v2370_v1 = vpop.f32.mrf.mxu1 }
 0x400   : > { %v6385_v34 = vpack.i.bf16 %v10022_v30, %v10015_v25  ;;  %v8483_v56 = vadd.f32 %v2366_v59, %v2294_v18  ;;  %v2298_v7 = vadd.f32 %v2297_v28, %v8417_v33  ;;  %v10020_v57 = vmax.f32 %v8475_v46, 0.0 }
 0x401   : > { %v2299_v43 = vpop.f32.mrf.mxu0  ;;  %v2372_v41 = vpop.f32.mrf.mxu1 }
 0x402   : > { %v10021_v44 = vmax.f32 %v8483_v56, 0.0  ;;  %v8488_v23 = vadd.f32 %v2370_v1, %v2298_v7  ;;  %v2300_v32 = vadd.f32 %v2299_v43, %v8419_v10  ;;  %6386 = vrot.lane.b32.xlu1 %v6385_v34, %s6785_s26 }
 0x403   : > { %v2301_v49 = vpop.f32.mrf.mxu0  ;;  %v2374_v45 = vpop.f32.mrf.mxu1 }
 0x404   : > { %v6390_v59 = vpack.i.bf16 %v10021_v44, %v10020_v57  ;;  %v8496_v33 = vadd.f32 %v2372_v41, %v2300_v32  ;;  %v2302_v18 = vadd.f32 %v2301_v49, %v8421_v0  ;;  %v10016_v25 = vmax.f32 %v8488_v23, 0.0  ;;  %v6551_v0 = vld [vmem:[%s9900_s7 + $0x78] sm:$0xff]   ;;  %v6555_v49 = vld [vmem:[%s9900_s7 + $0x70] sm:$0xff]  }
 0x405   : > { %v2303_v28 = vpop.f32.mrf.mxu0  ;;  %v2376_v34 = vpop.f32.mrf.mxu1  ;;  %v6554_v32 = vld [vmem:[%s9900_s7 + $0xb8] sm:$0xff]   ;;  %5764 = vmatprep.subr.bf16.mxu0 %v6551_v0  ;;  %v6560_v0 = vld [vmem:[%s9900_s7 + $0xe8] sm:$0xff]  }
 0x406   : > { %v10019_v1 = vmax.f32 %v8496_v33, 0.0  ;;  %v8501_v7 = vadd.f32 %v2374_v45, %v2302_v18  ;;  %v2304_v10 = vadd.f32 %v2303_v28, %v8423_v58  ;;  %6391 = vrot.lane.b32.xlu1 %v6390_v59, %s6785_s26  ;;  %v6552_v45 = vld [vmem:[%s9900_s7 + $0xf8] sm:$0xff]   ;;  %v6556_v59 = vld [vmem:[%s9900_s7 + $0xf0] sm:$0xff]  }
 0x407   : > { %v6553_v58 = vld [vmem:[%s9900_s7 + $0x38] sm:$0xff]   ;;  %5804 = vmatprep.subr.bf16.mxu1 %v6552_v45  ;;  %v6561_v45 = vld [vmem:[%s9900_s7 + $0x28] sm:$0xff]  }
 0x408   : > { %v6395_v41 = vpack.i.bf16 %v10019_v1, %v10016_v25  ;;  %v8509_v43 = vadd.f32 %v2376_v34, %v2304_v10  ;;  %v10017_v18 = vmax.f32 %v8501_v7, 0.0  ;;  %5765 = vmatpush3.bf16.msra.mxu0 %v6553_v58  ;;  %v6557_v10 = vld [vmem:[%s9900_s7 + $0x30] sm:$0xff]   ;;  %5805 = vmatpush3.bf16.msra.mxu1 %v6554_v32  ;;  %v6562_v58 = vld [vmem:[%s9900_s7 + $0xa8] sm:$0xff]   ;;  %v6563_v32 = vld [vmem:[%s9900_s7 + $0x60] sm:$0xff]  }
 0x409   : > { %5766 = vmatprep.subr.bf16.mxu0 %v6555_v49  ;;  %v6558_v25 = vld [vmem:[%s9900_s7 + $0xb0] sm:$0xff]   ;;  %5806 = vmatprep.subr.bf16.mxu1 %v6556_v59  ;;  %v6564_v49 = vld [vmem:[%s9900_s7 + $0xe0] sm:$0xff]  }
 0x40a   : > { %v10018_v28 = vmax.f32 %v8509_v43, 0.0  ;;  %6396 = vrot.lane.b32.xlu1 %v6395_v41, %s6785_s26  ;;  %v6559_v41 = vld [vmem:[%s9900_s7 + $0x68] sm:$0xff]   ;;  %v6565_v59 = vld [vmem:[%s9900_s7 + $0x20] sm:$0xff]  }
 0x40c   : > { %v6400_v34 = vpack.i.bf16 %v10018_v28, %v10017_v18  ;;  %5767 = vmatpush3.bf16.msra.mxu0 %v6557_v10  ;;  %5807 = vmatpush3.bf16.msra.mxu1 %v6558_v25  ;;  %v6566_v25 = vld [vmem:[%s9900_s7 + $0xa0] sm:$0xff]   ;;  %v6567_v10 = vld [vmem:[%s9900_s7 + $0x58] sm:$0xff]   ;;  %v6575_v18 = vld [vmem:[%s9900_s7 + $0x48] sm:$0xff]  }
 0x40d   : > { %5768 = vmatprep.subr.bf16.mxu0 %v6559_v41  ;;  %5808 = vmatprep.subr.bf16.mxu1 %v6560_v0  ;;  %v6569_v41 = vld [vmem:[%s9900_s7 + $0x18] sm:$0xff]   ;;  %v6576_v28 = vld [vmem:[%s9900_s7 + $0xc8] sm:$0xff]  }
 0x40e   : > { %6401 = vrot.lane.b32.xlu1 %v6400_v34, %s6785_s26  ;;  %v6568_v34 = vld [vmem:[%s9900_s7 + $0xd8] sm:$0xff]  }
 0x40f   : > { %v6570_v0 = vld [vmem:[%s9900_s7 + $0x98] sm:$0xff]  }
 0x410   : > { %5769 = vmatpush3.bf16.msra.mxu0 %v6561_v45  ;;  %5809 = vmatpush3.bf16.msra.mxu1 %v6562_v58 }
 0x411   : > { %5770 = vmatprep.subr.bf16.mxu0 %v6563_v32  ;;  %5810 = vmatprep.subr.bf16.mxu1 %v6564_v49  ;;  %v6571_v49 = vld [vmem:[%s9900_s7 + $0x50] sm:$0xff]  }
 0x414   : > { %5771 = vmatpush3.bf16.msra.mxu0 %v6565_v59  ;;  %5811 = vmatpush3.bf16.msra.mxu1 %v6566_v25  ;;  %v6572_v59 = vld [vmem:[%s9900_s7 + $0xd0] sm:$0xff]  }
 0x415   : > { %5772 = vmatprep.subr.bf16.mxu0 %v6567_v10  ;;  %5812 = vmatprep.subr.bf16.mxu1 %v6568_v34  ;;  %v6573_v25 = vld [vmem:[%s9900_s7 + $0x10] sm:$0xff]  }
 0x416   : > { %v6574_v10 = vld [vmem:[%s9900_s7 + $0x90] sm:$0xff]  }
 0x418   : > { %5773 = vmatpush3.bf16.msra.mxu0 %v6569_v41  ;;  %5813 = vmatpush3.bf16.msra.mxu1 %v6570_v0 }
 0x419   : > { %5774 = vmatprep.subr.bf16.mxu0 %v6571_v49  ;;  %5814 = vmatprep.subr.bf16.mxu1 %v6572_v59  ;;  %v6578_v49 = vld [vmem:[%s9900_s7 + $0x88] sm:$0xff]  }
 0x41c   : > { %5775 = vmatpush3.bf16.msra.mxu0 %v6573_v25  ;;  %5815 = vmatpush3.bf16.msra.mxu1 %v6574_v10 }
 0x41d   : > { %5776 = vmatprep.subr.bf16.mxu0 %v6575_v18  ;;  %5816 = vmatprep.subr.bf16.mxu1 %v6576_v28  ;;  %v6580_v18 = vld [vmem:[%s9900_s7 + $0xc0] sm:$0xff]  }
 0x420   : > { %5817 = vmatpush3.bf16.msra.mxu1 %v6578_v49  ;;  %v6582_v49 = vld [vmem:[%s9900_s7 + $0x80] sm:$0xff]  }
 0x421   : > { %v6327_v45 = vpop.permute.xlu0 %6326  ;;  %5818 = vmatprep.subr.bf16.mxu1 %v6580_v18 }
 0x422   : > { %v6329_v34 = vunpack.i.h.bf16 %v6327_v45  ;;  %v6328_v41 = vunpack.i.l.bf16 %v6327_v45  ;;  %v6577_v45 = vld [vmem:[%s9900_s7 + $0x8] sm:$0xff]  }
 0x423   : > { %5777 = vmatpush3.bf16.msra.mxu0 %v6577_v45 }
 0x424   : > { %v2507_v59 = vsel %vm589_vm3, %v6328_v41, %v6329_v34  ;;  %5778 = vmatprep.subr.bf16.mxu0 %v6579_v62  ;;  %5819 = vmatpush3.bf16.msra.mxu1 %v6582_v49  ;;  %v10181_v49 = vmax.f32 %v8441_v37, 0.0 }
 0x425   : > { %v6332_v58 = vpop.permute.xlu0 %6331  ;;  %v8620_v28 = vmax.f32 %v2379_v61, %v2507_v59 }
 0x426   : > { %v6334_v1 = vunpack.i.h.bf16 %v6332_v58  ;;  %v6333_v57 = vunpack.i.l.bf16 %v6332_v58 }
 0x428   : > { %v2510_v45 = vsel %vm589_vm3, %v6333_v57, %v6334_v1 }
 0x429   : > { %v8579_v32 = vpop.permute.xlu0 %6336 }
 0x42a   : > { %v6339_v10 = vunpack.i.h.bf16 %v8579_v32  ;;  %v6338_v44 = vunpack.i.l.bf16 %v8579_v32  ;;  %v6581_v32 = vld [vmem:[%s9900_s7] sm:$0xff]  }
 0x42b   : > { %5779 = vmatpush3.bf16.msra.mxu0 %v6581_v32 }
 0x42d   : > { %v8593_v0 = vpop.permute.xlu0 %6341 }
 0x431   : > { %v8610_v58 = vpop.permute.xlu0 %6346 }
 0x432   : > { %v6349_v50 = vunpack.i.h.bf16 %v8610_v58 }
 0x464   : > { %v6367_v25 = vpop.permute.xlu1 %6366 }
 0x465   : > { %v6369_v30 = vunpack.i.h.bf16 %v6367_v25  ;;  %v6368_v55 = vunpack.i.l.bf16 %v6367_v25 }
 0x467   : > { %v2571_v25 = vsel %vm589_vm3, %v6369_v30, %v6328_v41  ;;  %v2508_v47 = vsel %vm589_vm3, %v6329_v34, %v6368_v55  ;;  %v2509_v21 = vsel %vm589_vm3, %v6368_v55, %v6369_v30  ;;  %v2513_v34 = vsel %vm589_vm3, %v6338_v44, %v6339_v10 }
 0x468   : > { %v8634_v13 = vmax.f32 %v2382_v6, %v2571_v25  ;;  %v8638_v61 = vmax.f32 %v2380_v22, %v2508_v47  ;;  %v8642_v59 = vmax.f32 %v2381_v54, %v2509_v21  ;;  %v6372_v29 = vpop.permute.xlu1 %6371  ;;  %v6344_v30 = vunpack.i.h.bf16 %v8593_v0  ;;  %v8655_v21 = vpop.permute.xlu0 %6351 }
 0x469   : > { %v6374_v55 = vunpack.i.h.bf16 %v6372_v29  ;;  %v6373_v62 = vunpack.i.l.bf16 %v6372_v29  ;;  %v6343_v6 = vunpack.i.l.bf16 %v8593_v0  ;;  %v8653_v47 = vmax.f32 %v2383_v9, %v2510_v45 }
 0x46a   : > { %v6410_v11 = vpack.i.bf16 %v8634_v13, %v8642_v59  ;;  %v6405_v22 = vpack.i.bf16 %v8638_v61, %v8620_v28  ;;  %v10180_v45 = vmax.f32 %v8344_v48, 0.0  ;;  %v10182_v48 = vmax.f32 %v8348_v63, 0.0 }
 0x46b   : > { %v2572_v14 = vsel %vm589_vm3, %v6374_v55, %v6333_v57  ;;  %v2511_v29 = vsel %vm589_vm3, %v6334_v1, %v6373_v62  ;;  %v2512_v52 = vsel %vm589_vm3, %v6373_v62, %v6374_v55  ;;  %v8676_v57 = vmax.f32 %v2387_v8, %v2513_v34 }
 0x46c   : > { %v8662_v54 = vmax.f32 %v2386_v2, %v2572_v14  ;;  %v8666_v41 = vmax.f32 %v2384_v35, %v2511_v29  ;;  %v8670_v20 = vmax.f32 %v2385_v15, %v2512_v52  ;;  %v6377_v9 = vpop.permute.xlu1 %6376  ;;  %6411 = vrot.lane.b32.xlu1 %v6410_v11, %s6783_s24  ;;  %6406 = vrot.lane.b32.xlu0 %v6405_v22, %s6783_s24  ;;  %v6348_v15 = vunpack.i.l.bf16 %v8610_v58  ;;  %v6357_v19 = vpop.permute.xlu0 %6356 }
 0x46d   : > { %v6379_v60 = vunpack.i.h.bf16 %v6377_v9  ;;  %v6378_v2 = vunpack.i.l.bf16 %v6377_v9  ;;  %v2516_v1 = vsel %vm589_vm3, %v6343_v6, %v6344_v30  ;;  %v10183_v29 = vmax.f32 %v8459_v53, 0.0 }
 0x46e   : > { %v6420_v35 = vpack.i.bf16 %v8662_v54, %v8670_v20  ;;  %v6415_v4 = vpack.i.bf16 %v8666_v41, %v8653_v47  ;;  %v8706_v55 = vmax.f32 %v10182_v48, %v2516_v1  ;;  %v2519_v11 = vsel %vm589_vm3, %v6348_v15, %v6349_v50 }
 0x46f   : > { %v2573_v0 = vsel %vm589_vm3, %v6379_v60, %v6338_v44  ;;  %v2514_v40 = vsel %vm589_vm3, %v6339_v10, %v6378_v2  ;;  %v2515_v8 = vsel %vm589_vm3, %v6378_v2, %v6379_v60  ;;  %v6354_v44 = vunpack.i.h.bf16 %v8655_v21 }
 0x470   : > { %v8690_v18 = vmax.f32 %v2390_v38, %v2573_v0  ;;  %v8694_v32 = vmax.f32 %v10180_v45, %v2514_v40  ;;  %v8698_v25 = vmax.f32 %v10181_v49, %v2515_v8  ;;  %v6382_v34 = vpop.permute.xlu1 %6381  ;;  %6421 = vrot.lane.b32.xlu1 %v6420_v35, %s6783_s24  ;;  %6416 = vrot.lane.b32.xlu0 %v6415_v4, %s6783_s24  ;;  %v6353_v10 = vunpack.i.l.bf16 %v8655_v21  ;;  %v6362_v8 = vpop.permute.xlu0 %6361 }
 0x471   : > { %v6384_v38 = vunpack.i.h.bf16 %v6382_v34  ;;  %v6383_v58 = vunpack.i.l.bf16 %v6382_v34  ;;  %v10184_v63 = vmax.f32 %v8355_v27, 0.0  ;;  %v10185_v60 = vmax.f32 %v8452_v16, 0.0 }
 0x472   : > { %v6430_v37 = vpack.i.bf16 %v8690_v18, %v8698_v25  ;;  %v6425_v62 = vpack.i.bf16 %v8694_v32, %v8676_v57  ;;  %v6359_v53 = vunpack.i.h.bf16 %v6357_v19  ;;  %v6358_v4 = vunpack.i.l.bf16 %v6357_v19 }
 0x473   : > { %v2574_v22 = vsel %vm589_vm3, %v6384_v38, %v6343_v6  ;;  %v2517_v14 = vsel %vm589_vm3, %v6344_v30, %v6383_v58  ;;  %v2518_v21 = vsel %vm589_vm3, %v6383_v58, %v6384_v38  ;;  %v2522_v30 = vsel %vm589_vm3, %v6353_v10, %v6354_v44 }
 0x474   : > { %v8718_v52 = vmax.f32 %v10183_v29, %v2574_v22  ;;  %v8722_v9 = vmax.f32 %v10184_v63, %v2517_v14  ;;  %v8726_v2 = vmax.f32 %v10185_v60, %v2518_v21  ;;  %v6387_v1 = vpop.permute.xlu1 %6386  ;;  %6431 = vrot.lane.b32.xlu1 %v6430_v37, %s6783_s24  ;;  %6426 = vrot.lane.b32.xlu0 %v6425_v62, %s6783_s24  ;;  %v10186_v16 = vmax.f32 %v8359_v12, 0.0 }
 0x475   : > { %v6389_v6 = vunpack.i.h.bf16 %v6387_v1  ;;  %v6388_v35 = vunpack.i.l.bf16 %v6387_v1  ;;  %v10187_v38 = vmax.f32 %v8470_v24, 0.0  ;;  %v10188_v58 = vmax.f32 %v8366_v5, 0.0 }
 0x476   : > { %v6440_v27 = vpack.i.bf16 %v8718_v52, %v8726_v2  ;;  %v6435_v0 = vpack.i.bf16 %v8722_v9, %v8706_v55  ;;  %v8737_v40 = vmax.f32 %v10186_v16, %v2519_v11  ;;  %v10189_v37 = vmax.f32 %v8463_v39, 0.0 }
 0x477   : > { %v2575_v45 = vsel %vm589_vm3, %v6389_v6, %v6348_v15  ;;  %v2520_v49 = vsel %vm589_vm3, %v6349_v50, %v6388_v35  ;;  %v2521_v34 = vsel %vm589_vm3, %v6388_v35, %v6389_v6  ;;  %v10190_v50 = vmax.f32 %v8370_v51, 0.0 }
 0x478   : > { %v8744_v19 = vmax.f32 %v10187_v38, %v2575_v45  ;;  %v8748_v48 = vmax.f32 %v10188_v58, %v2520_v49  ;;  %v8752_v12 = vmax.f32 %v10189_v37, %v2521_v34  ;;  %v6392_v62 = vpop.permute.xlu1 %6391  ;;  %6441 = vrot.lane.b32.xlu1 %v6440_v27, %s6783_s24  ;;  %6436 = vrot.lane.b32.xlu0 %v6435_v0, %s6783_s24  ;;  %v6364_v5 = vunpack.i.h.bf16 %v6362_v8 }
 0x479   : > { %v8758_v15 = vmax.f32 %v10190_v50, %v2522_v30  ;;  %v6394_v24 = vunpack.i.h.bf16 %v6392_v62  ;;  %v6393_v11 = vunpack.i.l.bf16 %v6392_v62  ;;  %v2525_v22 = vsel %vm589_vm3, %v6358_v4, %v6359_v53 }
 0x47a   : > { %v6450_v14 = vpack.i.bf16 %v8744_v19, %v8752_v12  ;;  %v6445_v39 = vpack.i.bf16 %v8748_v48, %v8737_v40  ;;  %v6363_v21 = vunpack.i.l.bf16 %v6362_v8  ;;  %v10191_v60 = vmax.f32 %v8483_v56, 0.0 }
 0x47b   : > { %v2576_v29 = vsel %vm589_vm3, %v6394_v24, %v6353_v10  ;;  %v2523_v63 = vsel %vm589_vm3, %v6354_v44, %v6393_v11  ;;  %v2524_v51 = vsel %vm589_vm3, %v6393_v11, %v6394_v24  ;;  %v10192_v30 = vmax.f32 %v8378_v17, 0.0 }
 0x47c   : > { %v8770_v1 = vmax.f32 %v10191_v60, %v2576_v29  ;;  %v10193_v35 = vmax.f32 %v8475_v46, 0.0  ;;  %v6397_v0 = vpop.permute.xlu1 %6396  ;;  %6451 = vrot.lane.b32.xlu1 %v6450_v14, %s6783_s24  ;;  %6446 = vrot.lane.b32.xlu0 %v6445_v39, %s6783_s24  ;;  %v10194_v16 = vmax.f32 %v8383_v26, 0.0  ;;  %v2528_v46 = vsel %vm589_vm3, %v6363_v21, %v6364_v5 }
 0x47d   : > { %v8774_v6 = vmax.f32 %v10192_v30, %v2523_v63  ;;  %v6399_v44 = vunpack.i.h.bf16 %v6397_v0  ;;  %v6398_v10 = vunpack.i.l.bf16 %v6397_v0  ;;  %v10195_v38 = vmax.f32 %v8496_v33, 0.0 }
 0x47e   : > { %v8778_v27 = vmax.f32 %v10193_v35, %v2524_v51  ;;  %v8784_v56 = vmax.f32 %v10194_v16, %v2525_v22  ;;  %v10196_v26 = vmax.f32 %v8391_v31, 0.0  ;;  %v10197_v62 = vmax.f32 %v8488_v23, 0.0 }
 0x47f   : > { %v6455_v8 = vpack.i.bf16 %v8774_v6, %v8758_v15  ;;  %v2577_v45 = vsel %vm589_vm3, %v6399_v44, %v6358_v4  ;;  %v2526_v49 = vsel %vm589_vm3, %v6359_v53, %v6398_v10  ;;  %v2527_v34 = vsel %vm589_vm3, %v6398_v10, %v6399_v44 }
 0x480   : > { %v6460_v17 = vpack.i.bf16 %v8770_v1, %v8778_v27  ;;  %v8796_v58 = vmax.f32 %v10195_v38, %v2577_v45  ;;  %v8800_v37 = vmax.f32 %v10196_v26, %v2526_v49  ;;  %v8804_v50 = vmax.f32 %v10197_v62, %v2527_v34  ;;  %v6402_v24 = vpop.permute.xlu1 %6401 }
 0x481   : > { %6456 = vrot.lane.b32.xlu0 %v6455_v8, %s6783_s24  ;;  %v6404_v53 = vunpack.i.h.bf16 %v6402_v24  ;;  %v6403_v4 = vunpack.i.l.bf16 %v6402_v24  ;;  %v10198_v31 = vmax.f32 %v8396_v36, 0.0  ;;  %v10199_v29 = vmax.f32 %v8509_v43, 0.0 }
 0x482   : > { %6461 = vrot.lane.b32.xlu1 %v6460_v17, %s6783_s24  ;;  %v6470_v33 = vpack.i.bf16 %v8796_v58, %v8804_v50  ;;  %v6465_v11 = vpack.i.bf16 %v8800_v37, %v8784_v56  ;;  %v10200_v51 = vmax.f32 %v8403_v3, 0.0  ;;  %v10201_v30 = vmax.f32 %v8501_v7, 0.0 }
 0x483   : > { %v8814_v22 = vmax.f32 %v10198_v31, %v2528_v46  ;;  %v2578_v23 = vsel %vm589_vm3, %v6404_v53, %v6363_v21  ;;  %v2529_v14 = vsel %vm589_vm3, %v6364_v5, %v6403_v4  ;;  %v2530_v39 = vsel %vm589_vm3, %v6403_v4, %v6404_v53 }
 0x484   : > { %v8821_v63 = vmax.f32 %v10199_v29, %v2578_v23  ;;  %v8825_v60 = vmax.f32 %v10200_v51, %v2529_v14  ;;  %v8829_v35 = vmax.f32 %v10201_v30, %v2530_v39 }
 0x485   : > { %6466 = vrot.lane.b32.xlu0 %v6465_v11, %s6783_s24 }
 0x486   : > { %6471 = vrot.lane.b32.xlu1 %v6470_v33, %s6783_s24  ;;  %v6480_v36 = vpack.i.bf16 %v8821_v63, %v8829_v35  ;;  %v6475_v43 = vpack.i.bf16 %v8825_v60, %v8814_v22 }
 0x489   : > { %6476 = vrot.lane.b32.xlu0 %v6475_v43, %s6783_s24 }
 0x48a   : > { %6481 = vrot.lane.b32.xlu1 %v6480_v36, %s6783_s24  ;;  %s6793_s24 = smov 8  }
 0x4de   : > { %v6412_v3 = vpop.permute.xlu1 %6411  ;;  %v6407_v5 = vpop.permute.xlu0 %6406 }
 0x4df   : > { %v6414_v21 = vunpack.i.h.bf16 %v6412_v3  ;;  %v6413_v7 = vunpack.i.l.bf16 %v6412_v3  ;;  %v6409_v0 = vunpack.i.h.bf16 %v6407_v5  ;;  %v6408_v44 = vunpack.i.l.bf16 %v6407_v5 }
 0x4e1   : > { %v2709_v10 = vsel %vm721_vm1, %v6413_v7, %v6414_v21  ;;  %v2707_v16 = vsel %vm721_vm1, %v6408_v44, %v6409_v0  ;;  %v2708_v17 = vsel %vm721_vm1, %v6409_v0, %v6413_v7  ;;  %v2771_v8 = vsel %vm721_vm1, %v6414_v21, %v6408_v44 }
 0x4e2   : > { %v6422_v46 = vpop.permute.xlu1 %6421  ;;  %v6417_v45 = vpop.permute.xlu0 %6416  ;;  %v2781_v62 = vmax.f32 %v8642_v59, %v2709_v10  ;;  %v2779_v24 = vmax.f32 %v8620_v28, %v2707_v16  ;;  %v2780_v53 = vmax.f32 %v8638_v61, %v2708_v17  ;;  %v2782_v4 = vmax.f32 %v8634_v13, %v2771_v8 }
 0x4e3   : > { %v6424_v49 = vunpack.i.h.bf16 %v6422_v46  ;;  %v6423_v34 = vunpack.i.l.bf16 %v6422_v46  ;;  %v6419_v38 = vunpack.i.h.bf16 %v6417_v45  ;;  %v6418_v26 = vunpack.i.l.bf16 %v6417_v45 }
 0x4e5   : > { %v2712_v33 = vsel %vm721_vm1, %v6423_v34, %v6424_v49  ;;  %v2710_v11 = vsel %vm721_vm1, %v6418_v26, %v6419_v38  ;;  %v2711_v31 = vsel %vm721_vm1, %v6419_v38, %v6423_v34  ;;  %v2772_v23 = vsel %vm721_vm1, %v6424_v49, %v6418_v26 }
 0x4e6   : > { %v2785_v14 = vmax.f32 %v8670_v20, %v2712_v33  ;;  %v2783_v39 = vmax.f32 %v8653_v47, %v2710_v11  ;;  %v6432_v29 = vpop.permute.xlu1 %6431  ;;  %v6427_v59 = vpop.permute.xlu0 %6426  ;;  %v2784_v28 = vmax.f32 %v8666_v41, %v2711_v31  ;;  %v2786_v61 = vmax.f32 %v8662_v54, %v2772_v23 }
 0x4e7   : > { %v6434_v51 = vunpack.i.h.bf16 %v6432_v29  ;;  %v6433_v13 = vunpack.i.l.bf16 %v6432_v29  ;;  %v6429_v30 = vunpack.i.h.bf16 %v6427_v59  ;;  %v6428_v36 = vunpack.i.l.bf16 %v6427_v59 }
 0x4e8   : > { %v2813_v43 = vpack.c.bf16 %v2785_v14, %v2781_v62  ;;  %v2811_v3 = vpack.c.bf16 %v2783_v39, %v2779_v24  ;;  %v2812_v5 = vpack.c.bf16 %v2784_v28, %v2780_v53  ;;  %v2814_v21 = vpack.c.bf16 %v2786_v61, %v2782_v4 }
 0x4e9   : > { %v2714_v7 = vsel %vm721_vm1, %v6429_v30, %v6433_v13  ;;  %v2773_v20 = vsel %vm721_vm1, %v6434_v51, %v6428_v36  ;;  %v2713_v47 = vsel %vm721_vm1, %v6428_v36, %v6429_v30  ;;  %v2715_v0 = vsel %vm721_vm1, %v6433_v13, %v6434_v51 }
 0x4ea   : > { %v6442_v44 = vpop.permute.xlu1 %6441  ;;  %v6437_v41 = vpop.permute.xlu0 %6436  ;;  %3115 = vmatprep.mubr.bf16.mxu0 %v2812_v5  ;;  %3180 = vmatprep.mubr.bf16.mxu1 %v2814_v21  ;;  %v2788_v8 = vmax.f32 %v8694_v32, %v2714_v7  ;;  %v2790_v46 = vmax.f32 %v8690_v18, %v2773_v20  ;;  %v2787_v45 = vmax.f32 %v8676_v57, %v2713_v47 }
 0x4eb   : > { %v6444_v54 = vunpack.i.h.bf16 %v6442_v44  ;;  %v6443_v10 = vunpack.i.l.bf16 %v6442_v44  ;;  %v6439_v16 = vunpack.i.h.bf16 %v6437_v41  ;;  %v6438_v17 = vunpack.i.l.bf16 %v6437_v41  ;;  %3116 = vmatmul.mubr.bf16.vlgmr.msra.gmra.mxu0 %v2811_v3  ;;  %3181 = vmatmul.mubr.bf16.vlgmr.msra.gmra.mxu1 %v2813_v43 }
 0x4ec   : > { %v2789_v49 = vmax.f32 %v8698_v25, %v2715_v0 }
 0x4ed   : > { %v2717_v34 = vsel %vm721_vm1, %v6439_v16, %v6443_v10  ;;  %v2774_v38 = vsel %vm721_vm1, %v6444_v54, %v6438_v17  ;;  %v2716_v26 = vsel %vm721_vm1, %v6438_v17, %v6439_v16  ;;  %v2718_v62 = vsel %vm721_vm1, %v6443_v10, %v6444_v54 }
 0x4ee   : > { %v6452_v24 = vpop.permute.xlu1 %6451  ;;  %v6447_v53 = vpop.permute.xlu0 %6446  ;;  %v2792_v4 = vmax.f32 %v8722_v9, %v2717_v34  ;;  %v2794_v32 = vmax.f32 %v8718_v52, %v2774_v38  ;;  %v2791_v18 = vmax.f32 %v8706_v55, %v2716_v26  ;;  %v2793_v57 = vmax.f32 %v8726_v2, %v2718_v62 }
 0x4ef   : > { %v6454_v33 = vunpack.i.h.bf16 %v6452_v24  ;;  %v6453_v25 = vunpack.i.l.bf16 %v6452_v24  ;;  %v6449_v11 = vunpack.i.h.bf16 %v6447_v53  ;;  %v6448_v31 = vunpack.i.l.bf16 %v6447_v53 }
 0x4f0   : > { %v2816_v23 = vpack.c.bf16 %v2792_v4, %v2788_v8  ;;  %v2818_v14 = vpack.c.bf16 %v2794_v32, %v2790_v46  ;;  %v2815_v39 = vpack.c.bf16 %v2791_v18, %v2787_v45  ;;  %v2817_v29 = vpack.c.bf16 %v2793_v57, %v2789_v49 }
 0x4f1   : > { %v2720_v59 = vsel %vm721_vm1, %v6449_v11, %v6453_v25  ;;  %v2775_v28 = vsel %vm721_vm1, %v6454_v33, %v6448_v31  ;;  %v2719_v9 = vsel %vm721_vm1, %v6448_v31, %v6449_v11  ;;  %v2721_v52 = vsel %vm721_vm1, %v6453_v25, %v6454_v33 }
 0x4f2   : > { %3123 = vmatprep.mubr.bf16.mxu0 %v2816_v23  ;;  %3188 = vmatprep.mubr.bf16.mxu1 %v2818_v14  ;;  %v2796_v36 = vmax.f32 %v8748_v48, %v2720_v59  ;;  %v2798_v43 = vmax.f32 %v8744_v19, %v2775_v28  ;;  %v2795_v3 = vmax.f32 %v8737_v40, %v2719_v9 }
 0x4f3   : > { %v6457_v55 = vpop.permute.xlu0 %6456  ;;  %3124 = vmatmul.mubr.bf16.gmra.mxu0 %v2815_v39  ;;  %3189 = vmatmul.mubr.bf16.gmra.mxu1 %v2817_v29  ;;  %v2797_v5 = vmax.f32 %v8752_v12, %v2721_v52 }
 0x4f4   : > { %v6462_v61 = vpop.permute.xlu1 %6461  ;;  %v6459_v13 = vunpack.i.h.bf16 %v6457_v55  ;;  %v6458_v30 = vunpack.i.l.bf16 %v6457_v55 }
 0x4f5   : > { %v6464_v2 = vunpack.i.h.bf16 %v6462_v61  ;;  %v6463_v51 = vunpack.i.l.bf16 %v6462_v61 }
 0x4f6   : > { %v2722_v20 = vsel %vm721_vm1, %v6458_v30, %v6459_v13 }
 0x4f7   : > { %v2723_v21 = vsel %vm721_vm1, %v6459_v13, %v6463_v51  ;;  %v2776_v7 = vsel %vm721_vm1, %v6464_v2, %v6458_v30  ;;  %v2724_v47 = vsel %vm721_vm1, %v6463_v51, %v6464_v2  ;;  %v6467_v44 = vpop.permute.xlu0 %6466  ;;  %v2799_v19 = vmax.f32 %v8758_v15, %v2722_v20 }
 0x4f8   : > { %v6472_v0 = vpop.permute.xlu1 %6471  ;;  %v2800_v41 = vmax.f32 %v8774_v6, %v2723_v21  ;;  %v2802_v48 = vmax.f32 %v8770_v1, %v2776_v7  ;;  %v2801_v40 = vmax.f32 %v8778_v27, %v2724_v47  ;;  %v6469_v10 = vunpack.i.h.bf16 %v6467_v44 }
 0x4f9   : > { %v6474_v54 = vunpack.i.h.bf16 %v6472_v0  ;;  %v6473_v12 = vunpack.i.l.bf16 %v6472_v0  ;;  %v6468_v16 = vunpack.i.l.bf16 %v6467_v44  ;;  %v2819_v46 = vpack.c.bf16 %v2799_v19, %v2795_v3 }
 0x4fa   : > { %v2820_v17 = vpack.c.bf16 %v2800_v41, %v2796_v36  ;;  %v2822_v8 = vpack.c.bf16 %v2802_v48, %v2798_v43  ;;  %v2821_v45 = vpack.c.bf16 %v2801_v40, %v2797_v5 }
 0x4fb   : > { %v2726_v49 = vsel %vm721_vm1, %v6469_v10, %v6473_v12  ;;  %v2777_v34 = vsel %vm721_vm1, %v6474_v54, %v6468_v16  ;;  %v2725_v6 = vsel %vm721_vm1, %v6468_v16, %v6469_v10  ;;  %v2727_v1 = vsel %vm721_vm1, %v6473_v12, %v6474_v54  ;;  %v6477_v15 = vpop.permute.xlu0 %6476 }
 0x4fc   : > { %v6482_v38 = vpop.permute.xlu1 %6481  ;;  %3131 = vmatprep.mubr.bf16.mxu0 %v2820_v17  ;;  %3196 = vmatprep.mubr.bf16.mxu1 %v2822_v8  ;;  %v6479_v62 = vunpack.i.h.bf16 %v6477_v15  ;;  %v6478_v24 = vunpack.i.l.bf16 %v6477_v15  ;;  %v2804_v53 = vmax.f32 %v8800_v37, %v2726_v49  ;;  %v2806_v4 = vmax.f32 %v8796_v58, %v2777_v34 }
 0x4fd   : > { %v6484_v27 = vunpack.i.h.bf16 %v6482_v38  ;;  %v6483_v26 = vunpack.i.l.bf16 %v6482_v38  ;;  %3132 = vmatmul.mubr.bf16.gmra.mxu0 %v2819_v46  ;;  %3197 = vmatmul.mubr.bf16.gmra.mxu1 %v2821_v45  ;;  %v2803_v32 = vmax.f32 %v8784_v56, %v2725_v6  ;;  %v2805_v18 = vmax.f32 %v8804_v50, %v2727_v1 }
 0x4fe   : > { %v2728_v25 = vsel %vm721_vm1, %v6478_v24, %v6479_v62 }
 0x4ff   : > { %v2730_v57 = vsel %vm721_vm1, %v6483_v26, %v6484_v27  ;;  %v2729_v33 = vsel %vm721_vm1, %v6479_v62, %v6483_v26  ;;  %v2778_v11 = vsel %vm721_vm1, %v6484_v27, %v6478_v24  ;;  %v2807_v37 = vmax.f32 %v8814_v22, %v2728_v25 }
 0x500   : > { %v2808_v31 = vmax.f32 %v8825_v60, %v2729_v33  ;;  %v2810_v23 = vmax.f32 %v8821_v63, %v2778_v11  ;;  %v2809_v58 = vmax.f32 %v8829_v35, %v2730_v57 }
 0x501   : > { %v2823_v39 = vpack.c.bf16 %v2807_v37, %v2803_v32 }
 0x502   : > { %v2824_v14 = vpack.c.bf16 %v2808_v31, %v2804_v53  ;;  %v2826_v56 = vpack.c.bf16 %v2810_v23, %v2806_v4  ;;  %v2825_v50 = vpack.c.bf16 %v2809_v58, %v2805_v18 }
 0x504   : > { %3139 = vmatprep.mubr.bf16.mxu0 %v2824_v14  ;;  %3204 = vmatprep.mubr.bf16.mxu1 %v2826_v56  ;;  %v6585_v56 = vld [vmem:[%s9896_s3 + $0x4] ss:$20 sps:$4 sm:$0xff]  }
 0x505   : > { %3140 = vmatmul.mubr.bf16.gmra.mxu0 %v2823_v39  ;;  %3205 = vmatmul.mubr.bf16.gmra.mxu1 %v2825_v50  ;;  %v6597_v39 = vld [vmem:[%s9896_s3 + $0xc] ss:$20 sps:$4 sm:$0xff]  }
 0x506   : > { %3747 = vmatprep.mubr.bf16.mxu0 %v6585_v56  ;;  %3844 = vmatprep.mubr.bf16.mxu1 %v6597_v39  ;;  %v3237_v50 = vld [vmem:[%s9899_s6] sm:$0x1] }
 0x5ab   : > { %v5780_v29 = vpop.f32.mrf.mxu0  ;;  %v5820_v59 = vpop.f32.mrf.mxu1 }
 0x5ad   : > { %v5781_v28 = vpop.f32.mrf.mxu0  ;;  %v5821_v9 = vpop.f32.mrf.mxu1 }
 0x5ae   : > { %v5782_v25 = vadd.f32 %v5781_v28, %v5780_v29  ;;  %v5822_v11 = vadd.f32 %v5821_v9, %v5820_v59  ;;  %v3292_v29 = vld [vmem:[%s9899_s6] sm:$0x2]  ;;  %v3265_v59 = vshrl.u32 %v3237_v50, 16 }
 0x5af   : > { %v5783_v52 = vpop.f32.mrf.mxu0  ;;  %v5823_v60 = vpop.f32.mrf.mxu1  ;;  %v3320_v28 = vshrl.u32 %v3292_v29, 16 }
 0x5b0   : > { %v3183_v58 = vadd.f32 %v5822_v11, %v5782_v25  ;;  %v3266_v9 = vpack.i.b16 %v3265_v59, %v3265_v59 }
 0x5b1   : > { %v5784_v61 = vpop.f32.mrf.mxu0  ;;  %v5824_v63 = vpop.f32.mrf.mxu1 }
 0x5b2   : > { %v5785_v32 = vadd.f32 %v5784_v61, %v5783_v52  ;;  %v5825_v18 = vadd.f32 %v5824_v63, %v5823_v60  ;;  %v3321_v52 = vpack.i.b16 %v3320_v28, %v3320_v28  ;;  %v10202_v63 = vld [vmem:[#allocation21_spill] sm:$0xff] }
 0x5b3   : > { %v5786_v55 = vpop.f32.mrf.mxu0  ;;  %v5826_v22 = vpop.f32.mrf.mxu1 }
 0x5b4   : > { %v3186_v23 = vadd.f32 %v5825_v18, %v5785_v32  ;;  %v10204_v32 = vld [vmem:[#allocation10_spill] sm:$0xff] }
 0x5b5   : > { %v5787_v2 = vpop.f32.mrf.mxu0  ;;  %v5827_v35 = vpop.f32.mrf.mxu1 }
 0x5b6   : > { %v5788_v62 = vadd.f32 %v5787_v2, %v5786_v55  ;;  %v5828_v24 = vadd.f32 %v5827_v35, %v5826_v22  ;;  %v8921_v14 = vpack.c.bf16 %v3186_v23, %v3183_v58  ;;  %v8988_v55 = vrot.slane %v3266_v9, %v10202_v63  ;;  %v10203_v22 = vld [vmem:[#allocation14_spill] sm:$0xff]  ;;  %v6586_v9 = vld [vmem:[%s9896_s3 + $0x2c] ss:$20 sps:$4 sm:$0xff]  }
 0x5b7   : > { %v5789_v51 = vpop.f32.mrf.mxu0  ;;  %v5829_v13 = vpop.f32.mrf.mxu1  ;;  %v8991_v2 = vrot.slane %v3321_v52, %v10203_v22 }
 0x5b8   : > { %v3191_v31 = vadd.f32 %v5828_v24, %v5788_v62 }
 0x5b9   : > { %v5790_v30 = vpop.f32.mrf.mxu0  ;;  %v5830_v36 = vpop.f32.mrf.mxu1 }
 0x5ba   : > { %v5791_v38 = vadd.f32 %v5790_v30, %v5789_v51  ;;  %v5831_v15 = vadd.f32 %v5830_v36, %v5829_v13 }
 0x5bc   : > { %v3194_v57 = vadd.f32 %v5831_v15, %v5791_v38 }
 0x5bd   : > { %v5792_v43 = vpop.f32.mrf.mxu0  ;;  %v5832_v3 = vpop.f32.mrf.mxu1 }
 0x5be   : > { %v8915_v37 = vpack.c.bf16 %v3194_v57, %v3191_v31  ;;  %v10205_v57 = vld [vmem:[#allocation4_spill] sm:$0xff] }
 0x5bf   : > { %v5793_v5 = vpop.f32.mrf.mxu0  ;;  %v5833_v21 = vpop.f32.mrf.mxu1 }
 0x5c0   : > { %v5794_v47 = vadd.f32 %v5793_v5, %v5792_v43  ;;  %v5834_v0 = vadd.f32 %v5833_v21, %v5832_v3 }
 0x5c1   : > { %v5795_v7 = vpop.f32.mrf.mxu0  ;;  %v5835_v20 = vpop.f32.mrf.mxu1 }
 0x5c2   : > { %v3199_v12 = vadd.f32 %v5834_v0, %v5794_v47 }
 0x5c3   : > { %v5796_v44 = vpop.f32.mrf.mxu0  ;;  %v5836_v41 = vpop.f32.mrf.mxu1 }
 0x5c4   : > { %v5797_v48 = vadd.f32 %v5796_v44, %v5795_v7  ;;  %v5837_v19 = vadd.f32 %v5836_v41, %v5835_v20  ;;  %v3239_v44 = vpack.i.b16 %v3237_v50, %v3237_v50  ;;  %v3294_v41 = vpack.i.b16 %v3292_v29, %v3292_v29  ;;  %v6583_v29 = vld [vmem:[%s9896_s3] ss:$20 sps:$4 sm:$0xff]  }
 0x5c5   : > { %v5798_v40 = vpop.f32.mrf.mxu0  ;;  %v5838_v54 = vpop.f32.mrf.mxu1 }
 0x5c6   : > { %v3202_v10 = vadd.f32 %v5837_v19, %v5797_v48 }
 0x5c7   : > { %v5799_v16 = vpop.f32.mrf.mxu0  ;;  %v5839_v17 = vpop.f32.mrf.mxu1 }
 0x5c8   : > { %v8903_v8 = vpack.c.bf16 %v3202_v10, %v3199_v12  ;;  %v5800_v49 = vadd.f32 %v5799_v16, %v5798_v40  ;;  %v5840_v34 = vadd.f32 %v5839_v17, %v5838_v54  ;;  %v3347_v40 = vld [vmem:[%s9899_s6] sm:$0x4]  ;;  %v9007_v12 = vld [vmem:[%s9899_s6] sm:$0x8]  ;;  %v9010_v10 = vrot.slane %v3239_v44, %v10202_v63 }
 0x5c9   : > { %v5801_v46 = vpop.f32.mrf.mxu0  ;;  %v5841_v45 = vpop.f32.mrf.mxu1  ;;  %v9013_v16 = vrot.slane %v3294_v41, %v10203_v22 }
 0x5ca   : > { %3253 = vrot.lane.b32.xlu1 %v8903_v8, %s6793_s24  ;;  %3308 = vrot.lane.b32.xlu0 %v8903_v8, %s6786_s10  ;;  %v3207_v53 = vadd.f32 %v5840_v34, %v5800_v49 }
 0x5cb   : > { %v5802_v6 = vpop.f32.mrf.mxu0  ;;  %v5842_v1 = vpop.f32.mrf.mxu1 }
 0x5cc   : > { %v5803_v27 = vadd.f32 %v5802_v6, %v5801_v46  ;;  %v5843_v26 = vadd.f32 %v5842_v1, %v5841_v45  ;;  %v3349_v45 = vshrl.u32 %v3347_v40, 16  ;;  %v3404_v6 = vshrl.u32 %v9007_v12, 16 }
 0x5ce   : > { %v3210_v4 = vadd.f32 %v5843_v26, %v5803_v27  ;;  %v3350_v27 = vpack.i.b16 %v3349_v45, %v3349_v45  ;;  %v3405_v26 = vpack.i.b16 %v3404_v6, %v3404_v6 }
 0x5d0   : > { %v8909_v33 = vpack.c.bf16 %v3210_v4, %v3207_v53  ;;  %v9022_v18 = vrot.slane %v3350_v27, %v10204_v32  ;;  %v9025_v25 = vrot.slane %v3405_v26, %v10205_v57  ;;  %v6610_v32 = vld [vmem:[%s9896_s3 + $0xf4] ss:$20 sps:$4 sm:$0xff]  }
 0x5d2   : > { %3255 = vrot.lane.b32.xlu1 %v8909_v33, %s6793_s24  ;;  %3310 = vrot.lane.b32.xlu0 %v8909_v33, %s6786_s10 }
 0x5d6   : > { %3251 = vrot.lane.b32.xlu1 %v8915_v37, %s6793_s24  ;;  %3306 = vrot.lane.b32.xlu0 %v8915_v37, %s6786_s10 }
 0x5da   : > { %3249 = vrot.lane.b32.xlu1 %v8921_v14, %s6793_s24  ;;  %3304 = vrot.lane.b32.xlu0 %v8921_v14, %s6786_s10 }
 0x5de   : > { %3225 = vrot.lane.b32.xlu1 %v8903_v8, %s6794_s21  ;;  %3280 = vrot.lane.b32.xlu0 %v8903_v8, %s6795_s20 }
 0x5e2   : > { %3227 = vrot.lane.b32.xlu1 %v8909_v33, %s6794_s21  ;;  %3282 = vrot.lane.b32.xlu0 %v8909_v33, %s6795_s20 }
 0x5e6   : > { %3223 = vrot.lane.b32.xlu1 %v8915_v37, %s6794_s21  ;;  %3278 = vrot.lane.b32.xlu0 %v8915_v37, %s6795_s20 }
 0x5ea   : > { %3221 = vrot.lane.b32.xlu1 %v8921_v14, %s6794_s21  ;;  %3276 = vrot.lane.b32.xlu0 %v8921_v14, %s6795_s20 }
 0x5ee   : > { %3337 = vrot.lane.b32.xlu1 %v8909_v33, %s6785_s26  ;;  %3394 = vrot.lane.b32.xlu0 %v8909_v33, %s10030_s25 }
 0x5f2   : > { %3335 = vrot.lane.b32.xlu1 %v8903_v8, %s6785_s26  ;;  %3392 = vrot.lane.b32.xlu0 %v8903_v8, %s10030_s25 }
 0x5f6   : > { %3333 = vrot.lane.b32.xlu1 %v8915_v37, %s6785_s26  ;;  %3390 = vrot.lane.b32.xlu0 %v8915_v37, %s10030_s25 }
 0x5fa   : > { %3331 = vrot.lane.b32.xlu1 %v8921_v14, %s6785_s26  ;;  %3388 = vrot.lane.b32.xlu0 %v8921_v14, %s10030_s25 }
 0x5fe   : > { %3364 = vrot.lane.b32.xlu1 %v8903_v8, %s6797_s11  ;;  %3366 = vrot.lane.b32.xlu0 %v8909_v33, %s6797_s11 }
 0x602   : > { %3360 = vrot.lane.b32.xlu1 %v8921_v14, %s6797_s11  ;;  %3362 = vrot.lane.b32.xlu0 %v8915_v37, %s6797_s11 }
 0x606   : > { %3419 = vrot.lane.b32.xlu1 %v8903_v8, %s10028_s18  ;;  %3421 = vrot.lane.b32.xlu0 %v8909_v33, %s10028_s18 }
 0x60a   : > { %3415 = vrot.lane.b32.xlu1 %v8921_v14, %s10028_s18  ;;  %3417 = vrot.lane.b32.xlu0 %v8915_v37, %s10028_s18 }
 0x63c   : > { %v3254_v60 = vpop.permute.xlu1 %3253  ;;  %v3309_v61 = vpop.permute.xlu0 %3308 }
 0x63d   : > { %v3329_v36 = vmul.bf16 %v8991_v2, %v3309_v61  ;;  %v3274_v5 = vmul.bf16 %v8988_v55, %v3254_v60 }
 0x644   : > { %v3256_v35 = vpop.permute.xlu1 %3255  ;;  %v3311_v51 = vpop.permute.xlu0 %3310 }
 0x645   : > { %v3275_v13 = vmul.bf16 %v8988_v55, %v3256_v35  ;;  %v3330_v30 = vmul.bf16 %v8991_v2, %v3311_v51 }
 0x647   : > { %5844 = vmatprep.subr.bf16.mxu0 %v3330_v30  ;;  %v6588_v30 = vld [vmem:[%s9896_s3 + $0x28] ss:$20 sps:$4 sm:$0xff]  }
 0x648   : > { %5845 = vmatpush3.bf16.msra.mxu0 %v3275_v13  ;;  %v3252_v43 = vpop.permute.xlu1 %3251  ;;  %v3307_v3 = vpop.permute.xlu0 %3306  ;;  %v3378_v13 = vpack.i.b16 %v9007_v12, %v9007_v12  ;;  %v6592_v12 = vld [vmem:[%s9896_s3 + $0x7c] ss:$20 sps:$4 sm:$0xff]  }
 0x649   : > { %5846 = vmatprep.subr.bf16.mxu0 %v3329_v36  ;;  %v3328_v21 = vmul.bf16 %v8991_v2, %v3307_v3  ;;  %v3273_v47 = vmul.bf16 %v8988_v55, %v3252_v43  ;;  %v6589_v3 = vld [vmem:[%s9896_s3 + $0x54] ss:$20 sps:$4 sm:$0xff]  }
 0x64c   : > { %5847 = vmatpush3.bf16.msra.mxu0 %v3274_v5  ;;  %v3250_v7 = vpop.permute.xlu1 %3249  ;;  %v3305_v20 = vpop.permute.xlu0 %3304 }
 0x64d   : > { %5848 = vmatprep.subr.bf16.mxu0 %v3328_v21  ;;  %v3327_v0 = vmul.bf16 %v8991_v2, %v3305_v20  ;;  %v3272_v54 = vmul.bf16 %v8988_v55, %v3250_v7  ;;  %v9055_v7 = vrot.slane %v3378_v13, %v10205_v57  ;;  %v3431_v20 = vld [vmem:[%s9899_s6 + $0x4] sm:$0x1]  ;;  %v6609_v57 = vld [vmem:[%s9896_s3 + $0x58] ss:$20 sps:$4 sm:$0xff]  }
 0x64e   : > { %v3433_v41 = vpack.i.b16 %v3431_v20, %v3431_v20  ;;  %v6633_v13 = vld [vmem:[%s9896_s3 + $0xd8] ss:$20 sps:$4 sm:$0xff]  }
 0x650   : > { %5849 = vmatpush3.bf16.msra.mxu0 %v3273_v47  ;;  %v3226_v48 = vpop.permute.xlu1 %3225  ;;  %v3281_v19 = vpop.permute.xlu0 %3280 }
 0x651   : > { %5850 = vmatprep.subr.bf16.mxu0 %v3327_v0  ;;  %v3302_v1 = vmul.bf16 %v9013_v16, %v3281_v19  ;;  %v3247_v62 = vmul.bf16 %v9010_v10, %v3226_v48  ;;  %v6591_v19 = vld [vmem:[%s9896_s3 + $0x50] ss:$20 sps:$4 sm:$0xff]  }
 0x654   : > { %v3228_v17 = vpop.permute.xlu1 %3227  ;;  %5851 = vmatpush3.bf16.msra.mxu0 %v3272_v54  ;;  %v3283_v46 = vpop.permute.xlu0 %3282 }
 0x655   : > { %v3248_v49 = vmul.bf16 %v9010_v10, %v3228_v17  ;;  %v3303_v34 = vmul.bf16 %v9013_v16, %v3283_v46  ;;  %v9070_v17 = vrot.slane %v3433_v41, %v10202_v63  ;;  %v6594_v63 = vld [vmem:[%s9896_s3 + $0x78] ss:$20 sps:$4 sm:$0xff]  }
 0x657   : > { %5852 = vmatprep.subr.bf16.mxu0 %v3303_v34 }
 0x658   : > { %v3224_v38 = vpop.permute.xlu1 %3223  ;;  %5853 = vmatpush3.bf16.msra.mxu0 %v3248_v49  ;;  %v3279_v15 = vpop.permute.xlu0 %3278 }
 0x659   : > { %5854 = vmatprep.subr.bf16.mxu0 %v3302_v1  ;;  %v3301_v24 = vmul.bf16 %v9013_v16, %v3279_v15  ;;  %v3246_v11 = vmul.bf16 %v9010_v10, %v3224_v38  ;;  %v6595_v15 = vld [vmem:[%s9896_s3 + $0x8] ss:$20 sps:$4 sm:$0xff]  }
 0x65c   : > { %v3222_v53 = vpop.permute.xlu1 %3221  ;;  %5855 = vmatpush3.bf16.msra.mxu0 %v3247_v62  ;;  %v3277_v4 = vpop.permute.xlu0 %3276  ;;  %v6600_v62 = vld [vmem:[%s9896_s3 + $0xa0] ss:$20 sps:$4 sm:$0xff]  }
 0x65d   : > { %5856 = vmatprep.subr.bf16.mxu0 %v3301_v24  ;;  %v3300_v31 = vmul.bf16 %v9013_v16, %v3277_v4  ;;  %v3245_v50 = vmul.bf16 %v9010_v10, %v3222_v53  ;;  %v6603_v24 = vld [vmem:[%s9896_s3 + $0x30] ss:$20 sps:$4 sm:$0xff]   ;;  %v6606_v4 = vld [vmem:[%s9896_s3 + $0xc8] ss:$20 sps:$4 sm:$0xff]  }
 0x65e   : > { %v6607_v53 = vld [vmem:[%s9896_s3 + $0x5c] ss:$20 sps:$4 sm:$0xff]  }
 0x660   : > { %v3338_v23 = vpop.permute.xlu1 %3337  ;;  %5857 = vmatpush3.bf16.msra.mxu0 %v3246_v11  ;;  %v3395_v58 = vpop.permute.xlu0 %3394  ;;  %v6613_v11 = vld [vmem:[%s9896_s3 + $0x84] ss:$20 sps:$4 sm:$0xff]  }
 0x661   : > { %v3359_v56 = vmul.bf16 %v9022_v18, %v3338_v23  ;;  %v3414_v39 = vmul.bf16 %v9025_v25, %v3395_v58  ;;  %5858 = vmatprep.subr.bf16.mxu0 %v3300_v31  ;;  %v6612_v31 = vld [vmem:[%s9896_s3 + $0xf0] ss:$20 sps:$4 sm:$0xff]   ;;  %v6615_v58 = vld [vmem:[%s9896_s3 + $0x80] ss:$20 sps:$4 sm:$0xff]  }
 0x662   : > { %v6616_v23 = vld [vmem:[%s9896_s3 + $0x11c] ss:$20 sps:$4 sm:$0xff]  }
 0x663   : > { %5908 = vmatprep.subr.bf16.mxu1 %v3414_v39  ;;  %v6618_v39 = vld [vmem:[%s9896_s3 + $0x118] ss:$20 sps:$4 sm:$0xff]  }
 0x664   : > { %v3336_v59 = vpop.permute.xlu1 %3335  ;;  %5859 = vmatpush3.bf16.msra.mxu0 %v3245_v50  ;;  %5909 = vmatpush3.bf16.msra.mxu1 %v3359_v56  ;;  %v3393_v28 = vpop.permute.xlu0 %3392  ;;  %v6619_v56 = vld [vmem:[%s9896_s3 + $0xac] ss:$20 sps:$4 sm:$0xff]   ;;  %v6622_v50 = vld [vmem:[%s9896_s3 + $0x10] ss:$20 sps:$4 sm:$0xff]  }
 0x665   : > { %v3358_v52 = vmul.bf16 %v9022_v18, %v3336_v59  ;;  %v3413_v60 = vmul.bf16 %v9025_v25, %v3393_v28  ;;  %6241 = vmatprep.subr.bf16.mxu0 %v10130_v42  ;;  %v6624_v59 = vld [vmem:[%s9896_s3 + $0xd4] ss:$20 sps:$4 sm:$0xff]   ;;  %v6623_v28 = vld [vmem:[%s9896_s3 + $0x38] ss:$20 sps:$4 sm:$0xff]  }
 0x667   : > { %3748 = vmatmul.mubr.bf16.vlgmr.msra.gmra.mxu0 %v6583_v29  ;;  %5910 = vmatprep.subr.bf16.mxu1 %v3413_v60  ;;  %v6621_v29 = vld [vmem:[%s9896_s3 + $0xa8] ss:$20 sps:$4 sm:$0xff]  }
 0x668   : > { %v3334_v61 = vpop.permute.xlu1 %3333  ;;  %5911 = vmatpush3.bf16.msra.mxu1 %v3358_v52  ;;  %v3391_v22 = vpop.permute.xlu0 %3390  ;;  %3755 = vmatprep.mubr.bf16.mxu0 %v6586_v9  ;;  %v6627_v9 = vld [vmem:[%s9896_s3 + $0x60] ss:$20 sps:$4 sm:$0xff]   ;;  %v6626_v52 = vld [vmem:[%s9896_s3 + $0xd0] ss:$20 sps:$4 sm:$0xff]  }
 0x669   : > { %v3357_v35 = vmul.bf16 %v9022_v18, %v3334_v61  ;;  %v3412_v51 = vmul.bf16 %v9025_v25, %v3391_v22  ;;  %6242 = vmatpush3.bf16.msra.mxu0 %v10130_v42  ;;  %v6629_v60 = vld [vmem:[%s9896_s3 + $0xfc] ss:$20 sps:$4 sm:$0xff]  }
 0x66a   : > { %v6628_v61 = vld [vmem:[%s9896_s3 + $0x88] ss:$20 sps:$4 sm:$0xff]   ;;  %v6632_v22 = vld [vmem:[%s9896_s3 + $0xb0] ss:$20 sps:$4 sm:$0xff]  }
 0x66b   : > { %5912 = vmatprep.subr.bf16.mxu1 %v3412_v51  ;;  %v6634_v51 = vld [vmem:[%s9896_s3 + $0x124] ss:$20 sps:$4 sm:$0xff]  }
 0x66c   : > { %v3332_v36 = vpop.permute.xlu1 %3331  ;;  %5913 = vmatpush3.bf16.msra.mxu1 %v3357_v35  ;;  %v3389_v43 = vpop.permute.xlu0 %3388  ;;  %v6631_v35 = vld [vmem:[%s9896_s3 + $0xf8] ss:$20 sps:$4 sm:$0xff]  }
 0x66d   : > { %v3356_v5 = vmul.bf16 %v9022_v18, %v3332_v36  ;;  %v3411_v21 = vmul.bf16 %v9025_v25, %v3389_v43  ;;  %v6636_v36 = vld [vmem:[%s9896_s3 + $0x120] ss:$20 sps:$4 sm:$0xff]   ;;  %v6638_v43 = vld [vmem:[%s9896_s3 + $0x128] ss:$20 sps:$4 sm:$0xff]  }
 0x66f   : > { %3756 = vmatmul.mubr.bf16.gmra.mxu0 %v6588_v30  ;;  %5914 = vmatprep.subr.bf16.mxu1 %v3411_v21  ;;  %v6637_v30 = vld [vmem:[%s9896_s3 + $0x100] ss:$20 sps:$4 sm:$0xff]  }
 0x670   : > { %v3365_v47 = vpop.permute.xlu1 %3364  ;;  %5915 = vmatpush3.bf16.msra.mxu1 %v3356_v5  ;;  %v3367_v0 = vpop.permute.xlu0 %3366  ;;  %3763 = vmatprep.mubr.bf16.mxu0 %v6589_v3 }
 0x671   : > { %v3387_v44 = vmul.bf16 %v9055_v7, %v3367_v0  ;;  %v3386_v48 = vmul.bf16 %v9055_v7, %v3365_v47 }
 0x673   : > { %5916 = vmatprep.subr.bf16.mxu1 %v3387_v44 }
 0x674   : > { %v3361_v40 = vpop.permute.xlu1 %3360  ;;  %5917 = vmatpush3.bf16.msra.mxu1 %v8909_v33  ;;  %v3363_v54 = vpop.permute.xlu0 %3362 }
 0x675   : > { %5918 = vmatprep.subr.bf16.mxu1 %v3386_v48  ;;  %v3385_v46 = vmul.bf16 %v9055_v7, %v3363_v54  ;;  %v3384_v33 = vmul.bf16 %v9055_v7, %v3361_v40 }
 0x677   : > { %3764 = vmatmul.mubr.bf16.gmra.mxu0 %v6591_v19 }
 0x678   : > { %v3420_v45 = vpop.permute.xlu1 %3419  ;;  %5919 = vmatpush3.bf16.msra.mxu1 %v8903_v8  ;;  %v3422_v49 = vpop.permute.xlu0 %3421  ;;  %3771 = vmatprep.mubr.bf16.mxu0 %v6592_v12  ;;  %v6598_v8 = vld [vmem:[%s9896_s3 + $0xa4] ss:$20 sps:$4 sm:$0xff]  }
 0x679   : > { %v3442_v34 = vmul.bf16 %v9070_v17, %v3422_v49  ;;  %5920 = vmatprep.subr.bf16.mxu1 %v3385_v46  ;;  %v3441_v6 = vmul.bf16 %v9070_v17, %v3420_v45 }
 0x67b   : > { %6243 = vmatprep.subr.bf16.mxu0 %v3442_v34 }
 0x67c   : > { %5921 = vmatpush3.bf16.msra.mxu1 %v8915_v37  ;;  %6244 = vmatpush3.bf16.msra.mxu0 %v3442_v34  ;;  %v3418_v1 = vpop.permute.xlu0 %3417  ;;  %v3416_v27 = vpop.permute.xlu1 %3415  ;;  %v6601_v37 = vld [vmem:[%s9896_s3 + $0x34] ss:$20 sps:$4 sm:$0xff]  }
 0x67d   : > { %5922 = vmatprep.subr.bf16.mxu1 %v3384_v33  ;;  %6245 = vmatprep.subr.bf16.mxu0 %v3441_v6  ;;  %v3440_v38 = vmul.bf16 %v9070_v17, %v3418_v1  ;;  %v3439_v26 = vmul.bf16 %v9070_v17, %v3416_v27 }
 0x67f   : > { %3772 = vmatmul.mubr.bf16.gmra.mxu0 %v6594_v63 }
 0x680   : > { %5923 = vmatpush3.bf16.msra.mxu1 %v8921_v14  ;;  %6246 = vmatpush3.bf16.msra.mxu0 %v3441_v6  ;;  %v6604_v14 = vld [vmem:[%s9896_s3 + $0xcc] ss:$20 sps:$4 sm:$0xff]  }
 0x681   : > { %6247 = vmatprep.subr.bf16.mxu0 %v3440_v38  ;;  %3779 = vmatprep.mubr.bf16.mxu0 %v6598_v8 }
 0x683   : > { %3845 = vmatmul.mubr.bf16.vlgmr.msra.gmra.mxu1 %v6595_v15 }
 0x684   : > { %6248 = vmatpush3.bf16.msra.mxu0 %v3440_v38  ;;  %3852 = vmatprep.mubr.bf16.mxu1 %v6601_v37 }
 0x685   : > { %6249 = vmatprep.subr.bf16.mxu0 %v3439_v26 }
 0x687   : > { %3780 = vmatmul.mubr.bf16.gmra.mxu0 %v6600_v62 }
 0x688   : > { %6250 = vmatpush3.bf16.msra.mxu0 %v3439_v26  ;;  %3787 = vmatprep.mubr.bf16.mxu0 %v6604_v14 }
 0x68b   : > { %3853 = vmatmul.mubr.bf16.gmra.mxu1 %v6603_v24 }
 0x68c   : > { %3860 = vmatprep.mubr.bf16.mxu1 %v6607_v53 }
 0x68f   : > { %3788 = vmatmul.mubr.bf16.gmra.mxu0 %v6606_v4 }
 0x690   : > { %3795 = vmatprep.mubr.bf16.mxu0 %v6610_v32 }
 0x693   : > { %3861 = vmatmul.mubr.bf16.gmra.mxu1 %v6609_v57 }
 0x694   : > { %3868 = vmatprep.mubr.bf16.mxu1 %v6613_v11 }
 0x697   : > { %3796 = vmatmul.mubr.bf16.gmra.mxu0 %v6612_v31 }
 0x698   : > { %3803 = vmatprep.mubr.bf16.mxu0 %v6616_v23 }
 0x69b   : > { %3869 = vmatmul.mubr.bf16.gmra.mxu1 %v6615_v58 }
 0x69c   : > { %3876 = vmatprep.mubr.bf16.mxu1 %v6619_v56 }
 0x69f   : > { %3804 = vmatmul.mubr.bf16.gmra.mxu0 %v6618_v39 }
 0x6a0   : > { %6251 = vmatprep.mubr.msk.bf16.mxu0 %vm1928_vm9, %v6622_v50 }
 0x6a3   : > { %3877 = vmatmul.mubr.bf16.gmra.mxu1 %v6621_v29 }
 0x6a4   : > { %3884 = vmatprep.mubr.bf16.mxu1 %v6624_v59 }
 0x6a7   : > { %6252 = vmatmul.mubr.msk.bf16.vlgmr.msra.gmra.mxu0 %vm1928_vm9, %v6623_v28 }
 0x6a8   : > { %6255 = vmatprep.mubr.msk.bf16.mxu0 %vm1928_vm9, %v6627_v9 }
 0x6ab   : > { %3885 = vmatmul.mubr.bf16.gmra.mxu1 %v6626_v52 }
 0x6ac   : > { %3892 = vmatprep.mubr.bf16.mxu1 %v6629_v60 }
 0x6af   : > { %6256 = vmatmul.mubr.msk.bf16.gmra.mxu0 %vm1928_vm9, %v6628_v61 }
 0x6b0   : > { %6259 = vmatprep.mubr.msk.bf16.mxu0 %vm1928_vm9, %v6632_v22 }
 0x6b3   : > { %3893 = vmatmul.mubr.bf16.gmra.mxu1 %v6631_v35 }
 0x6b4   : > { %3900 = vmatprep.mubr.bf16.mxu1 %v6634_v51 }
 0x6b7   : > { %6260 = vmatmul.mubr.msk.bf16.gmra.mxu0 %vm1928_vm9, %v6633_v13 }
 0x6b8   : > { %6263 = vmatprep.mubr.msk.bf16.mxu0 %vm1928_vm9, %v6637_v30 }
 0x6bb   : > { %3901 = vmatmul.mubr.bf16.gmra.mxu1 %v6636_v36 }
 0x6bf   : > { %6264 = vmatmul.mubr.msk.bf16.gmra.mxu0 %vm1928_vm9, %v6638_v43 }
 0x727   : > { %v5860_v3 = vpop.f32.mrf.mxu0 }
 0x729   : > { %v5861_v5 = vpop.f32.mrf.mxu0 }
 0x72a   : > { %v5862_v21 = vadd.f32 %v5861_v5, %v5860_v3 }
 0x72b   : > { %v5863_v20 = vpop.f32.mrf.mxu0 }
 0x72d   : > { %v5864_v47 = vpop.f32.mrf.mxu0 }
 0x72e   : > { %v5865_v53 = vadd.f32 %v5864_v47, %v5863_v20 }
 0x72f   : > { %v5866_v0 = vpop.f32.mrf.mxu0 }
 0x731   : > { %v5867_v44 = vpop.f32.mrf.mxu0 }
 0x732   : > { %v5868_v41 = vadd.f32 %v5867_v44, %v5866_v0 }
 0x733   : > { %v5869_v48 = vpop.f32.mrf.mxu0 }
 0x735   : > { %v5870_v19 = vpop.f32.mrf.mxu0 }
 0x736   : > { %v5871_v9 = vadd.f32 %v5870_v19, %v5869_v48 }
 0x737   : > { %v5872_v40 = vpop.f32.mrf.mxu0 }
 0x739   : > { %v5873_v54 = vpop.f32.mrf.mxu0 }
 0x73a   : > { %v5874_v12 = vadd.f32 %v5873_v54, %v5872_v40 }
 0x73b   : > { %v5875_v46 = vpop.f32.mrf.mxu0 }
 0x73d   : > { %v5876_v45 = vpop.f32.mrf.mxu0 }
 0x73e   : > { %v9185_v49 = vadd.f32 %v5876_v45, %v5875_v46 }
 0x73f   : > { %v5878_v34 = vpop.f32.mrf.mxu0 }
 0x741   : > { %v5879_v33 = vpop.f32.mrf.mxu0 }
 0x742   : > { %v9187_v6 = vadd.f32 %v5879_v33, %v5878_v34 }
 0x743   : > { %v5881_v63 = vpop.f32.mrf.mxu0  ;;  %v5924_v1 = vpop.f32.mrf.mxu1 }
 0x745   : > { %v5882_v8 = vpop.f32.mrf.mxu0  ;;  %v5925_v38 = vpop.f32.mrf.mxu1 }
 0x746   : > { %v9189_v15 = vadd.f32 %v5882_v8, %v5881_v63  ;;  %v5926_v27 = vadd.f32 %v5925_v38, %v5924_v1 }
 0x747   : > { %v5884_v37 = vpop.f32.mrf.mxu0  ;;  %v5927_v26 = vpop.f32.mrf.mxu1 }
 0x748   : > { %v3847_v62 = vadd.f32 %v5926_v27, %v5862_v21 }
 0x749   : > { %v5885_v14 = vpop.f32.mrf.mxu0  ;;  %v5928_v24 = vpop.f32.mrf.mxu1 }
 0x74a   : > { %v9191_v4 = vadd.f32 %v5885_v14, %v5884_v37  ;;  %v5929_v32 = vadd.f32 %v5928_v24, %v5927_v26 }
 0x74b   : > { %v9193_v57 = vpop.f32.mrf.mxu0  ;;  %v5930_v11 = vpop.f32.mrf.mxu1 }
 0x74c   : > { %v3850_v31 = vadd.f32 %v5929_v32, %v5865_v53 }
 0x74d   : > { %v9195_v23 = vpop.f32.mrf.mxu0  ;;  %v5931_v58 = vpop.f32.mrf.mxu1 }
 0x74e   : > { %v5932_v56 = vadd.f32 %v5931_v58, %v5930_v11 }
 0x74f   : > { %v9197_v39 = vpop.f32.mrf.mxu0  ;;  %v5933_v50 = vpop.f32.mrf.mxu1 }
 0x750   : > { %v3855_v29 = vadd.f32 %v5932_v56, %v5868_v41 }
 0x751   : > { %v9199_v59 = vpop.f32.mrf.mxu0  ;;  %v5934_v28 = vpop.f32.mrf.mxu1 }
 0x752   : > { %v5935_v52 = vadd.f32 %v5934_v28, %v5933_v50 }
 0x753   : > { %v9201_v60 = vpop.f32.mrf.mxu0  ;;  %v5936_v61 = vpop.f32.mrf.mxu1 }
 0x754   : > { %v3858_v22 = vadd.f32 %v5935_v52, %v5871_v9 }
 0x755   : > { %v9203_v35 = vpop.f32.mrf.mxu0  ;;  %v5937_v51 = vpop.f32.mrf.mxu1 }
 0x756   : > { %v5938_v13 = vadd.f32 %v5937_v51, %v5936_v61 }
 0x757   : > { %v9205_v30 = vpop.f32.mrf.mxu0  ;;  %v5939_v36 = vpop.f32.mrf.mxu1 }
 0x758   : > { %v3863_v43 = vadd.f32 %v5938_v13, %v5874_v12 }
 0x759   : > { %v9207_v3 = vpop.f32.mrf.mxu0  ;;  %v5940_v5 = vpop.f32.mrf.mxu1 }
 0x75a   : > { %v5941_v56 = vadd.f32 %v5940_v5, %v5939_v36 }
 0x75b   : > { %v9209_v21 = vpop.f32.mrf.mxu0  ;;  %v5942_v20 = vpop.f32.mrf.mxu1 }
 0x75c   : > { %v3866_v36 = vadd.f32 %v5941_v56, %v9185_v49 }
 0x75d   : > { %v9211_v47 = vpop.f32.mrf.mxu0  ;;  %v5943_v0 = vpop.f32.mrf.mxu1 }
 0x75e   : > { %v5944_v27 = vadd.f32 %v5943_v0, %v5942_v20 }
 0x75f   : > { %v9213_v44 = vpop.f32.mrf.mxu0  ;;  %v5945_v41 = vpop.f32.mrf.mxu1 }
 0x760   : > { %v3871_v61 = vadd.f32 %v5944_v27, %v9187_v6 }
 0x761   : > { %v5903_v48 = vpop.f32.mrf.mxu0  ;;  %v5946_v19 = vpop.f32.mrf.mxu1 }
 0x762   : > { %v5947_v53 = vadd.f32 %v5946_v19, %v5945_v41 }
 0x763   : > { %v9215_v40 = vpop.f32.mrf.mxu0  ;;  %v5948_v54 = vpop.f32.mrf.mxu1 }
 0x764   : > { %v3874_v20 = vadd.f32 %v5947_v53, %v9189_v15 }
 0x765   : > { %v9217_v46 = vpop.f32.mrf.mxu0  ;;  %v5949_v12 = vpop.f32.mrf.mxu1 }
 0x767   : > { %v5951_v45 = vpop.f32.mrf.mxu1  ;;  %v6253_v34 = vpop.f32.mrf.mxu0 }
 0x768   : > { %v3952_v1 = vadd.f32 %v6253_v34, %v3855_v29 }
 0x769   : > { %v5952_v33 = vpop.f32.mrf.mxu1  ;;  %v3943_v63 = vpop.f32.mrf.mxu0 }
 0x76a   : > { %v3944_v37 = vadd.f32 %v3943_v63, %v3847_v62  ;;  %v4008_v32 = vmax.f32 %v3952_v1, 0.0  ;;  %v5950_v63 = vadd.f32 %v5949_v12, %v5948_v54 }
 0x76b   : > { %v9219_v8 = vpop.f32.mrf.mxu1  ;;  %v6254_v38 = vpop.f32.mrf.mxu0 }
 0x76c   : > { %v3955_v26 = vadd.f32 %v6254_v38, %v3858_v22  ;;  %v4006_v9 = vmax.f32 %v3944_v37, 0.0  ;;  %v3879_v49 = vadd.f32 %v5950_v63, %v9191_v4 }
 0x76d   : > { %v9221_v14 = vpop.f32.mrf.mxu1  ;;  %v3946_v24 = vpop.f32.mrf.mxu0 }
 0x76e   : > { %v4009_v11 = vmax.f32 %v3955_v26, 0.0  ;;  %v3947_v58 = vadd.f32 %v3946_v24, %v3850_v31  ;;  %v5953_v26 = vadd.f32 %v5952_v33, %v5951_v45  ;;  %v5904_v45 = vadd.f32 %v5903_v48, %v9213_v44 }
 0x76f   : > { %v5957_v50 = vpop.f32.mrf.mxu1  ;;  %v6257_v28 = vpop.f32.mrf.mxu0  ;;  %v5898_v48 = vadd.f32 %v9207_v3, %v9205_v30 }
 0x770   : > { %v9223_v52 = vpack.c.bf16 %v4009_v11, %v4008_v32  ;;  %v4007_v29 = vmax.f32 %v3947_v58, 0.0  ;;  %v3968_v22 = vadd.f32 %v6257_v28, %v3871_v61 }
 0x771   : > { %v5958_v51 = vpop.f32.mrf.mxu1  ;;  %v3959_v13 = vpop.f32.mrf.mxu0 }
 0x772   : > { %v9226_v62 = vpack.c.bf16 %v4007_v29, %v4006_v9  ;;  %v3960_v19 = vadd.f32 %v3959_v13, %v3863_v43  ;;  %v4012_v1 = vmax.f32 %v3968_v22, 0.0  ;;  %v5889_v43 = vadd.f32 %v9195_v23, %v9193_v57 }
 0x773   : > { %v5960_v0 = vpop.f32.mrf.mxu1  ;;  %v6258_v41 = vpop.f32.mrf.mxu0  ;;  %v5901_v23 = vadd.f32 %v9211_v47, %v9209_v21  ;;  %v5895_v21 = vadd.f32 %v9203_v35, %v9201_v60 }
 0x774   : > { %v3971_v31 = vadd.f32 %v6258_v41, %v3874_v20  ;;  %v4010_v24 = vmax.f32 %v3960_v19, 0.0  ;;  %v3882_v28 = vadd.f32 %v5953_v26, %v5889_v43 }
 0x775   : > { %v5961_v5 = vpop.f32.mrf.mxu1  ;;  %v3962_v34 = vpop.f32.mrf.mxu0 }
 0x776   : > { %v4013_v38 = vmax.f32 %v3971_v31, 0.0  ;;  %v3963_v37 = vadd.f32 %v3962_v34, %v3866_v36  ;;  %v5907_v36 = vadd.f32 %v9217_v46, %v9215_v40  ;;  %v5962_v34 = vadd.f32 %v5961_v5, %v5960_v0 }
 0x777   : > { %v5963_v6 = vpop.f32.mrf.mxu1  ;;  %v6261_v27 = vpop.f32.mrf.mxu0  ;;  %v5892_v5 = vadd.f32 %v9199_v59, %v9197_v39 }
 0x778   : > { %v9230_v32 = vpack.c.bf16 %v4013_v38, %v4012_v1  ;;  %v4011_v11 = vmax.f32 %v3963_v37, 0.0  ;;  %v5959_v38 = vadd.f32 %v5958_v51, %v5957_v50  ;;  %v3895_v40 = vadd.f32 %v5962_v34, %v5898_v48 }
 0x779   : > { %v5964_v15 = vpop.f32.mrf.mxu1  ;;  %v3975_v53 = vpop.f32.mrf.mxu0 }
 0x77a   : > { %v9234_v58 = vpack.c.bf16 %v4011_v11, %v4010_v24  ;;  %v3976_v56 = vadd.f32 %v3975_v53, %v3879_v49  ;;  %v5965_v20 = vadd.f32 %v5964_v15, %v5963_v6  ;;  %v5956_v24 = vadd.f32 %v9221_v14, %v9219_v8  ;;  %v6656_v49 = vld [vmem:[%s9897_s4 + $0xc] ss:$40 sps:$4 sm:$0xff]  }
 0x77b   : > { %v5966_v54 = vpop.f32.mrf.mxu1  ;;  %v6262_v12 = vpop.f32.mrf.mxu0  ;;  %v3890_v11 = vadd.f32 %v5959_v38, %v5895_v21  ;;  %4983 = vmatprep.mubr.bf16.mxu0 %v6656_v49 }
 0x77c   : > { %v4014_v41 = vmax.f32 %v3976_v56, 0.0  ;;  %v3898_v26 = vadd.f32 %v5965_v20, %v5901_v23  ;;  %v3887_v51 = vadd.f32 %v5956_v24, %v5892_v5 }
 0x77d   : > { %v5967_v9 = vpop.f32.mrf.mxu1  ;;  %v3978_v29 = vpop.f32.mrf.mxu0  ;;  %v3987_v15 = vadd.f32 %v6262_v12, %v3890_v11 }
 0x77e   : > { %v5968_v33 = vadd.f32 %v5967_v9, %v5966_v54  ;;  %v3979_v61 = vadd.f32 %v3978_v29, %v3882_v28  ;;  %v3984_v60 = vadd.f32 %v6261_v27, %v3887_v51  ;;  %v6641_v27 = vld [vmem:[%s9897_s4 + $0x4] ss:$40 sps:$4 sm:$0xff]  }
 0x77f   : > { %v5969_v13 = vpop.f32.mrf.mxu1  ;;  %v6265_v22 = vpop.f32.mrf.mxu0  ;;  %v4017_v8 = vmax.f32 %v3987_v15, 0.0  ;;  %4886 = vmatprep.mubr.bf16.mxu1 %v6641_v27 }
 0x780   : > { %v4015_v19 = vmax.f32 %v3979_v61, 0.0  ;;  %v3903_v57 = vadd.f32 %v5968_v33, %v5904_v45  ;;  %v4016_v39 = vmax.f32 %v3984_v60, 0.0 }
 0x781   : > { %v5970_v4 = vpop.f32.mrf.mxu1  ;;  %v3991_v31 = vpop.f32.mrf.mxu0 }
 0x782   : > { %v9242_v63 = vpack.c.bf16 %v4015_v19, %v4014_v41  ;;  %v5971_v44 = vadd.f32 %v5970_v4, %v5969_v13  ;;  %v4000_v37 = vadd.f32 %v6265_v22, %v3903_v57  ;;  %v3992_v3 = vadd.f32 %v3991_v31, %v3895_v40 }
 0x783   : > { %v6266_v1 = vpop.f32.mrf.mxu0  ;;  %v9264_v59 = vpack.c.bf16 %v4017_v8, %v4016_v39  ;;  %v6647_v8 = vld [vmem:[%s9897_s4 + $0xa4] ss:$40 sps:$4 sm:$0xff]  }
 0x784   : > { %v3906_v6 = vadd.f32 %v5971_v44, %v5907_v36  ;;  %v4020_v30 = vmax.f32 %v4000_v37, 0.0  ;;  %v4018_v35 = vmax.f32 %v3992_v3, 0.0 }
 0x785   : > { %v3994_v47 = vpop.f32.mrf.mxu0 }
 0x786   : > { %v4003_v46 = vadd.f32 %v6266_v1, %v3906_v6  ;;  %v3995_v0 = vadd.f32 %v3994_v47, %v3898_v26 }
 0x788   : > { %v4021_v50 = vmax.f32 %v4003_v46, 0.0  ;;  %v4019_v43 = vmax.f32 %v3995_v0, 0.0  ;;  %v6639_v0 = vld [vmem:[%s9897_s4] ss:$40 sps:$4 sm:$0xff]  }
 0x78a   : > { %v9252_v53 = vpack.c.bf16 %v4021_v50, %v4020_v30  ;;  %v9258_v14 = vpack.c.bf16 %v4019_v43, %v4018_v35  ;;  %v6644_v30 = vld [vmem:[%s9897_s4 + $0x54] ss:$40 sps:$4 sm:$0xff]   ;;  %v6642_v43 = vld [vmem:[%s9897_s4 + $0x50] ss:$40 sps:$4 sm:$0xff]  }
 0x78c   : > { %4052 = vrot.lane.b32.xlu1 %v9252_v53, %s6794_s21  ;;  %4092 = vrot.lane.b32.xlu0 %v9252_v53, %s6793_s24 }
 0x790   : > { %4050 = vrot.lane.b32.xlu1 %v9258_v14, %s6794_s21  ;;  %4090 = vrot.lane.b32.xlu0 %v9258_v14, %s6793_s24 }
 0x794   : > { %4048 = vrot.lane.b32.xlu1 %v9264_v59, %s6794_s21  ;;  %4088 = vrot.lane.b32.xlu0 %v9264_v59, %s6793_s24 }
 0x798   : > { %4046 = vrot.lane.b32.xlu1 %v9242_v63, %s6794_s21  ;;  %4086 = vrot.lane.b32.xlu0 %v9242_v63, %s6793_s24 }
 0x79c   : > { %4044 = vrot.lane.b32.xlu1 %v9230_v32, %s6794_s21  ;;  %4084 = vrot.lane.b32.xlu0 %v9230_v32, %s6793_s24 }
 0x7a0   : > { %4042 = vrot.lane.b32.xlu1 %v9234_v58, %s6794_s21  ;;  %4082 = vrot.lane.b32.xlu0 %v9234_v58, %s6793_s24 }
 0x7a4   : > { %4040 = vrot.lane.b32.xlu1 %v9223_v52, %s6794_s21  ;;  %4080 = vrot.lane.b32.xlu0 %v9223_v52, %s6793_s24 }
 0x7a8   : > { %4038 = vrot.lane.b32.xlu1 %v9226_v62, %s6794_s21  ;;  %4078 = vrot.lane.b32.xlu0 %v9226_v62, %s6793_s24  ;;  %s10211_s24 = sand.u32 1, %s6773_s27   ;;  %s10214_s27 = sadd.s32 (%p6874_p5), 4294967295, %s6781_s29  }
 0x7a9   : > { %s5522_s21 = sshll.u32 %s10211_s24, 7 }
 0x7ac   : > { %4132 = vrot.lane.b32.xlu1 %v9252_v53, %s6795_s20  ;;  %4172 = vrot.lane.b32.xlu0 %v9252_v53, %s6786_s10 }
 0x7b0   : > { %4130 = vrot.lane.b32.xlu1 %v9258_v14, %s6795_s20  ;;  %4170 = vrot.lane.b32.xlu0 %v9258_v14, %s6786_s10 }
 0x7b4   : > { %4128 = vrot.lane.b32.xlu1 %v9264_v59, %s6795_s20  ;;  %4168 = vrot.lane.b32.xlu0 %v9264_v59, %s6786_s10 }
 0x7b8   : > { %4126 = vrot.lane.b32.xlu1 %v9242_v63, %s6795_s20  ;;  %4166 = vrot.lane.b32.xlu0 %v9242_v63, %s6786_s10 }
 0x7bc   : > { %4124 = vrot.lane.b32.xlu1 %v9230_v32, %s6795_s20  ;;  %4164 = vrot.lane.b32.xlu0 %v9230_v32, %s6786_s10 }
 0x7c0   : > { %4122 = vrot.lane.b32.xlu1 %v9234_v58, %s6795_s20  ;;  %4162 = vrot.lane.b32.xlu0 %v9234_v58, %s6786_s10 }
 0x7c4   : > { %4120 = vrot.lane.b32.xlu1 %v9223_v52, %s6795_s20  ;;  %4160 = vrot.lane.b32.xlu0 %v9223_v52, %s6786_s10 }
 0x7c8   : > { %4118 = vrot.lane.b32.xlu1 %v9226_v62, %s6795_s20  ;;  %4158 = vrot.lane.b32.xlu0 %v9226_v62, %s6786_s10  ;;  %s10206_s10 = smov 120  }
 0x7cc   : > { %4210 = vrot.lane.b32.xlu1 %v9258_v14, %s6785_s26  ;;  %4212 = vrot.lane.b32.xlu0 %v9252_v53, %s6785_s26 }
 0x7d0   : > { %4206 = vrot.lane.b32.xlu1 %v9242_v63, %s6785_s26  ;;  %4208 = vrot.lane.b32.xlu0 %v9264_v59, %s6785_s26 }
 0x7d4   : > { %4202 = vrot.lane.b32.xlu1 %v9234_v58, %s6785_s26  ;;  %4204 = vrot.lane.b32.xlu0 %v9230_v32, %s6785_s26 }
 0x7d8   : > { %4198 = vrot.lane.b32.xlu1 %v9226_v62, %s6785_s26  ;;  %4200 = vrot.lane.b32.xlu0 %v9223_v52, %s6785_s26  ;;  %s10207_s26 = smov 119  }
 0x7dc   : > { %4252 = vrot.lane.b32.xlu1 %v9252_v53, %s6797_s11  ;;  %4292 = vrot.lane.b32.xlu0 %v9252_v53, %s10206_s10 }
 0x7e0   : > { %4250 = vrot.lane.b32.xlu1 %v9258_v14, %s6797_s11  ;;  %4290 = vrot.lane.b32.xlu0 %v9258_v14, %s10206_s10 }
 0x7e4   : > { %4248 = vrot.lane.b32.xlu1 %v9264_v59, %s6797_s11  ;;  %4288 = vrot.lane.b32.xlu0 %v9264_v59, %s10206_s10 }
 0x7e8   : > { %4246 = vrot.lane.b32.xlu1 %v9242_v63, %s6797_s11  ;;  %4286 = vrot.lane.b32.xlu0 %v9242_v63, %s10206_s10 }
 0x7ec   : > { %4244 = vrot.lane.b32.xlu1 %v9230_v32, %s6797_s11  ;;  %4284 = vrot.lane.b32.xlu0 %v9230_v32, %s10206_s10 }
 0x7f0   : > { %4242 = vrot.lane.b32.xlu1 %v9234_v58, %s6797_s11  ;;  %4282 = vrot.lane.b32.xlu0 %v9234_v58, %s10206_s10 }
 0x7f4   : > { %4240 = vrot.lane.b32.xlu1 %v9223_v52, %s6797_s11  ;;  %4280 = vrot.lane.b32.xlu0 %v9223_v52, %s10206_s10 }
 0x7f8   : > { %4238 = vrot.lane.b32.xlu1 %v9226_v62, %s6797_s11  ;;  %4278 = vrot.lane.b32.xlu0 %v9226_v62, %s10206_s10  ;;  %s9806_s10 = scalar_lea.vmem [#allocation3], %s5522_s21 }
 0x7fc   : > { %4330 = vrot.lane.b32.xlu1 %v9258_v14, %s10207_s26  ;;  %4332 = vrot.lane.b32.xlu0 %v9252_v53, %s10207_s26 }
 0x7fe   : > { %v4053_v54 = vpop.permute.xlu1 %4052  ;;  %v4093_v12 = vpop.permute.xlu0 %4092 }
 0x7ff   : > { %v4077_v56 = vmul.bf16 %v4053_v54, %v9010_v10  ;;  %v4117_v28 = vmul.bf16 %v4093_v12, %v8988_v55 }
 0x800   : > { %4326 = vrot.lane.b32.xlu1 %v9242_v63, %s10207_s26  ;;  %4328 = vrot.lane.b32.xlu0 %v9264_v59, %s10207_s26 }
 0x801   : > { %5985 = vmatprep.subr.bf16.mxu1 %v4117_v28  ;;  %v6645_v28 = vld [vmem:[%s9897_s4 + $0xa0] ss:$40 sps:$4 sm:$0xff]  }
 0x802   : > { %5986 = vmatpush3.bf16.msra.mxu1 %v4077_v56  ;;  %v4051_v9 = vpop.permute.xlu1 %4050  ;;  %v4091_v29 = vpop.permute.xlu0 %4090 }
 0x803   : > { %v4076_v45 = vmul.bf16 %v4051_v9, %v9010_v10  ;;  %v4116_v33 = vmul.bf16 %v4091_v29, %v8988_v55 }
 0x804   : > { %4322 = vrot.lane.b32.xlu1 %v9234_v58, %s10207_s26  ;;  %4324 = vrot.lane.b32.xlu0 %v9230_v32, %s10207_s26 }
 0x805   : > { %5987 = vmatprep.subr.bf16.mxu1 %v4116_v33 }
 0x806   : > { %v4049_v61 = vpop.permute.xlu1 %4048  ;;  %5988 = vmatpush3.bf16.msra.mxu1 %v4076_v45  ;;  %v4089_v13 = vpop.permute.xlu0 %4088  ;;  %v6650_v45 = vld [vmem:[%s9897_s4 + $0xf4] ss:$40 sps:$4 sm:$0xff]  }
 0x807   : > { %v4075_v22 = vmul.bf16 %v4049_v61, %v9010_v10  ;;  %v4115_v20 = vmul.bf16 %v4089_v13, %v8988_v55 }
 0x808   : > { %4318 = vrot.lane.b32.xlu1 %v9226_v62, %s10207_s26  ;;  %4320 = vrot.lane.b32.xlu0 %v9223_v52, %s10207_s26  ;;  %s5760_s26 = sshll.u32 (%p6874_p5), %s10214_s27, 3 }
 0x809   : > { %5989 = vmatprep.subr.bf16.mxu1 %v4115_v20  ;;  %s5363_s13 = scalar_lea.vmem (%p6874_p5), %s9901_s8, %s5760_s26 }
 0x80a   : > { %5990 = vmatpush3.bf16.msra.mxu1 %v4075_v22  ;;  %v4047_v41 = vpop.permute.xlu1 %4046  ;;  %v4087_v19 = vpop.permute.xlu0 %4086 }
 0x80b   : > { %v4074_v57 = vmul.bf16 %v4047_v41, %v9010_v10  ;;  %v4114_v23 = vmul.bf16 %v4087_v19, %v8988_v55  ;;  %v6648_v19 = vld [vmem:[%s9897_s4 + $0xf0] ss:$40 sps:$4 sm:$0xff]  }
 0x80d   : > { %5991 = vmatprep.subr.bf16.mxu1 %v4114_v23 }
 0x80e   : > { %v4045_v4 = vpop.permute.xlu1 %4044  ;;  %5992 = vmatpush3.bf16.msra.mxu1 %v4074_v57  ;;  %v4085_v31 = vpop.permute.xlu0 %4084 }
 0x80f   : > { %v4073_v36 = vmul.bf16 %v4045_v4, %v9010_v10  ;;  %v4113_v34 = vmul.bf16 %v4085_v31, %v8988_v55  ;;  %v6653_v4 = vld [vmem:[%s9897_s4 + $0x144] ss:$40 sps:$4 sm:$0xff]  }
 0x811   : > { %5993 = vmatprep.subr.bf16.mxu1 %v4113_v34 }
 0x812   : > { %5994 = vmatpush3.bf16.msra.mxu1 %v4073_v36  ;;  %v4043_v44 = vpop.permute.xlu1 %4042  ;;  %v4083_v48 = vpop.permute.xlu0 %4082 }
 0x813   : > { %v4072_v1 = vmul.bf16 %v4043_v44, %v9010_v10  ;;  %v4112_v38 = vmul.bf16 %v4083_v48, %v8988_v55 }
 0x815   : > { %5995 = vmatprep.subr.bf16.mxu1 %v4112_v38  ;;  %v6651_v38 = vld [vmem:[%s9897_s4 + $0x140] ss:$40 sps:$4 sm:$0xff]  }
 0x816   : > { %v4041_v37 = vpop.permute.xlu1 %4040  ;;  %5996 = vmatpush3.bf16.msra.mxu1 %v4072_v1  ;;  %v4081_v6 = vpop.permute.xlu0 %4080 }
 0x817   : > { %v4071_v26 = vmul.bf16 %v4041_v37, %v9010_v10  ;;  %v4111_v21 = vmul.bf16 %v4081_v6, %v8988_v55  ;;  %v6654_v37 = vld [vmem:[%s9897_s4 + $0x8] ss:$40 sps:$4 sm:$0xff]  }
 0x819   : > { %5997 = vmatprep.subr.bf16.mxu1 %v4111_v21  ;;  %v6659_v21 = vld [vmem:[%s9897_s4 + $0x194] ss:$40 sps:$4 sm:$0xff]  }
 0x81a   : > { %5998 = vmatpush3.bf16.msra.mxu1 %v4071_v26  ;;  %v4039_v47 = vpop.permute.xlu1 %4038  ;;  %v4079_v24 = vpop.permute.xlu0 %4078 }
 0x81b   : > { %v4070_v40 = vmul.bf16 %v4039_v47, %v9010_v10  ;;  %v4110_v46 = vmul.bf16 %v4079_v24, %v8988_v55 }
 0x81d   : > { %5999 = vmatprep.subr.bf16.mxu1 %v4110_v46  ;;  %v6657_v46 = vld [vmem:[%s9897_s4 + $0x190] ss:$40 sps:$4 sm:$0xff]  }
 0x81e   : > { %v4133_v5 = vpop.permute.xlu1 %4132  ;;  %6000 = vmatpush3.bf16.msra.mxu1 %v4070_v40  ;;  %v4173_v11 = vpop.permute.xlu0 %4172 }
 0x81f   : > { %v4157_v3 = vmul.bf16 %v4133_v5, %v9013_v16  ;;  %v4197_v50 = vmul.bf16 %v4173_v11, %v8991_v2 }
 0x821   : > { %4887 = vmatmul.mubr.bf16.vlgmr.msra.gmra.mxu1 %v6639_v0  ;;  %6049 = vmatprep.subr.bf16.mxu0 %v4197_v50  ;;  %v6660_v0 = vld [vmem:[%s9897_s4 + $0x58] ss:$40 sps:$4 sm:$0xff]  }
 0x822   : > { %v4131_v10 = vpop.permute.xlu1 %4130  ;;  %6050 = vmatpush3.bf16.msra.mxu0 %v4157_v3  ;;  %v4171_v55 = vpop.permute.xlu0 %4170  ;;  %4894 = vmatprep.mubr.bf16.mxu1 %v6644_v30  ;;  %v6665_v3 = vld [vmem:[%s9897_s4 + $0x1e4] ss:$40 sps:$4 sm:$0xff]  }
 0x823   : > { %v4156_v51 = vmul.bf16 %v4131_v10, %v9013_v16  ;;  %v4196_v15 = vmul.bf16 %v4171_v55, %v8991_v2 }
 0x825   : > { %6051 = vmatprep.subr.bf16.mxu0 %v4196_v15 }
 0x826   : > { %v4129_v60 = vpop.permute.xlu1 %4128  ;;  %6052 = vmatpush3.bf16.msra.mxu0 %v4156_v51  ;;  %v4169_v35 = vpop.permute.xlu0 %4168  ;;  %v6663_v51 = vld [vmem:[%s9897_s4 + $0x1e0] ss:$40 sps:$4 sm:$0xff]  }
 0x827   : > { %v4155_v39 = vmul.bf16 %v4129_v60, %v9013_v16  ;;  %v4195_v27 = vmul.bf16 %v4169_v35, %v8991_v2  ;;  %v6671_v35 = vld [vmem:[%s9897_s4 + $0x234] ss:$40 sps:$4 sm:$0xff]  }
 0x829   : > { %4895 = vmatmul.mubr.bf16.gmra.mxu1 %v6642_v43  ;;  %6053 = vmatprep.subr.bf16.mxu0 %v4195_v27 }
 0x82a   : > { %v4127_v49 = vpop.permute.xlu1 %4126  ;;  %6054 = vmatpush3.bf16.msra.mxu0 %v4155_v39  ;;  %v4167_v54 = vpop.permute.xlu0 %4166  ;;  %4902 = vmatprep.mubr.bf16.mxu1 %v6647_v8  ;;  %v6674_v39 = vld [vmem:[%s9897_s4 + $0xfc] ss:$40 sps:$4 sm:$0xff]  }
 0x82b   : > { %v4154_v12 = vmul.bf16 %v4127_v49, %v9013_v16  ;;  %v4194_v56 = vmul.bf16 %v4167_v54, %v8991_v2 }
 0x82d   : > { %6055 = vmatprep.subr.bf16.mxu0 %v4194_v56  ;;  %v6669_v56 = vld [vmem:[%s9897_s4 + $0x230] ss:$40 sps:$4 sm:$0xff]  }
 0x82e   : > { %v4125_v9 = vpop.permute.xlu1 %4124  ;;  %6056 = vmatpush3.bf16.msra.mxu0 %v4154_v12  ;;  %v4165_v29 = vpop.permute.xlu0 %4164 }
 0x82f   : > { %v4153_v33 = vmul.bf16 %v4125_v9, %v9013_v16  ;;  %v4193_v61 = vmul.bf16 %v4165_v29, %v8991_v2 }
 0x831   : > { %4903 = vmatmul.mubr.bf16.gmra.mxu1 %v6645_v28  ;;  %6057 = vmatprep.subr.bf16.mxu0 %v4193_v61  ;;  %v6672_v28 = vld [vmem:[%s9897_s4 + $0xf8] ss:$40 sps:$4 sm:$0xff]  }
 0x832   : > { %v4123_v13 = vpop.permute.xlu1 %4122  ;;  %6058 = vmatpush3.bf16.msra.mxu0 %v4153_v33  ;;  %v4163_v22 = vpop.permute.xlu0 %4162  ;;  %4910 = vmatprep.mubr.bf16.mxu1 %v6650_v45 }
 0x833   : > { %v4152_v20 = vmul.bf16 %v4123_v13, %v9013_v16  ;;  %v4192_v41 = vmul.bf16 %v4163_v22, %v8991_v2  ;;  %v6680_v13 = vld [vmem:[%s9897_s4 + $0x14] ss:$40 sps:$4 sm:$0xff]  }
 0x835   : > { %6059 = vmatprep.subr.bf16.mxu0 %v4192_v41 }
 0x836   : > { %v4121_v57 = vpop.permute.xlu1 %4120  ;;  %6060 = vmatpush3.bf16.msra.mxu0 %v4152_v20  ;;  %v4161_v23 = vpop.permute.xlu0 %4160 }
 0x837   : > { %v4151_v31 = vmul.bf16 %v4121_v57, %v9013_v16  ;;  %v4191_v36 = vmul.bf16 %v4161_v23, %v8991_v2  ;;  %v6675_v57 = vld [vmem:[%s9897_s4 + $0x148] ss:$40 sps:$4 sm:$0xff]  }
 0x839   : > { %4911 = vmatmul.mubr.bf16.gmra.mxu1 %v6648_v19  ;;  %6061 = vmatprep.subr.bf16.mxu0 %v4191_v36 }
 0x83a   : > { %v4119_v34 = vpop.permute.xlu1 %4118  ;;  %6062 = vmatpush3.bf16.msra.mxu0 %v4151_v31  ;;  %v4159_v44 = vpop.permute.xlu0 %4158  ;;  %4918 = vmatprep.mubr.bf16.mxu1 %v6653_v4  ;;  %v6678_v4 = vld [vmem:[%s9897_s4 + $0x10] ss:$40 sps:$4 sm:$0xff]  }
 0x83b   : > { %v4150_v48 = vmul.bf16 %v4119_v34, %v9013_v16  ;;  %v4190_v1 = vmul.bf16 %v4159_v44, %v8991_v2  ;;  %v6662_v2 = vld [vmem:[%s9897_s4 + $0x5c] ss:$40 sps:$4 sm:$0xff]   ;;  %v10208_v44 = vmov 0  }
 0x83c   : > { %v6686_v34 = vld [vmem:[%s9897_s4 + $0x64] ss:$40 sps:$4 sm:$0xff]  }
 0x83d   : > { %6063 = vmatprep.subr.bf16.mxu0 %v4190_v1 }
 0x83e   : > { %v4211_v6 = vpop.permute.xlu1 %4210  ;;  %6064 = vmatpush3.bf16.msra.mxu0 %v4150_v48  ;;  %v4213_v26 = vpop.permute.xlu0 %4212 }
 0x83f   : > { %v4237_v16 = vmul.bf16 %v4213_v26, %v9022_v18  ;;  %v4236_v47 = vmul.bf16 %v4211_v6, %v9022_v18 }
 0x841   : > { %4919 = vmatmul.mubr.bf16.gmra.mxu1 %v6651_v38  ;;  %4984 = vmatmul.mubr.bf16.vlgmr.msra.gmra.mxu0 %v6654_v37  ;;  %v6681_v37 = vld [vmem:[%s9897_s4 + $0x198] ss:$40 sps:$4 sm:$0xff]  }
 0x842   : > { %6113 = vmatprep.subr.bf16.mxu1 %v4237_v16  ;;  %v4207_v24 = vpop.permute.xlu1 %4206  ;;  %v4209_v40 = vpop.permute.xlu0 %4208  ;;  %4926 = vmatprep.mubr.bf16.mxu1 %v6659_v21  ;;  %v6684_v21 = vld [vmem:[%s9897_s4 + $0x60] ss:$40 sps:$4 sm:$0xff]   ;;  %v6689_v16 = vld [vmem:[%s9897_s4 + $0x1ec] ss:$40 sps:$4 sm:$0xff]  }
 0x843   : > { %6114 = vmatpush3.bf16.msra.mxu1 %v9252_v53  ;;  %4991 = vmatprep.mubr.bf16.mxu0 %v6662_v2  ;;  %v4235_v5 = vmul.bf16 %v4209_v40, %v9022_v18  ;;  %v6668_v53 = vld [vmem:[%s9897_s4 + $0xac] ss:$40 sps:$4 sm:$0xff]   ;;  %v4234_v50 = vmul.bf16 %v4207_v24, %v9022_v18 }
 0x844   : > { %6115 = vmatprep.subr.bf16.mxu1 %v4236_v47  ;;  %v6692_v24 = vld [vmem:[%s9897_s4 + $0xb4] ss:$40 sps:$4 sm:$0xff]  }
 0x846   : > { %v4203_v11 = vpop.permute.xlu1 %4202  ;;  %v4205_v30 = vpop.permute.xlu0 %4204 }
 0x847   : > { %6116 = vmatpush3.bf16.msra.mxu1 %v9258_v14  ;;  %v6666_v14 = vld [vmem:[%s9897_s4 + $0xa8] ss:$40 sps:$4 sm:$0xff]   ;;  %v4233_v15 = vmul.bf16 %v4205_v30, %v9022_v18  ;;  %v4232_v27 = vmul.bf16 %v4203_v11, %v9022_v18 }
 0x848   : > { %6117 = vmatprep.subr.bf16.mxu1 %v4235_v5  ;;  %v6687_v11 = vld [vmem:[%s9897_s4 + $0x1e8] ss:$40 sps:$4 sm:$0xff]  }
 0x849   : > { %4927 = vmatmul.mubr.bf16.gmra.mxu1 %v6657_v46  ;;  %4992 = vmatmul.mubr.bf16.gmra.mxu0 %v6660_v0 }
 0x84a   : > { %v4199_v10 = vpop.permute.xlu1 %4198  ;;  %v4201_v55 = vpop.permute.xlu0 %4200  ;;  %4934 = vmatprep.mubr.bf16.mxu1 %v6665_v3  ;;  %4999 = vmatprep.mubr.bf16.mxu0 %v6668_v53  ;;  %v6690_v3 = vld [vmem:[%s9897_s4 + $0xb0] ss:$40 sps:$4 sm:$0xff]  }
 0x84b   : > { %6118 = vmatpush3.bf16.msra.mxu1 %v9264_v59  ;;  %v4231_v9 = vmul.bf16 %v4201_v55, %v9022_v18  ;;  %v4230_v22 = vmul.bf16 %v4199_v10, %v9022_v18 }
 0x84c   : > { %6119 = vmatprep.subr.bf16.mxu1 %v4234_v50 }
 0x84e   : > { %v4253_v43 = vpop.permute.xlu1 %4252  ;;  %v4293_v60 = vpop.permute.xlu0 %4292 }
 0x84f   : > { %v4277_v8 = vmul.bf16 %v4253_v43, %v9055_v7  ;;  %6120 = vmatpush3.bf16.msra.mxu1 %v9242_v63  ;;  %v4317_v59 = vmul.bf16 %v4293_v60, %v9025_v25  ;;  %v6701_v43 = vld [vmem:[%s9897_s4 + $0x154] ss:$40 sps:$4 sm:$0xff]  }
 0x850   : > { %6121 = vmatprep.subr.bf16.mxu1 %v4233_v15  ;;  %v6704_v60 = vld [vmem:[%s9897_s4 + $0x1c] ss:$40 sps:$4 sm:$0xff]  }
 0x851   : > { %4935 = vmatmul.mubr.bf16.gmra.mxu1 %v6663_v51  ;;  %5000 = vmatmul.mubr.bf16.gmra.mxu0 %v6666_v14  ;;  %v6693_v51 = vld [vmem:[%s9897_s4 + $0x238] ss:$40 sps:$4 sm:$0xff]  }
 0x852   : > { %6177 = vmatprep.subr.bf16.mxu0 %v4317_v59  ;;  %v4251_v49 = vpop.permute.xlu1 %4250  ;;  %v4291_v54 = vpop.permute.xlu0 %4290  ;;  %4942 = vmatprep.mubr.bf16.mxu1 %v6671_v35  ;;  %v6696_v14 = vld [vmem:[%s9897_s4 + $0x100] ss:$40 sps:$4 sm:$0xff]  }
 0x853   : > { %v4276_v12 = vmul.bf16 %v4251_v49, %v9055_v7  ;;  %6122 = vmatpush3.bf16.msra.mxu1 %v9230_v32  ;;  %6178 = vmatpush3.bf16.msra.mxu0 %v4277_v8  ;;  %v4316_v63 = vmul.bf16 %v4291_v54, %v9025_v25  ;;  %v6677_v32 = vld [vmem:[%s9897_s4 + $0x14c] ss:$40 sps:$4 sm:$0xff]  }
 0x854   : > { %6123 = vmatprep.subr.bf16.mxu1 %v4232_v27  ;;  %5007 = vmatprep.mubr.bf16.mxu0 %v6674_v39  ;;  %v6702_v39 = vld [vmem:[%s9897_s4 + $0x18] ss:$40 sps:$4 sm:$0xff]  }
 0x855   : > { %6179 = vmatprep.subr.bf16.mxu0 %v4316_v63  ;;  %v6699_v27 = vld [vmem:[%s9897_s4 + $0x150] ss:$40 sps:$4 sm:$0xff]   ;;  %v6710_v63 = vld [vmem:[%s9897_s4 + $0x6c] ss:$40 sps:$4 sm:$0xff]  }
 0x856   : > { %v4249_v29 = vpop.permute.xlu1 %4248  ;;  %v4289_v45 = vpop.permute.xlu0 %4288 }
 0x857   : > { %v4275_v33 = vmul.bf16 %v4249_v29, %v9055_v7  ;;  %6124 = vmatpush3.bf16.msra.mxu1 %v9234_v58  ;;  %6180 = vmatpush3.bf16.msra.mxu0 %v4276_v12  ;;  %v4315_v61 = vmul.bf16 %v4289_v45, %v9025_v25  ;;  %v6707_v12 = vld [vmem:[%s9897_s4 + $0x1a4] ss:$40 sps:$4 sm:$0xff]   ;;  %v6705_v29 = vld [vmem:[%s9897_s4 + $0x1a0] ss:$40 sps:$4 sm:$0xff]  }
 0x858   : > { %6125 = vmatprep.subr.bf16.mxu1 %v4231_v9  ;;  %v6708_v9 = vld [vmem:[%s9897_s4 + $0x68] ss:$40 sps:$4 sm:$0xff]  }
 0x859   : > { %4943 = vmatmul.mubr.bf16.gmra.mxu1 %v6669_v56  ;;  %5008 = vmatmul.mubr.bf16.gmra.mxu0 %v6672_v28 }
 0x85a   : > { %6181 = vmatprep.subr.bf16.mxu0 %v4315_v61  ;;  %v4247_v20 = vpop.permute.xlu1 %4246  ;;  %v4287_v41 = vpop.permute.xlu0 %4286  ;;  %5015 = vmatprep.mubr.bf16.mxu0 %v6677_v32  ;;  %v6716_v61 = vld [vmem:[%s9897_s4 + $0xbc] ss:$40 sps:$4 sm:$0xff]  }
 0x85b   : > { %v4274_v19 = vmul.bf16 %v4247_v20, %v9055_v7  ;;  %6126 = vmatpush3.bf16.msra.mxu1 %v9223_v52  ;;  %6182 = vmatpush3.bf16.msra.mxu0 %v4275_v33  ;;  %v4314_v58 = vmul.bf16 %v4287_v41, %v9025_v25  ;;  %v6683_v52 = vld [vmem:[%s9897_s4 + $0x19c] ss:$40 sps:$4 sm:$0xff]   ;;  %v6711_v20 = vld [vmem:[%s9897_s4 + $0x1f0] ss:$40 sps:$4 sm:$0xff]   ;;  %v6722_v41 = vld [vmem:[%s9897_s4 + $0x10c] ss:$40 sps:$4 sm:$0xff]  }
 0x85c   : > { %6127 = vmatprep.subr.bf16.mxu1 %v4230_v22  ;;  %5080 = vmatprep.mubr.bf16.mxu1 %v6680_v13  ;;  %v6713_v33 = vld [vmem:[%s9897_s4 + $0x1f4] ss:$40 sps:$4 sm:$0xff]   ;;  %v6714_v22 = vld [vmem:[%s9897_s4 + $0xb8] ss:$40 sps:$4 sm:$0xff]  }
 0x85d   : > { %6183 = vmatprep.subr.bf16.mxu0 %v4314_v58  ;;  %v6717_v58 = vld [vmem:[%s9897_s4 + $0x240] ss:$40 sps:$4 sm:$0xff]  }
 0x85e   : > { %v4245_v23 = vpop.permute.xlu1 %4244  ;;  %v4285_v18 = vpop.permute.xlu0 %4284 }
 0x85f   : > { %v4273_v31 = vmul.bf16 %v4245_v23, %v9055_v7  ;;  %6128 = vmatpush3.bf16.msra.mxu1 %v9226_v62  ;;  %6184 = vmatpush3.bf16.msra.mxu0 %v4274_v19  ;;  %v4313_v36 = vmul.bf16 %v4285_v18, %v9025_v25  ;;  %v6720_v19 = vld [vmem:[%s9897_s4 + $0x108] ss:$40 sps:$4 sm:$0xff]   ;;  %v6728_v23 = vld [vmem:[%s9897_s4 + $0xc4] ss:$40 sps:$4 sm:$0xff]   ;;  %v6723_v18 = vld [vmem:[%s9897_s4 + $0x158] ss:$40 sps:$4 sm:$0xff]  }
 0x860   : > { %6267 = vmatprep.subr.bf16.mxu1 %v10208_v44 }
 0x861   : > { %5016 = vmatmul.mubr.bf16.gmra.mxu0 %v6675_v57  ;;  %6185 = vmatprep.subr.bf16.mxu0 %v4313_v36  ;;  %v6725_v57 = vld [vmem:[%s9897_s4 + $0x15c] ss:$40 sps:$4 sm:$0xff]   ;;  %v6729_v36 = vld [vmem:[%s9897_s4 + $0x1a8] ss:$40 sps:$4 sm:$0xff]  }
 0x862   : > { %5081 = vmatmul.mubr.bf16.vlgmr.msra.gmra.mxu1 %v6678_v4  ;;  %v4243_v48 = vpop.permute.xlu1 %4242  ;;  %v4283_v1 = vpop.permute.xlu0 %4282  ;;  %5023 = vmatprep.mubr.bf16.mxu0 %v6683_v52  ;;  %v6726_v4 = vld [vmem:[%s9897_s4 + $0xc0] ss:$40 sps:$4 sm:$0xff]   ;;  %v6731_v52 = vld [vmem:[%s9897_s4 + $0x1ac] ss:$40 sps:$4 sm:$0xff]  }
 0x863   : > { %v4272_v38 = vmul.bf16 %v4243_v48, %v9055_v7  ;;  %6186 = vmatpush3.bf16.msra.mxu0 %v4273_v31  ;;  %v4312_v62 = vmul.bf16 %v4283_v1, %v9025_v25  ;;  %5088 = vmatprep.mubr.bf16.mxu1 %v6686_v34  ;;  %v6732_v31 = vld [vmem:[%s9897_s4 + $0x114] ss:$40 sps:$4 sm:$0xff]   ;;  %v6734_v34 = vld [vmem:[%s9897_s4 + $0x110] ss:$40 sps:$4 sm:$0xff]   ;;  %v6740_v1 = vld [vmem:[%s9897_s4 + $0x160] ss:$40 sps:$4 sm:$0xff]  }
 0x864   : > { %v6737_v48 = vld [vmem:[%s9897_s4 + $0x1fc] ss:$40 sps:$4 sm:$0xff]  }
 0x865   : > { %6187 = vmatprep.subr.bf16.mxu0 %v4312_v62  ;;  %v6744_v62 = vld [vmem:[%s9897_s4 + $0x1b4] ss:$40 sps:$4 sm:$0xff]  }
 0x866   : > { %v4241_v6 = vpop.permute.xlu1 %4240  ;;  %v4281_v26 = vpop.permute.xlu0 %4280 }
 0x867   : > { %v4271_v2 = vmul.bf16 %v4241_v6, %v9055_v7  ;;  %6188 = vmatpush3.bf16.msra.mxu0 %v4272_v38  ;;  %v4311_v47 = vmul.bf16 %v4281_v26, %v9025_v25  ;;  %v6743_v38 = vld [vmem:[%s9897_s4 + $0x24c] ss:$40 sps:$4 sm:$0xff]   ;;  %v6746_v6 = vld [vmem:[%s9897_s4 + $0x1b0] ss:$40 sps:$4 sm:$0xff]  }
 0x868   : > { %v6749_v26 = vld [vmem:[%s9897_s4 + $0x24] ss:$40 sps:$4 sm:$0xff]  }
 0x869   : > { %5024 = vmatmul.mubr.bf16.gmra.mxu0 %v6681_v37  ;;  %6189 = vmatprep.subr.bf16.mxu0 %v4311_v47  ;;  %v6741_v37 = vld [vmem:[%s9897_s4 + $0x248] ss:$40 sps:$4 sm:$0xff]   ;;  %v6753_v47 = vld [vmem:[%s9897_s4 + $0x74] ss:$40 sps:$4 sm:$0xff]  }
 0x86a   : > { %5089 = vmatmul.mubr.bf16.gmra.mxu1 %v6684_v21  ;;  %v4239_v40 = vpop.permute.xlu1 %4238  ;;  %v4279_v46 = vpop.permute.xlu0 %4278  ;;  %5031 = vmatprep.mubr.bf16.mxu0 %v6689_v16  ;;  %v6750_v21 = vld [vmem:[%s9897_s4 + $0x204] ss:$40 sps:$4 sm:$0xff]   ;;  %v6747_v16 = vld [vmem:[%s9897_s4 + $0x20] ss:$40 sps:$4 sm:$0xff]  }
 0x86b   : > { %v4270_v0 = vmul.bf16 %v4239_v40, %v9055_v7  ;;  %6190 = vmatpush3.bf16.msra.mxu0 %v4271_v2  ;;  %v4310_v5 = vmul.bf16 %v4279_v46, %v9025_v25  ;;  %5096 = vmatprep.mubr.bf16.mxu1 %v6692_v24  ;;  %v6695_v7 = vld [vmem:[%s9897_s4 + $0x23c] ss:$40 sps:$4 sm:$0xff]   ;;  %v6752_v2 = vld [vmem:[%s9897_s4 + $0x200] ss:$40 sps:$4 sm:$0xff]   ;;  %v6757_v40 = vld [vmem:[%s9897_s4 + $0x70] ss:$40 sps:$4 sm:$0xff]  }
 0x86c   : > { %v6698_v25 = vld [vmem:[%s9897_s4 + $0x104] ss:$40 sps:$4 sm:$0xff]   ;;  %v6755_v24 = vld [vmem:[%s9897_s4 + $0x254] ss:$40 sps:$4 sm:$0xff]   ;;  %v6758_v46 = vld [vmem:[%s9897_s4 + $0x250] ss:$40 sps:$4 sm:$0xff]  }
 0x86d   : > { %6191 = vmatprep.subr.bf16.mxu0 %v4310_v5 }
 0x86e   : > { %v4333_v30 = vpop.permute.xlu0 %4332  ;;  %v4331_v50 = vpop.permute.xlu1 %4330 }
 0x86f   : > { %6192 = vmatpush3.bf16.msra.mxu0 %v4270_v0  ;;  %v4357_v53 = vmul.bf16 %v4333_v30, %v9070_v17  ;;  %v4356_v10 = vmul.bf16 %v4331_v50, %v9070_v17 }
 0x870   : > { %5242 = vmatprep.subr.bf16.mxu0 %v10208_v44 }
 0x871   : > { %5032 = vmatmul.mubr.bf16.gmra.mxu0 %v6687_v11  ;;  %6276 = vmatpush1.bf16.msra.mxu1 %v4357_v53 }
 0x872   : > { %5097 = vmatmul.mubr.bf16.gmra.mxu1 %v6690_v3  ;;  %6268 = vmatprep.subr.bf16.mxu1 %v10208_v44  ;;  %v4329_v55 = vpop.permute.xlu0 %4328  ;;  %v4327_v35 = vpop.permute.xlu1 %4326 }
 0x873   : > { %5039 = vmatprep.mubr.bf16.mxu0 %v6695_v7  ;;  %5104 = vmatprep.mubr.bf16.mxu1 %v6698_v25  ;;  %v4355_v15 = vmul.bf16 %v4329_v55, %v9070_v17  ;;  %v4354_v8 = vmul.bf16 %v4327_v35, %v9070_v17 }
 0x875   : > { %6277 = vmatpush1.bf16.msra.mxu1 %v4356_v10 }
 0x876   : > { %6269 = vmatprep.subr.bf16.mxu1 %v10208_v44  ;;  %v4325_v59 = vpop.permute.xlu0 %4324  ;;  %v4323_v54 = vpop.permute.xlu1 %4322 }
 0x877   : > { %v4353_v49 = vmul.bf16 %v4325_v59, %v9070_v17  ;;  %v4352_v56 = vmul.bf16 %v4323_v54, %v9070_v17 }
 0x879   : > { %5040 = vmatmul.mubr.bf16.gmra.mxu0 %v6693_v51  ;;  %6278 = vmatpush1.bf16.msra.mxu1 %v4355_v15 }
 0x87a   : > { %5105 = vmatmul.mubr.bf16.gmra.mxu1 %v6696_v14  ;;  %6270 = vmatprep.subr.bf16.mxu1 %v10208_v44  ;;  %v4321_v28 = vpop.permute.xlu0 %4320  ;;  %v4319_v32 = vpop.permute.xlu1 %4318 }
 0x87b   : > { %5112 = vmatprep.mubr.bf16.mxu1 %v6701_v43  ;;  %5177 = vmatprep.mubr.bf16.mxu0 %v6704_v60  ;;  %v4351_v45 = vmul.bf16 %v4321_v28, %v9070_v17  ;;  %v4350_v13 = vmul.bf16 %v4319_v32, %v9070_v17  ;;  %v6719_v17 = vld [vmem:[%s9897_s4 + $0x244] ss:$40 sps:$4 sm:$0xff]  }
 0x87d   : > { %6279 = vmatpush1.bf16.msra.mxu1 %v4354_v8 }
 0x87e   : > { %6271 = vmatprep.subr.bf16.mxu1 %v10208_v44 }
 0x881   : > { %5178 = vmatmul.mubr.bf16.vlgmr.msra.gmra.mxu0 %v6702_v39  ;;  %6280 = vmatpush1.bf16.msra.mxu1 %v4353_v49 }
 0x882   : > { %5113 = vmatmul.mubr.bf16.gmra.mxu1 %v6699_v27  ;;  %5243 = vmatpush1.bf16.msra.mxu0 %v4357_v53 }
 0x883   : > { %5244 = vmatprep.subr.bf16.mxu0 %v10208_v44  ;;  %6272 = vmatprep.subr.bf16.mxu1 %v10208_v44 }
 0x884   : > { %5120 = vmatprep.mubr.bf16.mxu1 %v6707_v12  ;;  %5185 = vmatprep.mubr.bf16.mxu0 %v6710_v63 }
 0x885   : > { %6281 = vmatpush1.bf16.msra.mxu1 %v4352_v56 }
 0x886   : > { %5245 = vmatpush1.bf16.msra.mxu0 %v4356_v10  ;;  %6273 = vmatprep.subr.bf16.mxu1 %v10208_v44 }
 0x887   : > { %5246 = vmatprep.subr.bf16.mxu0 %v10208_v44 }
 0x889   : > { %5186 = vmatmul.mubr.bf16.gmra.mxu0 %v6708_v9  ;;  %6282 = vmatpush1.bf16.msra.mxu1 %v4351_v45 }
 0x88a   : > { %5121 = vmatmul.mubr.bf16.gmra.mxu1 %v6705_v29  ;;  %5247 = vmatpush1.bf16.msra.mxu0 %v4355_v15 }
 0x88b   : > { %5248 = vmatprep.subr.bf16.mxu0 %v10208_v44  ;;  %6274 = vmatprep.subr.bf16.mxu1 %v10208_v44 }
 0x88c   : > { %5128 = vmatprep.mubr.bf16.mxu1 %v6713_v33  ;;  %5193 = vmatprep.mubr.bf16.mxu0 %v6716_v61 }
 0x88d   : > { %6283 = vmatpush1.bf16.msra.mxu1 %v4350_v13 }
 0x88e   : > { %5249 = vmatpush1.bf16.msra.mxu0 %v4354_v8  ;;  %6275 = vmatprep.subr.bf16.mxu1 %v10208_v44 }
 0x88f   : > { %5250 = vmatprep.subr.bf16.mxu0 %v10208_v44 }
 0x891   : > { %5194 = vmatmul.mubr.bf16.gmra.mxu0 %v6714_v22  ;;  %6284 = vmatpush2.bf16.msra.mxu1 %v10130_v42 }
 0x892   : > { %5129 = vmatmul.mubr.bf16.gmra.mxu1 %v6711_v20  ;;  %5251 = vmatpush1.bf16.msra.mxu0 %v4353_v49 }
 0x893   : > { %5252 = vmatprep.subr.bf16.mxu0 %v10208_v44  ;;  %5136 = vmatprep.mubr.bf16.mxu1 %v6719_v17 }
 0x894   : > { %5201 = vmatprep.mubr.bf16.mxu0 %v6722_v41 }
 0x896   : > { %5253 = vmatpush1.bf16.msra.mxu0 %v4352_v56 }
 0x897   : > { %5254 = vmatprep.subr.bf16.mxu0 %v10208_v44 }
 0x899   : > { %5202 = vmatmul.mubr.bf16.gmra.mxu0 %v6720_v19 }
 0x89a   : > { %5137 = vmatmul.mubr.bf16.gmra.mxu1 %v6717_v58  ;;  %5255 = vmatpush1.bf16.msra.mxu0 %v4351_v45 }
 0x89b   : > { %5256 = vmatprep.subr.bf16.mxu0 %v10208_v44  ;;  %5209 = vmatprep.mubr.bf16.mxu0 %v6725_v57 }
 0x89c   : > { %5753 = vmatprep.mubr.msk.bf16.mxu1 %vm421_vm6, %v6728_v23 }
 0x89e   : > { %5257 = vmatpush1.bf16.msra.mxu0 %v4350_v13 }
 0x89f   : > { %5272 = vmatprep.subr.bf16.mxu0 %v10208_v44  ;;  %v6738_v44 = vld [vmem:[%s9897_s4 + $0x164] ss:$40 sps:$4 sm:$0xff]  }
 0x8a1   : > { %5210 = vmatmul.mubr.bf16.gmra.mxu0 %v6723_v18 }
 0x8a2   : > { %5291 = vmatmul.mubr.bf16.vlgmr.msra.gmra.mxu1 %v6726_v4  ;;  %5217 = vmatprep.mubr.bf16.mxu0 %v6731_v52 }
 0x8a3   : > { %5754 = vmatprep.mubr.msk.bf16.mxu1 %vm421_vm6, %v6732_v31  ;;  %5273 = vmatpush2.bf16.msra.mxu0 %v10130_v42  ;;  %v6735_v42 = vld [vmem:[%s9897_s4 + $0x1f8] ss:$40 sps:$4 sm:$0xff]  }
 0x8a9   : > { %5218 = vmatmul.mubr.bf16.gmra.mxu0 %v6729_v36 }
 0x8aa   : > { %5299 = vmatmul.mubr.bf16.gmra.mxu1 %v6734_v34  ;;  %5225 = vmatprep.mubr.bf16.mxu0 %v6737_v48 }
 0x8ab   : > { %5755 = vmatprep.mubr.msk.bf16.mxu1 %vm421_vm6, %v6738_v44 }
 0x8b1   : > { %5226 = vmatmul.mubr.bf16.gmra.mxu0 %v6735_v42 }
 0x8b2   : > { %5307 = vmatmul.mubr.bf16.gmra.mxu1 %v6740_v1  ;;  %5233 = vmatprep.mubr.bf16.mxu0 %v6743_v38 }
 0x8b3   : > { %5756 = vmatprep.mubr.msk.bf16.mxu1 %vm421_vm6, %v6744_v62 }
 0x8b9   : > { %5234 = vmatmul.mubr.bf16.gmra.mxu0 %v6741_v37 }
 0x8ba   : > { %5315 = vmatmul.mubr.bf16.gmra.mxu1 %v6746_v6  ;;  %5751 = vmatprep.mubr.msk.bf16.mxu0 %vm421_vm6, %v6749_v26 }
 0x8bb   : > { %5757 = vmatprep.mubr.msk.bf16.mxu1 %vm421_vm6, %v6750_v21 }
 0x8c1   : > { %5275 = vmatmul.mubr.bf16.vlgmr.msra.gmra.mxu0 %v6747_v16 }
 0x8c2   : > { %5323 = vmatmul.mubr.bf16.gmra.mxu1 %v6752_v2  ;;  %5752 = vmatprep.mubr.msk.bf16.mxu0 %vm421_vm6, %v6753_v47 }
 0x8c3   : > { %5758 = vmatprep.mubr.msk.bf16.mxu1 %vm421_vm6, %v6755_v24 }
 0x8c9   : > { %5283 = vmatmul.mubr.bf16.gmra.mxu0 %v6757_v40 }
 0x8ca   : > { %5331 = vmatmul.mubr.bf16.gmra.mxu1 %v6758_v46 }
 0x8e1   : > { %v6001_v0 = vpop.f32.mrf.mxu1 }
 0x8e3   : > { %v6002_v5 = vpop.f32.mrf.mxu1 }
 0x8e4   : > { %v6003_v11 = vadd.f32 %v6002_v5, %v6001_v0 }
 0x8e5   : > { %v6004_v30 = vpop.f32.mrf.mxu1 }
 0x8e7   : > { %v6005_v3 = vpop.f32.mrf.mxu1 }
 0x8e8   : > { %v6006_v53 = vadd.f32 %v6005_v3, %v6004_v30 }
 0x8e9   : > { %v6007_v7 = vpop.f32.mrf.mxu1 }
 0x8eb   : > { %v6008_v25 = vpop.f32.mrf.mxu1 }
 0x8ec   : > { %v6009_v50 = vadd.f32 %v6008_v25, %v6007_v7 }
 0x8ed   : > { %v6010_v10 = vpop.f32.mrf.mxu1 }
 0x8ef   : > { %v6011_v55 = vpop.f32.mrf.mxu1 }
 0x8f0   : > { %v6012_v51 = vadd.f32 %v6011_v55, %v6010_v10 }
 0x8f1   : > { %v6013_v14 = vpop.f32.mrf.mxu1 }
 0x8f3   : > { %v6014_v15 = vpop.f32.mrf.mxu1 }
 0x8f4   : > { %v6015_v43 = vadd.f32 %v6014_v15, %v6013_v14 }
 0x8f5   : > { %v6016_v60 = vpop.f32.mrf.mxu1 }
 0x8f7   : > { %v6017_v35 = vpop.f32.mrf.mxu1 }
 0x8f8   : > { %v6018_v8 = vadd.f32 %v6017_v35, %v6016_v60 }
 0x8f9   : > { %v6019_v59 = vpop.f32.mrf.mxu1 }
 0x8fb   : > { %v6020_v39 = vpop.f32.mrf.mxu1 }
 0x8fc   : > { %v6021_v27 = vadd.f32 %v6020_v39, %v6019_v59 }
 0x8fd   : > { %v6022_v49 = vpop.f32.mrf.mxu1 }
 0x8ff   : > { %v6023_v54 = vpop.f32.mrf.mxu1 }
 0x900   : > { %v6024_v12 = vadd.f32 %v6023_v54, %v6022_v49 }
 0x901   : > { %v6025_v63 = vpop.f32.mrf.mxu1  ;;  %v6065_v56 = vpop.f32.mrf.mxu0 }
 0x903   : > { %v6026_v28 = vpop.f32.mrf.mxu1  ;;  %v6066_v9 = vpop.f32.mrf.mxu0 }
 0x904   : > { %v6027_v29 = vadd.f32 %v6026_v28, %v6025_v63  ;;  %v6067_v45 = vadd.f32 %v6066_v9, %v6065_v56 }
 0x905   : > { %v6028_v32 = vpop.f32.mrf.mxu1  ;;  %v6068_v33 = vpop.f32.mrf.mxu0 }
 0x906   : > { %v4986_v61 = vadd.f32 %v6067_v45, %v6003_v11 }
 0x907   : > { %v6029_v13 = vpop.f32.mrf.mxu1  ;;  %v6069_v22 = vpop.f32.mrf.mxu0 }
 0x908   : > { %v6030_v20 = vadd.f32 %v6029_v13, %v6028_v32  ;;  %v6070_v17 = vadd.f32 %v6069_v22, %v6068_v33 }
 0x909   : > { %v6031_v41 = vpop.f32.mrf.mxu1  ;;  %v6071_v19 = vpop.f32.mrf.mxu0 }
 0x90a   : > { %v4989_v58 = vadd.f32 %v6070_v17, %v6006_v53 }
 0x90b   : > { %v6032_v57 = vpop.f32.mrf.mxu1  ;;  %v6072_v23 = vpop.f32.mrf.mxu0 }
 0x90c   : > { %v6033_v18 = vadd.f32 %v6032_v57, %v6031_v41  ;;  %v6073_v4 = vadd.f32 %v6072_v23, %v6071_v19 }
 0x90d   : > { %v6034_v52 = vpop.f32.mrf.mxu1  ;;  %v6074_v31 = vpop.f32.mrf.mxu0 }
 0x90e   : > { %v4994_v36 = vadd.f32 %v6073_v4, %v6009_v50 }
 0x90f   : > { %v6035_v34 = vpop.f32.mrf.mxu1  ;;  %v6075_v48 = vpop.f32.mrf.mxu0 }
 0x910   : > { %v6036_v44 = vadd.f32 %v6035_v34, %v6034_v52  ;;  %v6076_v42 = vadd.f32 %v6075_v48, %v6074_v31 }
 0x911   : > { %v6037_v1 = vpop.f32.mrf.mxu1  ;;  %v6077_v38 = vpop.f32.mrf.mxu0 }
 0x912   : > { %v4997_v62 = vadd.f32 %v6076_v42, %v6012_v51 }
 0x913   : > { %v6038_v37 = vpop.f32.mrf.mxu1  ;;  %v6078_v6 = vpop.f32.mrf.mxu0 }
 0x914   : > { %v6039_v26 = vadd.f32 %v6038_v37, %v6037_v1  ;;  %v6079_v21 = vadd.f32 %v6078_v6, %v6077_v38 }
 0x915   : > { %v6040_v16 = vpop.f32.mrf.mxu1  ;;  %v6080_v2 = vpop.f32.mrf.mxu0 }
 0x916   : > { %v9726_v47 = vadd.f32 %v6079_v21, %v6015_v43 }
 0x917   : > { %v6041_v24 = vpop.f32.mrf.mxu1  ;;  %v6081_v40 = vpop.f32.mrf.mxu0 }
 0x918   : > { %v6042_v46 = vadd.f32 %v6041_v24, %v6040_v16  ;;  %v6082_v0 = vadd.f32 %v6081_v40, %v6080_v2 }
 0x919   : > { %v6043_v5 = vpop.f32.mrf.mxu1  ;;  %v6083_v11 = vpop.f32.mrf.mxu0 }
 0x91a   : > { %v9728_v30 = vadd.f32 %v6082_v0, %v6018_v8 }
 0x91b   : > { %v6044_v3 = vpop.f32.mrf.mxu1  ;;  %v6084_v53 = vpop.f32.mrf.mxu0 }
 0x91c   : > { %v6045_v7 = vadd.f32 %v6044_v3, %v6043_v5  ;;  %v6085_v25 = vadd.f32 %v6084_v53, %v6083_v11 }
 0x91d   : > { %v6046_v50 = vpop.f32.mrf.mxu1  ;;  %v6086_v10 = vpop.f32.mrf.mxu0 }
 0x91e   : > { %v9730_v55 = vadd.f32 %v6085_v25, %v6021_v27 }
 0x91f   : > { %v6047_v51 = vpop.f32.mrf.mxu1  ;;  %v6087_v14 = vpop.f32.mrf.mxu0 }
 0x920   : > { %v6048_v15 = vadd.f32 %v6047_v51, %v6046_v50  ;;  %v6088_v43 = vadd.f32 %v6087_v14, %v6086_v10 }
 0x921   : > { %v6089_v60 = vpop.f32.mrf.mxu0 }
 0x922   : > { %v9732_v35 = vadd.f32 %v6088_v43, %v6024_v12  ;;  %v6129_v59 = vpop.f32.mrf.mxu1 }
 0x923   : > { %v6090_v39 = vpop.f32.mrf.mxu0 }
 0x924   : > { %v6091_v49 = vadd.f32 %v6090_v39, %v6089_v60  ;;  %v6130_v8 = vpop.f32.mrf.mxu1 }
 0x925   : > { %v6131_v54 = vadd.f32 %v6130_v8, %v6129_v59  ;;  %v6092_v63 = vpop.f32.mrf.mxu0 }
 0x926   : > { %v9734_v56 = vadd.f32 %v6091_v49, %v6027_v29  ;;  %v6132_v28 = vpop.f32.mrf.mxu1 }
 0x927   : > { %v9736_v9 = vadd.f32 %v6131_v54, %v4986_v61  ;;  %v6093_v27 = vpop.f32.mrf.mxu0 }
 0x928   : > { %v6094_v45 = vadd.f32 %v6093_v27, %v6092_v63  ;;  %v6133_v32 = vpop.f32.mrf.mxu1 }
 0x929   : > { %v6134_v33 = vadd.f32 %v6133_v32, %v6132_v28  ;;  %v6095_v13 = vpop.f32.mrf.mxu0 }
 0x92a   : > { %v9738_v22 = vadd.f32 %v6094_v45, %v6030_v20  ;;  %v6135_v12 = vpop.f32.mrf.mxu1 }
 0x92b   : > { %v9740_v17 = vadd.f32 %v6134_v33, %v4989_v58  ;;  %v6096_v41 = vpop.f32.mrf.mxu0 }
 0x92c   : > { %v6097_v19 = vadd.f32 %v6096_v41, %v6095_v13  ;;  %v6136_v57 = vpop.f32.mrf.mxu1 }
 0x92d   : > { %v6137_v23 = vadd.f32 %v6136_v57, %v6135_v12  ;;  %v6098_v4 = vpop.f32.mrf.mxu0 }
 0x92e   : > { %v9742_v29 = vadd.f32 %v6097_v19, %v6033_v18  ;;  %v6138_v52 = vpop.f32.mrf.mxu1 }
 0x92f   : > { %v9744_v61 = vadd.f32 %v6137_v23, %v4994_v36  ;;  %v6099_v31 = vpop.f32.mrf.mxu0 }
 0x930   : > { %v6100_v34 = vadd.f32 %v6099_v31, %v6098_v4  ;;  %v6139_v48 = vpop.f32.mrf.mxu1 }
 0x931   : > { %v6140_v42 = vadd.f32 %v6139_v48, %v6138_v52  ;;  %v6101_v1 = vpop.f32.mrf.mxu0 }
 0x932   : > { %v9746_v20 = vadd.f32 %v6100_v34, %v6036_v44  ;;  %v6141_v38 = vpop.f32.mrf.mxu1 }
 0x933   : > { %v9748_v58 = vadd.f32 %v6140_v42, %v4997_v62  ;;  %v6102_v37 = vpop.f32.mrf.mxu0 }
 0x934   : > { %v6103_v6 = vadd.f32 %v6102_v37, %v6101_v1  ;;  %v6142_v21 = vpop.f32.mrf.mxu1 }
 0x935   : > { %10209 = vst [vmem:[#allocation59_spill] sm:$0xff] %v9748_v58  ;;  %v6104_v16 = vpop.f32.mrf.mxu0  ;;  %v6143_v48 = vadd.f32 %v6142_v21, %v6141_v38 }
 0x936   : > { %v9750_v2 = vadd.f32 %v6103_v6, %v6039_v26  ;;  %v6144_v18 = vpop.f32.mrf.mxu1 }
 0x937   : > { %v6105_v24 = vpop.f32.mrf.mxu0 }
 0x938   : > { %v6106_v36 = vadd.f32 %v6105_v24, %v6104_v16  ;;  %v6145_v40 = vpop.f32.mrf.mxu1  ;;  %v5099_v24 = vadd.f32 %v6143_v48, %v9726_v47 }
 0x939   : > { %v6107_v0 = vpop.f32.mrf.mxu0 }
 0x93a   : > { %v9752_v5 = vadd.f32 %v6106_v36, %v6042_v46  ;;  %v6147_v11 = vpop.f32.mrf.mxu1  ;;  %v6146_v36 = vadd.f32 %v6145_v40, %v6144_v18 }
 0x93b   : > { %v6108_v3 = vpop.f32.mrf.mxu0 }
 0x93c   : > { %v6109_v44 = vadd.f32 %v6108_v3, %v6107_v0  ;;  %v6148_v53 = vpop.f32.mrf.mxu1  ;;  %v5102_v38 = vadd.f32 %v6146_v36, %v9728_v30 }
 0x93d   : > { %v6110_v25 = vpop.f32.mrf.mxu0  ;;  %v6149_v21 = vadd.f32 %v6148_v53, %v6147_v11 }
 0x93e   : > { %v9754_v62 = vadd.f32 %v6109_v44, %v6045_v7  ;;  %v6150_v50 = vpop.f32.mrf.mxu1 }
 0x93f   : > { %v6111_v10 = vpop.f32.mrf.mxu0 }
 0x940   : > { %v6112_v51 = vadd.f32 %v6111_v10, %v6110_v25  ;;  %v6151_v14 = vpop.f32.mrf.mxu1 }
 0x941   : > { %v9756_v26 = vpop.f32.mrf.mxu0 }
 0x942   : > { %v9758_v43 = vadd.f32 %v6112_v51, %v6048_v15  ;;  %v6153_v60 = vpop.f32.mrf.mxu1 }
 0x943   : > { %v9760_v59 = vpop.f32.mrf.mxu0 }
 0x944   : > { %10210 = vst [vmem:[#allocation53_spill] sm:$0xff] %v9758_v43  ;;  %v6154_v46 = vpop.f32.mrf.mxu1 }
 0x945   : > { %v9762_v39 = vpop.f32.mrf.mxu0  ;;  %v6155_v36 = vadd.f32 %v6154_v46, %v6153_v60 }
 0x946   : > { %v9764_v49 = vpop.f32.mrf.mxu1 }
 0x947   : > { %v9766_v8 = vpop.f32.mrf.mxu0 }
 0x948   : > { %v9768_v7 = vpop.f32.mrf.mxu1 }
 0x949   : > { %v9770_v54 = vpop.f32.mrf.mxu0 }
 0x94a   : > { %v9772_v63 = vpop.f32.mrf.mxu1 }
 0x94b   : > { %v9774_v28 = vpop.f32.mrf.mxu0 }
 0x94c   : > { %v9776_v15 = vpop.f32.mrf.mxu1 }
 0x94d   : > { %v9778_v27 = vpop.f32.mrf.mxu0 }
 0x94e   : > { %v9780_v45 = vpop.f32.mrf.mxu1 }
 0x94f   : > { %v9782_v32 = vpop.f32.mrf.mxu0 }
 0x950   : > { %v9784_v33 = vpop.f32.mrf.mxu1 }
 0x951   : > { %v6205_v13 = vpop.f32.mrf.mxu0 }
 0x952   : > { %v9786_v12 = vpop.f32.mrf.mxu1 }
 0x953   : > { %v6206_v41 = vpop.f32.mrf.mxu0 }
 0x954   : > { %v9788_v19 = vpop.f32.mrf.mxu1  ;;  %v6207_v37 = vadd.f32 %v6206_v41, %v6205_v13 }
 0x955   : > { %v6208_v57 = vpop.f32.mrf.mxu0 }
 0x956   : > { %v9790_v23 = vpop.f32.mrf.mxu1  ;;  %v5196_v10 = vadd.f32 %v6207_v37, %v5099_v24 }
 0x957   : > { %v6209_v4 = vpop.f32.mrf.mxu0 }
 0x958   : > { %v9792_v52 = vpop.f32.mrf.mxu1  ;;  %v6210_v44 = vadd.f32 %v6209_v4, %v6208_v57  ;;  %v5107_v57 = vadd.f32 %v6149_v21, %v9730_v55  ;;  %v6152_v4 = vadd.f32 %v6151_v14, %v6150_v50  ;;  %v5115_v14 = vadd.f32 %v6155_v36, %v9734_v56 }
 0x959   : > { %v6211_v31 = vpop.f32.mrf.mxu0 }
 0x95a   : > { %v9794_v34 = vpop.f32.mrf.mxu1  ;;  %v5199_v18 = vadd.f32 %v6210_v44, %v5102_v38 }
 0x95b   : > { %v6212_v42 = vpop.f32.mrf.mxu0 }
 0x95c   : > { %v9796_v1 = vpop.f32.mrf.mxu1  ;;  %v6213_v43 = vadd.f32 %v6212_v42, %v6211_v31  ;;  %v5110_v42 = vadd.f32 %v6152_v4, %v9732_v35 }
 0x95d   : > { %v6214_v6 = vpop.f32.mrf.mxu0 }
 0x95e   : > { %v9798_v16 = vpop.f32.mrf.mxu1  ;;  %v5204_v24 = vadd.f32 %v6213_v43, %v5107_v57 }
 0x95f   : > { %v6215_v0 = vpop.f32.mrf.mxu0 }
 0x960   : > { %v9803_v3 = vpop.f32.mrf.mxu1  ;;  %v6216_v11 = vadd.f32 %v6215_v0, %v6214_v6  ;;  %v6158_v6 = vadd.f32 %v9768_v7, %v9764_v49 }
 0x961   : > { %v6217_v25 = vpop.f32.mrf.mxu0 }
 0x962   : > { %v5292_v51 = vpop.f32.mrf.mxu1  ;;  %v5207_v38 = vadd.f32 %v6216_v11, %v5110_v42 }
 0x963   : > { %v5293_v58 = vadd.f32 %v5292_v51, %v5196_v10  ;;  %v6218_v13 = vpop.f32.mrf.mxu0 }
 0x964   : > { %v5294_v41 = vpop.f32.mrf.mxu1  ;;  %v6219_v51 = vadd.f32 %v6218_v13, %v6217_v25  ;;  %v5118_v25 = vadd.f32 %v6158_v6, %v9738_v22  ;;  %v6161_v13 = vadd.f32 %v9776_v15, %v9772_v63 }
 0x965   : > { %5343 = vst [vmem:[%s9806_s10 + $0x20] sm:$0xff] %v5293_v58  ;;  %v6220_v47 = vpop.f32.mrf.mxu0 }
 0x966   : > { %v5295_v40 = vpop.f32.mrf.mxu1  ;;  %v5212_v46 = vadd.f32 %v6219_v51, %v5115_v14 }
 0x967   : > { %v5296_v48 = vadd.f32 %v5295_v40, %v5199_v18  ;;  %v6221_v37 = vpop.f32.mrf.mxu0 }
 0x968   : > { %v5297_v30 = vpop.f32.mrf.mxu1  ;;  %v6222_v35 = vadd.f32 %v6221_v37, %v6220_v47  ;;  %v5123_v47 = vadd.f32 %v6161_v13, %v9742_v29  ;;  %v6195_v29 = vadd.f32 %v9760_v59, %v9756_v26 }
 0x969   : > { %5344 = vst [vmem:[%s9806_s10 + $0x28] sm:$0xff] %v5296_v48  ;;  %v6223_v53 = vpop.f32.mrf.mxu0  ;;  %v6164_v48 = vadd.f32 %v9784_v33, %v9780_v45 }
 0x96a   : > { %v5300_v31 = vpop.f32.mrf.mxu1  ;;  %v5215_v7 = vadd.f32 %v6222_v35, %v5118_v25  ;;  %v5180_v26 = vadd.f32 %v6195_v29, %v9736_v9 }
 0x96b   : > { %v5301_v58 = vadd.f32 %v5300_v31, %v5204_v24  ;;  %v6224_v10 = vpop.f32.mrf.mxu0  ;;  %v6167_v31 = vadd.f32 %v9788_v19, %v9786_v12  ;;  %v6198_v19 = vadd.f32 %v9766_v8, %v9762_v39  ;;  %v6201_v39 = vadd.f32 %v9774_v28, %v9770_v54 }
 0x96c   : > { %v5302_v44 = vpop.f32.mrf.mxu1  ;;  %v6225_v57 = vadd.f32 %v6224_v10, %v6223_v53  ;;  %v5126_v53 = vadd.f32 %v6164_v48, %v9746_v20  ;;  %v6170_v20 = vadd.f32 %v9792_v52, %v9790_v23  ;;  %v6173_v23 = vadd.f32 %v9796_v1, %v9794_v34 }
 0x96d   : > { %5345 = vst [vmem:[%s9806_s10 + $0x30] sm:$0xff] %v5301_v58  ;;  %v6226_v55 = vpop.f32.mrf.mxu0  ;;  %v5131_v51 = vadd.f32 %v6167_v31, %v9750_v2  ;;  %v5183_v8 = vadd.f32 %v6198_v19, %v9740_v17  ;;  %v6176_v34 = vadd.f32 %v9803_v3, %v9798_v16  ;;  %v6204_v54 = vadd.f32 %v9782_v32, %v9778_v27  ;;  %v10213_v27 = vld [vmem:[#allocation59_spill] sm:$0xff] }
 0x96e   : > { %v5303_v50 = vpop.f32.mrf.mxu1  ;;  %v5220_v15 = vadd.f32 %v6225_v57, %v5123_v47  ;;  %v5134_v2 = vadd.f32 %v6170_v20, %v9752_v5  ;;  %v5188_v28 = vadd.f32 %v6201_v39, %v9744_v61  ;;  %v10212_v57 = vld [vmem:[#allocation53_spill] sm:$0xff] }
 0x96f   : > { %v5304_v43 = vadd.f32 %v5303_v50, %v5207_v38  ;;  %v6227_v0 = vpop.f32.mrf.mxu0  ;;  %v5142_v16 = vadd.f32 %v6176_v34, %v10212_v57  ;;  %v5191_v32 = vadd.f32 %v6204_v54, %v10213_v27 }
 0x970   : > { %v5305_v21 = vpop.f32.mrf.mxu1  ;;  %v6228_v11 = vadd.f32 %v6227_v0, %v6226_v55  ;;  %v5432_v31 = vld [vmem:[%s9806_s10 + $0x28] sm:$0xff] (%p6874_p5) }
 0x971   : > { %5346 = vst [vmem:[%s9806_s10 + $0x38] sm:$0xff] %v5304_v43  ;;  %v6229_v60 = vpop.f32.mrf.mxu0  ;;  %5433 = vst [vmem:[%s5363_s13 + $0x50] sm:$0xff] (%p6874_p5), %v5432_v31 }
 0x972   : > { %v5308_v41 = vpop.f32.mrf.mxu1  ;;  %v5223_v10 = vadd.f32 %v6228_v11, %v5126_v53  ;;  %v5430_v53 = vld [vmem:[%s9806_s10 + $0x20] sm:$0xff] (%p6874_p5) }
 0x973   : > { %v5309_v18 = vadd.f32 %v5308_v41, %v5212_v46  ;;  %v6230_v56 = vpop.f32.mrf.mxu0  ;;  %v5139_v41 = vadd.f32 %v6173_v23, %v9754_v62  ;;  %5431 = vst [vmem:[%s5363_s13 + $0x40] sm:$0xff] (%p6874_p5), %v5430_v53 }
 0x974   : > { %v5310_v40 = vpop.f32.mrf.mxu1  ;;  %v6231_v33 = vadd.f32 %v6230_v56, %v6229_v60 }
 0x975   : > { %5347 = vst [vmem:[%s9806_s10 + $0x40] sm:$0xff] %v5309_v18  ;;  %v6232_v49 = vpop.f32.mrf.mxu0 }
 0x976   : > { %v5311_v4 = vpop.f32.mrf.mxu1  ;;  %v5228_v14 = vadd.f32 %v6231_v33, %v5131_v51 }
 0x977   : > { %v5312_v37 = vadd.f32 %v5311_v4, %v5215_v7  ;;  %v6233_v22 = vpop.f32.mrf.mxu0 }
 0x978   : > { %v5313_v30 = vpop.f32.mrf.mxu1  ;;  %v6234_v59 = vadd.f32 %v6233_v22, %v6232_v49 }
 0x979   : > { %5348 = vst [vmem:[%s9806_s10 + $0x48] sm:$0xff] %v5312_v37  ;;  %v6235_v63 = vpop.f32.mrf.mxu0 }
 0x97a   : > { %v5316_v24 = vpop.f32.mrf.mxu1  ;;  %v5231_v60 = vadd.f32 %v6234_v59, %v5134_v2 }
 0x97b   : > { %v5317_v42 = vadd.f32 %v5316_v24, %v5220_v15  ;;  %v6236_v36 = vpop.f32.mrf.mxu0 }
 0x97c   : > { %v5318_v45 = vpop.f32.mrf.mxu1  ;;  %v6237_v21 = vadd.f32 %v6236_v36, %v6235_v63  ;;  %v5436_v36 = vld [vmem:[%s9806_s10 + $0x38] sm:$0xff] (%p6874_p5)  ;;  %v5438_v29 = vld [vmem:[%s9806_s10 + $0x40] sm:$0xff] (%p6874_p5) }
 0x97d   : > { %5349 = vst [vmem:[%s9806_s10 + $0x50] sm:$0xff] %v5317_v42  ;;  %v6238_v58 = vpop.f32.mrf.mxu0  ;;  %v5434_v42 = vld [vmem:[%s9806_s10 + $0x30] sm:$0xff] (%p6874_p5)  ;;  %5437 = vst [vmem:[%s5363_s13 + $0x70] sm:$0xff] (%p6874_p5), %v5436_v36 }
 0x97e   : > { %v5319_v44 = vpop.f32.mrf.mxu1  ;;  %v5236_v56 = vadd.f32 %v6237_v21, %v5139_v41  ;;  %5435 = vst [vmem:[%s5363_s13 + $0x60] sm:$0xff] (%p6874_p5), %v5434_v42  ;;  %5439 = vst [vmem:[%s5363_s13 + $0x80] sm:$0xff] (%p6874_p5), %v5438_v29 }
 0x97f   : > { %v5320_v55 = vadd.f32 %v5319_v44, %v5223_v10  ;;  %v6239_v12 = vpop.f32.mrf.mxu0 }
 0x980   : > { %v5321_v38 = vpop.f32.mrf.mxu1  ;;  %v6240_v13 = vadd.f32 %v6239_v12, %v6238_v58  ;;  %v5440_v45 = vld [vmem:[%s9806_s10 + $0x48] sm:$0xff] (%p6874_p5) }
 0x981   : > { %5350 = vst [vmem:[%s9806_s10 + $0x58] sm:$0xff] %v5320_v55  ;;  %v5276_v50 = vpop.f32.mrf.mxu0  ;;  %5441 = vst [vmem:[%s5363_s13 + $0x90] sm:$0xff] (%p6874_p5), %v5440_v45 }
 0x982   : > { %v5277_v6 = vadd.f32 %v5276_v50, %v5180_v26  ;;  %v5324_v43 = vpop.f32.mrf.mxu1  ;;  %v5239_v47 = vadd.f32 %v6240_v13, %v5142_v16 }
 0x983   : > { %v5325_v52 = vadd.f32 %v5324_v43, %v5228_v14  ;;  %v5278_v0 = vpop.f32.mrf.mxu0 }
 0x984   : > { %5339 = vst [vmem:[%s9806_s10] sm:$0xff] %v5277_v6  ;;  %v5326_v9 = vpop.f32.mrf.mxu1  ;;  %v5442_v33 = vld [vmem:[%s9806_s10 + $0x50] sm:$0xff] (%p6874_p5) }
 0x985   : > { %5351 = vst [vmem:[%s9806_s10 + $0x60] sm:$0xff] %v5325_v52  ;;  %v5279_v35 = vpop.f32.mrf.mxu0  ;;  %5443 = vst [vmem:[%s5363_s13 + $0xa0] sm:$0xff] (%p6874_p5), %v5442_v33 }
 0x986   : > { %v5280_v46 = vadd.f32 %v5279_v35, %v5183_v8  ;;  %v5327_v5 = vpop.f32.mrf.mxu1 }
 0x987   : > { %v5328_v1 = vadd.f32 %v5327_v5, %v5231_v60  ;;  %v5281_v25 = vpop.f32.mrf.mxu0 }
 0x988   : > { %5340 = vst [vmem:[%s9806_s10 + $0x8] sm:$0xff] %v5280_v46  ;;  %v5329_v17 = vpop.f32.mrf.mxu1  ;;  %v5444_v58 = vld [vmem:[%s9806_s10 + $0x58] sm:$0xff] (%p6874_p5) }
 0x989   : > { %5352 = vst [vmem:[%s9806_s10 + $0x68] sm:$0xff] %v5328_v1  ;;  %v5284_v18 = vpop.f32.mrf.mxu0  ;;  %5445 = vst [vmem:[%s5363_s13 + $0xb0] sm:$0xff] (%p6874_p5), %v5444_v58 }
 0x98a   : > { %v5285_v62 = vadd.f32 %v5284_v18, %v5188_v28  ;;  %v5332_v40 = vpop.f32.mrf.mxu1 }
 0x98b   : > { %v5333_v3 = vadd.f32 %v5332_v40, %v5236_v56  ;;  %v5286_v49 = vpop.f32.mrf.mxu0  ;;  %v5422_v11 = vld [vmem:[%s9806_s10] sm:$0xff] (%p6874_p5) }
 0x98c   : > { %5341 = vst [vmem:[%s9806_s10 + $0x10] sm:$0xff] %v5285_v62  ;;  %v5334_v7 = vpop.f32.mrf.mxu1  ;;  %5423 = vst [vmem:[%s5363_s13] sm:$0xff] (%p6874_p5), %v5422_v11  ;;  %v5446_v10 = vld [vmem:[%s9806_s10 + $0x60] sm:$0xff] (%p6874_p5) }
 0x98d   : > { %5353 = vst [vmem:[%s9806_s10 + $0x70] sm:$0xff] %v5333_v3  ;;  %v5287_v4 = vpop.f32.mrf.mxu0  ;;  %5361 = sbr.rel (!%p6874_p5) target bundleno = 2458 (0x99a), region = 79  ;;  %5447 = vst [vmem:[%s5363_s13 + $0xc0] sm:$0xff] (%p6874_p5), %v5446_v10 }
 0x98e   : > { %v5288_v61 = vadd.f32 %v5287_v4, %v5191_v32  ;;  %v5335_v48 = vpop.f32.mrf.mxu1 }
 0x98f   : > { %v5336_v37 = vadd.f32 %v5335_v48, %v5239_v47  ;;  %v5289_v22 = vpop.f32.mrf.mxu0  ;;  %v5424_v63 = vld [vmem:[%s9806_s10 + $0x8] sm:$0xff] (%p6874_p5) }
 0x990   : > { %5342 = vst [vmem:[%s9806_s10 + $0x18] sm:$0xff] %v5288_v61  ;;  %v5337_v30 = vpop.f32.mrf.mxu1  ;;  %5425 = vst [vmem:[%s5363_s13 + $0x10] sm:$0xff] (%p6874_p5), %v5424_v63  ;;  %v5448_v44 = vld [vmem:[%s9806_s10 + $0x68] sm:$0xff] (%p6874_p5) }
 0x991   : > { %5354 = vst [vmem:[%s9806_s10 + $0x78] sm:$0xff] %v5336_v37  ;;  %5449 = vst [vmem:[%s5363_s13 + $0xd0] sm:$0xff] (%p6874_p5), %v5448_v44 }
 0x993   : > { %v5426_v15 = vld [vmem:[%s9806_s10 + $0x10] sm:$0xff] }
 0x994   : > { %5427 = vst [vmem:[%s5363_s13 + $0x20] sm:$0xff] %v5426_v15  ;;  %v5450_v51 = vld [vmem:[%s9806_s10 + $0x70] sm:$0xff] }
 0x995   : > { %5451 = vst [vmem:[%s5363_s13 + $0xe0] sm:$0xff] %v5450_v51 }
 0x997   : > { %v5428_v24 = vld [vmem:[%s9806_s10 + $0x18] sm:$0xff] }
 0x998   : > { %5429 = vst [vmem:[%s5363_s13 + $0x30] sm:$0xff] %v5428_v24  ;;  %v5452_v20 = vld [vmem:[%s9806_s10 + $0x78] sm:$0xff] }
 0x999   : > { %5453 = vst [vmem:[%s5363_s13 + $0xf0] sm:$0xff] %v5452_v20 }
 0x99a PF: > { %p15_p10 = scmp.ge.s32.totalorder %s6861_s9, 4   ;;  %s10215_s27 = smov %s6777_s28 }
 0x99b   : > { %s10216_s28 = smov %s6872_s12  ;;  %s10217_s29 = smov %s6861_s9 }
 0x99c   :  { %17 = sbr.rel (!%p15_p10) target bundleno = 2 (0x2), region = 148 }

</bundles_post_ra>
